<compile_context>
chip_gen: v6e
topology: v6e:2x2x1
jax: 0.10.0
libtpu: 0.0.40
codegen_flags: <defaults>
</compile_context>

<pallas_src>
import jax
import jax.numpy as jnp
from jax.experimental import pallas as pl
from jax.experimental.pallas import tpu as pltpu

# ---- model hyper-parameters (small, consistent with the module) ------------
MODEL_DIM = 32          # MODEL_DIM external constant in the original code
N_HEAD = 8              # module default
N_LAYERS = 6            # module default n_encoder_block
DFF = 128               # dim_feedforward (torch default 2048, scaled down to stay small)
HEAD_DIM = MODEL_DIM // N_HEAD
EPS = 1e-5              # torch LayerNorm default eps

SEQ = 8
BATCH = 2
N_TOK = BATCH * SEQ     # batch folded into the token/row dimension


def _layer_norm(x, gamma, beta):
    """Single-pass LayerNorm: two independent lane reductions, var = E[x^2]-E[x]^2."""
    inv_n = 1.0 / x.shape[-1]
    s1 = jnp.sum(x, axis=-1, keepdims=True)
    s2 = jnp.sum(x * x, axis=-1, keepdims=True)
    mean = s1 * inv_n
    var = jnp.maximum(s2 * inv_n - mean * mean, 0.0)
    return (x - mean) * jax.lax.rsqrt(var + EPS) * gamma + beta


# ---------------------------------------------------------------------------
# Pallas kernel: whole encoder stack in one invocation (no grid).
# ---------------------------------------------------------------------------
def ext_decoder_kernel(
    x_ref,        # (N, D)         input activations (batch folded)
    bias_ref,     # (N, H*N)       additive attention bias, tiled per head
    gsel_ref,     # (N, H*N)       0/1 selector: [j, h*N+j'] = (j == j')
    gselt_ref,    # (H*N, N)       gsel transposed
    mdk_ref,      # (D, H*N)       head mask: [d, h*N+j] = (d // hd == h)
    mkd_ref,      # (H*N, D)       mdk transposed (also the per-head sum selector)
    wqkv_ref,     # (L, D, 3D)     fused QKV proj (Q columns pre-scaled by 1/sqrt(hd))
    bqkv_ref,     # (L, 1, 3D)
    wo_ref,       # (L, D, D)      output projection (merged-head rows, h*hd+e)
    bo_ref,       # (L, 1, D)
    w1_ref,       # (L, D, DFF)
    b1_ref,       # (L, 1, DFF)
    w2_ref,       # (L, DFF, D)
    b2_ref,       # (L, 1, D)
    g1_ref,       # (L, 1, D)      norm1 weight
    bt1_ref,      # (L, 1, D)      norm1 bias
    g2_ref,       # (L, 1, D)      norm2 weight
    bt2_ref,      # (L, 1, D)      norm2 bias
    out_ref,      # (N, D)
):
    # hoist layer-invariant loads out of the layer loop
    bias = bias_ref[...]      # (N, H*N)
    gsel = gsel_ref[...]      # (N, H*N)
    gselt = gselt_ref[...]    # (H*N, N)
    mdk = mdk_ref[...]        # (D, H*N)
    mkd = mkd_ref[...]        # (H*N, D)
    n_layers = wqkv_ref.shape[0]

    def layer_body(l, x):
        # ---------------- self-attention block (norm_first) ----------------
        h = _layer_norm(x, g1_ref[l], bt1_ref[l])                              # (N, D)

        # fused QKV projection: one wide (16,32)x(32,96) MXU dot
        qkv = jnp.dot(h, wqkv_ref[l], preferred_element_type=jnp.float32) + bqkv_ref[l]
        q = qkv[:, :MODEL_DIM]                                                 # (N, D)
        k = qkv[:, MODEL_DIM:2 * MODEL_DIM]                                    # (N, D)
        v = qkv[:, 2 * MODEL_DIM:]                                             # (N, D)

        # Head-blocked wide scores: S[i, h*N+j] = sum_e Q[i,h*hd+e] K[j,h*hd+e]
        #   K_blk[d, h*N+j] = K[j, d] * (d//hd == h)
        k_blk = jnp.dot(k.T, gsel, preferred_element_type=jnp.float32) * mdk   # (D, H*N)
        s = jnp.dot(q, k_blk, preferred_element_type=jnp.float32) + bias       # (N, H*N)

        # per-query constant shift (exactly softmax-invariant within each head block)
        s = s - jnp.max(s, axis=-1, keepdims=True)
        p = jnp.exp(s)                                                         # (N, H*N)

        # PV with heads folded back into the feature dim:
        #   V_blk[h*N+j, d] = V[j, d] * (d//hd == h);  ctx[i, d] = sum_j P[i,(d//hd)N+j] V[j,d]
        v_blk = jnp.dot(gselt, v, preferred_element_type=jnp.float32) * mkd    # (H*N, D)
        ctx = jnp.dot(p, v_blk, preferred_element_type=jnp.float32)            # (N, D)

        # normalize AFTER PV: per-head row-sum expanded to its hd lanes via one matmul
        denom = jnp.dot(p, mkd, preferred_element_type=jnp.float32)            # (N, D)
        ctx = ctx * pl.reciprocal(denom, approx=True)

        # head merge + head reduction folded into a single (D,D) output projection
        x = x + jnp.dot(ctx, wo_ref[l], preferred_element_type=jnp.float32) + bo_ref[l]

        # ---------------- feed-forward block (norm_first) ------------------
        h2 = _layer_norm(x, g2_ref[l], bt2_ref[l])
        f = jnp.dot(h2, w1_ref[l], preferred_element_type=jnp.float32) + b1_ref[l]
        f = jnp.maximum(f, 0.0)                                                # relu (torch default)
        x = x + jnp.dot(f, w2_ref[l], preferred_element_type=jnp.float32) + b2_ref[l]
        return x

    out_ref[...] = jax.lax.fori_loop(0, n_layers, layer_body, x_ref[...], unroll=True)


# ---------------------------------------------------------------------------
# JAX glue
# ---------------------------------------------------------------------------
def _head_constants(n_tok):
    """Constant 0/1 selector / mask matrices for the head-blocked wide attention."""
    hn = N_HEAD * n_tok
    gsel = jnp.tile(jnp.eye(n_tok, dtype=jnp.float32), (1, N_HEAD))            # (N, H*N)
    head_of_col = jnp.arange(hn, dtype=jnp.int32) // n_tok                     # (H*N,)
    head_of_dim = jnp.arange(MODEL_DIM, dtype=jnp.int32) // HEAD_DIM           # (D,)
    mdk = (head_of_dim[:, None] == head_of_col[None, :]).astype(jnp.float32)   # (D, H*N)
    return {"gsel": gsel, "gselt": gsel.T, "mdk": mdk, "mkd": mdk.T}


def _attention_bias(src_mask):
    """(N, N) additive bias: block-diagonal batch mask + key-padding mask."""
    B, S = src_mask.shape
    N = B * S
    same_batch = jnp.arange(B)[:, None] == jnp.arange(B)[None, :]              # (B, B)
    allow = jnp.logical_and(same_batch[:, None, :, None],                      # (B, 1, B, S)
                            jnp.logical_not(src_mask)[None, None, :, :])
    allow = jnp.broadcast_to(allow, (B, S, B, S)).reshape(N, N)
    return jnp.where(allow, 0.0, -1e9).astype(jnp.float32)
    # NOTE: a fully padded sequence degrades to uniform attention weights instead
    # of NaN (benign divergence from PyTorch SDPA).


def run_ext_decoder(x, bias_wide, consts, p):
    """x: (N, D); bias_wide: (N, H*N); consts: selector dict; p: layer-stacked params."""
    N, D = x.shape
    args = [x, bias_wide, consts["gsel"], consts["gselt"], consts["mdk"], consts["mkd"],
            p["wqkv"], p["bqkv"], p["wo"], p["bo"], p["w1"], p["b1"], p["w2"], p["b2"],
            p["g1"], p["bt1"], p["g2"], p["bt2"]]
    return pl.pallas_call(
        ext_decoder_kernel,
        out_shape=jax.ShapeDtypeStruct((N, D), jnp.float32),
        # no grid: everything (weights for all layers included, ~300 KiB) is resident
        # in VMEM for the whole call on every TPU generation.
        in_specs=[pl.BlockSpec(memory_space=pltpu.MemorySpace.VMEM) for _ in args],
        out_specs=pl.BlockSpec(memory_space=pltpu.MemorySpace.VMEM),
    )(*args)


def init_params(key, n_layers=N_LAYERS):
    """Layer-stacked params.  wqkv = [Wq*scale | Wk | Wv] (i.e. in_proj_weight.T with the
    1/sqrt(head_dim) folded into Q), wo = out_proj.weight.T (merged-head row order)."""
    std = 0.02
    scale = 1.0 / (HEAD_DIM ** 0.5)
    layers = []
    for i in range(n_layers):
        kq, kk, kv, ko, k1, k2 = jax.random.split(jax.random.fold_in(key, i), 6)
        wq = jax.random.normal(kq, (MODEL_DIM, MODEL_DIM), jnp.float32) * std * scale
        wk = jax.random.normal(kk, (MODEL_DIM, MODEL_DIM), jnp.float32) * std
        wv = jax.random.normal(kv, (MODEL_DIM, MODEL_DIM), jnp.float32) * std
        layers.append({
            "wqkv": jnp.concatenate([wq, wk, wv], axis=1),                     # (D, 3D)
            "bqkv": jnp.zeros((1, 3 * MODEL_DIM), jnp.float32),
            "wo": jax.random.normal(ko, (MODEL_DIM, MODEL_DIM), jnp.float32) * std,
            "bo": jnp.zeros((1, MODEL_DIM), jnp.float32),
            "w1": jax.random.normal(k1, (MODEL_DIM, DFF), jnp.float32) * std,
            "b1": jnp.zeros((1, DFF), jnp.float32),
            "w2": jax.random.normal(k2, (DFF, MODEL_DIM), jnp.float32) * std,
            "b2": jnp.zeros((1, MODEL_DIM), jnp.float32),
            "g1": jnp.ones((1, MODEL_DIM), jnp.float32),
            "bt1": jnp.zeros((1, MODEL_DIM), jnp.float32),
            "g2": jnp.ones((1, MODEL_DIM), jnp.float32),
            "bt2": jnp.zeros((1, MODEL_DIM), jnp.float32),
        })
    return {k: jnp.stack([p[k] for p in layers], axis=0) for k in layers[0]}


def ext_decoder_forward(src_ids, src_mask, params):
    """src_ids: (B, S, MODEL_DIM) float32; src_mask: (B, S) bool, True == padded key."""
    B, S, D = src_ids.shape
    N = B * S
    x = src_ids.reshape(N, D).astype(jnp.float32)
    bias_wide = jnp.tile(_attention_bias(src_mask), (1, N_HEAD))               # (N, H*N)
    consts = _head_constants(N)
    out = run_ext_decoder(x, bias_wide, consts, params)
    # TransformerEncoder built without a final `norm` -> no trailing LayerNorm.
    return out.reshape(B, S, D)
    # TODO(synk): dropout layers are omitted (eval-mode semantics only).


# ---------------------------------------------------------------------------
# Pure-JAX reference (per-head formulation) for a numerical sanity check.
# ---------------------------------------------------------------------------
def ref_forward(src_ids, src_mask, p):
    B, S, D = src_ids.shape
    N = B * S
    x = src_ids.reshape(N, D).astype(jnp.float32)
    bias = _attention_bias(src_mask)

    def ln(t, g, b):
        m = jnp.mean(t, -1, keepdims=True)
        v = jnp.mean((t - m) ** 2, -1, keepdims=True)
        return (t - m) / jnp.sqrt(v + EPS) * g + b

    for l in range(p["wqkv"].shape[0]):
        h = ln(x, p["g1"][l], p["bt1"][l])
        qkv = h @ p["wqkv"][l] + p["bqkv"][l]
        q = qkv[:, :D].reshape(N, N_HEAD, HEAD_DIM)
        k = qkv[:, D:2 * D].reshape(N, N_HEAD, HEAD_DIM)
        v = qkv[:, 2 * D:].reshape(N, N_HEAD, HEAD_DIM)
        s = jnp.einsum('qhe,khe->hqk', q, k) + bias[None]
        a = jax.nn.softmax(s, axis=-1)
        ctx = jnp.einsum('hqk,khe->qhe', a, v).reshape(N, D)
        x = x + ctx @ p["wo"][l] + p["bo"][l]
        h2 = ln(x, p["g2"][l], p["bt2"][l])
        x = x + jnp.maximum(h2 @ p["w1"][l] + p["b1"][l], 0.0) @ p["w2"][l] + p["b2"][l]
    return x.reshape(B, S, D)


if __name__ == "__main__":
    key = jax.random.PRNGKey(0)
    k_x, k_p = jax.random.split(key)

    src_ids = jax.random.normal(k_x, (BATCH, SEQ, MODEL_DIM), jnp.float32)
    # pad the last two positions of the second sequence
    src_mask = jnp.zeros((BATCH, SEQ), jnp.bool_).at[1, SEQ - 2:].set(True)

    params = init_params(k_p)

    out = jax.jit(ext_decoder_forward)(src_ids, src_mask, params)
    jax.block_until_ready(out)
    assert out.shape == (BATCH, SEQ, MODEL_DIM)
    assert bool(jnp.all(jnp.isfinite(out)))

    # sanity check against the pure-JAX per-head reference
    ref = ref_forward(src_ids, src_mask, params)
    max_err = float(jnp.max(jnp.abs(out - ref)))
    assert jnp.allclose(out, ref, atol=2e-2, rtol=2e-2), max_err

    print("KERNEL_OK")
</pallas_src>

<mosaic_0001>
module attributes {stable_mosaic.version = 11 : i64} {
  func.func @ext_decoder_kernel(%arg0: memref<16x32xf32, #tpu.memory_space<vmem>>, %arg1: memref<16x128xf32, #tpu.memory_space<vmem>>, %arg2: memref<16x128xf32, #tpu.memory_space<vmem>>, %arg3: memref<128x16xf32, #tpu.memory_space<vmem>>, %arg4: memref<32x128xf32, #tpu.memory_space<vmem>>, %arg5: memref<128x32xf32, #tpu.memory_space<vmem>>, %arg6: memref<6x32x96xf32, #tpu.memory_space<vmem>>, %arg7: memref<6x1x96xf32, #tpu.memory_space<vmem>>, %arg8: memref<6x32x32xf32, #tpu.memory_space<vmem>>, %arg9: memref<6x1x32xf32, #tpu.memory_space<vmem>>, %arg10: memref<6x32x128xf32, #tpu.memory_space<vmem>>, %arg11: memref<6x1x128xf32, #tpu.memory_space<vmem>>, %arg12: memref<6x128x32xf32, #tpu.memory_space<vmem>>, %arg13: memref<6x1x32xf32, #tpu.memory_space<vmem>>, %arg14: memref<6x1x32xf32, #tpu.memory_space<vmem>>, %arg15: memref<6x1x32xf32, #tpu.memory_space<vmem>>, %arg16: memref<6x1x32xf32, #tpu.memory_space<vmem>>, %arg17: memref<6x1x32xf32, #tpu.memory_space<vmem>>, %arg18: memref<16x32xf32, #tpu.memory_space<vmem>>) attributes {dimension_semantics = [], scalar_prefetch = 0 : i64, scratch_operands = 0 : i64, tpu.core_type = #tpu.core_type<tc>} {
    %c0 = arith.constant 0 : index
    %c0_0 = arith.constant 0 : index
    %0 = vector.load %arg1[%c0, %c0_0] : memref<16x128xf32, #tpu.memory_space<vmem>>, vector<16x128xf32>
    %c0_1 = arith.constant 0 : index
    %c0_2 = arith.constant 0 : index
    %1 = vector.load %arg2[%c0_1, %c0_2] : memref<16x128xf32, #tpu.memory_space<vmem>>, vector<16x128xf32>
    %c0_3 = arith.constant 0 : index
    %c0_4 = arith.constant 0 : index
    %2 = vector.load %arg3[%c0_3, %c0_4] : memref<128x16xf32, #tpu.memory_space<vmem>>, vector<128x16xf32>
    %c0_5 = arith.constant 0 : index
    %c0_6 = arith.constant 0 : index
    %3 = vector.load %arg4[%c0_5, %c0_6] : memref<32x128xf32, #tpu.memory_space<vmem>>, vector<32x128xf32>
    %c0_7 = arith.constant 0 : index
    %c0_8 = arith.constant 0 : index
    %4 = vector.load %arg5[%c0_7, %c0_8] : memref<128x32xf32, #tpu.memory_space<vmem>>, vector<128x32xf32>
    %c0_9 = arith.constant 0 : index
    %c0_10 = arith.constant 0 : index
    %5 = vector.load %arg0[%c0_9, %c0_10] : memref<16x32xf32, #tpu.memory_space<vmem>>, vector<16x32xf32>
    %c0_i32 = arith.constant 0 : i32
    %6 = arith.index_cast %c0_i32 : i32 to index
    %c0_11 = arith.constant 0 : index
    %c0_12 = arith.constant 0 : index
    %7 = vector.load %arg14[%6, %c0_11, %c0_12] : memref<6x1x32xf32, #tpu.memory_space<vmem>>, vector<1x1x32xf32>
    %8 = vector.shape_cast %7 : vector<1x1x32xf32> to vector<1x32xf32>
    %9 = arith.index_cast %c0_i32 : i32 to index
    %c0_13 = arith.constant 0 : index
    %c0_14 = arith.constant 0 : index
    %10 = vector.load %arg15[%9, %c0_13, %c0_14] : memref<6x1x32xf32, #tpu.memory_space<vmem>>, vector<1x1x32xf32>
    %11 = vector.shape_cast %10 : vector<1x1x32xf32> to vector<1x32xf32>
    %cst = arith.constant dense<0.000000e+00> : vector<16xf32>
    %12 = vector.multi_reduction <add>, %5, %cst [1] : vector<16x32xf32> to vector<16xf32>
    %13 = vector.shape_cast %12 : vector<16xf32> to vector<16x1xf32>
    %14 = arith.mulf %5, %5 : vector<16x32xf32>
    %cst_15 = arith.constant dense<0.000000e+00> : vector<16xf32>
    %15 = vector.multi_reduction <add>, %14, %cst_15 [1] : vector<16x32xf32> to vector<16xf32>
    %16 = vector.shape_cast %15 : vector<16xf32> to vector<16x1xf32>
    %cst_16 = arith.constant 3.125000e-02 : f32
    %17 = vector.broadcast %cst_16 : f32 to vector<16x1xf32>
    %18 = arith.mulf %13, %17 : vector<16x1xf32>
    %cst_17 = arith.constant 3.125000e-02 : f32
    %19 = vector.broadcast %cst_17 : f32 to vector<16x1xf32>
    %20 = arith.mulf %16, %19 : vector<16x1xf32>
    %21 = arith.mulf %18, %18 : vector<16x1xf32>
    %22 = arith.subf %20, %21 : vector<16x1xf32>
    %cst_18 = arith.constant 0.000000e+00 : f32
    %23 = vector.broadcast %cst_18 : f32 to vector<16x1xf32>
    %24 = arith.maximumf %22, %23 : vector<16x1xf32>
    %25 = vector.broadcast %18 : vector<16x1xf32> to vector<16x32xf32>
    %26 = arith.subf %5, %25 : vector<16x32xf32>
    %cst_19 = arith.constant 9.99999974E-6 : f32
    %27 = vector.broadcast %cst_19 : f32 to vector<16x1xf32>
    %28 = arith.addf %24, %27 : vector<16x1xf32>
    %29 = math.rsqrt %28 : vector<16x1xf32>
    %30 = vector.broadcast %29 : vector<16x1xf32> to vector<16x32xf32>
    %31 = arith.mulf %26, %30 : vector<16x32xf32>
    %32 = vector.broadcast %8 : vector<1x32xf32> to vector<16x32xf32>
    %33 = arith.mulf %31, %32 : vector<16x32xf32>
    %34 = vector.broadcast %11 : vector<1x32xf32> to vector<16x32xf32>
    %35 = arith.addf %33, %34 : vector<16x32xf32>
    %36 = arith.index_cast %c0_i32 : i32 to index
    %c0_20 = arith.constant 0 : index
    %c0_21 = arith.constant 0 : index
    %37 = vector.load %arg6[%36, %c0_20, %c0_21] : memref<6x32x96xf32, #tpu.memory_space<vmem>>, vector<1x32x96xf32>
    %38 = vector.shape_cast %37 : vector<1x32x96xf32> to vector<32x96xf32>
    %cst_22 = arith.constant dense<0.000000e+00> : vector<16x96xf32>
    %39 = tpu.matmul %35, %38, %cst_22 {dimension_numbers = #tpu.dot_dimension_numbers<[1], [0], [0], [1], [0, 0, 1, 1], [], []>} : vector<16x32xf32>, vector<32x96xf32>, vector<16x96xf32> -> vector<16x96xf32>
    %40 = arith.index_cast %c0_i32 : i32 to index
    %c0_23 = arith.constant 0 : index
    %c0_24 = arith.constant 0 : index
    %41 = vector.load %arg7[%40, %c0_23, %c0_24] : memref<6x1x96xf32, #tpu.memory_space<vmem>>, vector<1x1x96xf32>
    %42 = vector.shape_cast %41 : vector<1x1x96xf32> to vector<1x96xf32>
    %43 = vector.broadcast %42 : vector<1x96xf32> to vector<16x96xf32>
    %44 = arith.addf %39, %43 : vector<16x96xf32>
    %45 = vector.extract_strided_slice %44 {offsets = [0, 0], sizes = [16, 32], strides = [1, 1]} : vector<16x96xf32> to vector<16x32xf32>
    %46 = vector.extract_strided_slice %44 {offsets = [0, 32], sizes = [16, 32], strides = [1, 1]} : vector<16x96xf32> to vector<16x32xf32>
    %47 = vector.extract_strided_slice %44 {offsets = [0, 64], sizes = [16, 32], strides = [1, 1]} : vector<16x96xf32> to vector<16x32xf32>
    %48 = tpu.transpose %46, [1, 0] : vector<16x32xf32> -> vector<32x16xf32>
    %cst_25 = arith.constant dense<0.000000e+00> : vector<32x128xf32>
    %49 = tpu.matmul %48, %1, %cst_25 {dimension_numbers = #tpu.dot_dimension_numbers<[1], [0], [0], [1], [0, 0, 1, 1], [], []>} : vector<32x16xf32>, vector<16x128xf32>, vector<32x128xf32> -> vector<32x128xf32>
    %50 = arith.mulf %49, %3 : vector<32x128xf32>
    %cst_26 = arith.constant dense<0.000000e+00> : vector<16x128xf32>
    %51 = tpu.matmul %45, %50, %cst_26 {dimension_numbers = #tpu.dot_dimension_numbers<[1], [0], [0], [1], [0, 0, 1, 1], [], []>} : vector<16x32xf32>, vector<32x128xf32>, vector<16x128xf32> -> vector<16x128xf32>
    %52 = arith.addf %51, %0 : vector<16x128xf32>
    %cst_27 = arith.constant dense<0xFF800000> : vector<16xf32>
    %53 = vector.multi_reduction <maximumf>, %52, %cst_27 [1] : vector<16x128xf32> to vector<16xf32>
    %54 = vector.shape_cast %53 : vector<16xf32> to vector<16x1xf32>
    %55 = vector.broadcast %54 : vector<16x1xf32> to vector<16x128xf32>
    %56 = arith.subf %52, %55 : vector<16x128xf32>
    %57 = math.exp %56 : vector<16x128xf32>
    %cst_28 = arith.constant dense<0.000000e+00> : vector<128x32xf32>
    %58 = tpu.matmul %2, %47, %cst_28 {dimension_numbers = #tpu.dot_dimension_numbers<[1], [0], [0], [1], [0, 0, 1, 1], [], []>} : vector<128x16xf32>, vector<16x32xf32>, vector<128x32xf32> -> vector<128x32xf32>
    %59 = arith.mulf %58, %4 : vector<128x32xf32>
    %cst_29 = arith.constant dense<0.000000e+00> : vector<16x32xf32>
    %60 = tpu.matmul %57, %59, %cst_29 {dimension_numbers = #tpu.dot_dimension_numbers<[1], [0], [0], [1], [0, 0, 1, 1], [], []>} : vector<16x128xf32>, vector<128x32xf32>, vector<16x32xf32> -> vector<16x32xf32>
    %cst_30 = arith.constant dense<0.000000e+00> : vector<16x32xf32>
    %61 = tpu.matmul %57, %4, %cst_30 {dimension_numbers = #tpu.dot_dimension_numbers<[1], [0], [0], [1], [0, 0, 1, 1], [], []>} : vector<16x128xf32>, vector<128x32xf32>, vector<16x32xf32> -> vector<16x32xf32>
    %62 = tpu.reciprocal %61 {approx = true} : vector<16x32xf32> -> vector<16x32xf32>
    %63 = arith.mulf %60, %62 : vector<16x32xf32>
    %64 = arith.index_cast %c0_i32 : i32 to index
    %c0_31 = arith.constant 0 : index
    %c0_32 = arith.constant 0 : index
    %65 = vector.load %arg8[%64, %c0_31, %c0_32] : memref<6x32x32xf32, #tpu.memory_space<vmem>>, vector<1x32x32xf32>
    %66 = vector.shape_cast %65 : vector<1x32x32xf32> to vector<32x32xf32>
    %cst_33 = arith.constant dense<0.000000e+00> : vector<16x32xf32>
    %67 = tpu.matmul %63, %66, %cst_33 {dimension_numbers = #tpu.dot_dimension_numbers<[1], [0], [0], [1], [0, 0, 1, 1], [], []>} : vector<16x32xf32>, vector<32x32xf32>, vector<16x32xf32> -> vector<16x32xf32>
    %68 = arith.addf %5, %67 : vector<16x32xf32>
    %69 = arith.index_cast %c0_i32 : i32 to index
    %c0_34 = arith.constant 0 : index
    %c0_35 = arith.constant 0 : index
    %70 = vector.load %arg9[%69, %c0_34, %c0_35] : memref<6x1x32xf32, #tpu.memory_space<vmem>>, vector<1x1x32xf32>
    %71 = vector.shape_cast %70 : vector<1x1x32xf32> to vector<1x32xf32>
    %72 = vector.broadcast %71 : vector<1x32xf32> to vector<16x32xf32>
    %73 = arith.addf %68, %72 : vector<16x32xf32>
    %74 = arith.index_cast %c0_i32 : i32 to index
    %c0_36 = arith.constant 0 : index
    %c0_37 = arith.constant 0 : index
    %75 = vector.load %arg16[%74, %c0_36, %c0_37] : memref<6x1x32xf32, #tpu.memory_space<vmem>>, vector<1x1x32xf32>
    %76 = vector.shape_cast %75 : vector<1x1x32xf32> to vector<1x32xf32>
    %77 = arith.index_cast %c0_i32 : i32 to index
    %c0_38 = arith.constant 0 : index
    %c0_39 = arith.constant 0 : index
    %78 = vector.load %arg17[%77, %c0_38, %c0_39] : memref<6x1x32xf32, #tpu.memory_space<vmem>>, vector<1x1x32xf32>
    %79 = vector.shape_cast %78 : vector<1x1x32xf32> to vector<1x32xf32>
    %cst_40 = arith.constant dense<0.000000e+00> : vector<16xf32>
    %80 = vector.multi_reduction <add>, %73, %cst_40 [1] : vector<16x32xf32> to vector<16xf32>
    %81 = vector.shape_cast %80 : vector<16xf32> to vector<16x1xf32>
    %82 = arith.mulf %73, %73 : vector<16x32xf32>
    %cst_41 = arith.constant dense<0.000000e+00> : vector<16xf32>
    %83 = vector.multi_reduction <add>, %82, %cst_41 [1] : vector<16x32xf32> to vector<16xf32>
    %84 = vector.shape_cast %83 : vector<16xf32> to vector<16x1xf32>
    %cst_42 = arith.constant 3.125000e-02 : f32
    %85 = vector.broadcast %cst_42 : f32 to vector<16x1xf32>
    %86 = arith.mulf %81, %85 : vector<16x1xf32>
    %cst_43 = arith.constant 3.125000e-02 : f32
    %87 = vector.broadcast %cst_43 : f32 to vector<16x1xf32>
    %88 = arith.mulf %84, %87 : vector<16x1xf32>
    %89 = arith.mulf %86, %86 : vector<16x1xf32>
    %90 = arith.subf %88, %89 : vector<16x1xf32>
    %cst_44 = arith.constant 0.000000e+00 : f32
    %91 = vector.broadcast %cst_44 : f32 to vector<16x1xf32>
    %92 = arith.maximumf %90, %91 : vector<16x1xf32>
    %93 = vector.broadcast %86 : vector<16x1xf32> to vector<16x32xf32>
    %94 = arith.subf %73, %93 : vector<16x32xf32>
    %cst_45 = arith.constant 9.99999974E-6 : f32
    %95 = vector.broadcast %cst_45 : f32 to vector<16x1xf32>
    %96 = arith.addf %92, %95 : vector<16x1xf32>
    %97 = math.rsqrt %96 : vector<16x1xf32>
    %98 = vector.broadcast %97 : vector<16x1xf32> to vector<16x32xf32>
    %99 = arith.mulf %94, %98 : vector<16x32xf32>
    %100 = vector.broadcast %76 : vector<1x32xf32> to vector<16x32xf32>
    %101 = arith.mulf %99, %100 : vector<16x32xf32>
    %102 = vector.broadcast %79 : vector<1x32xf32> to vector<16x32xf32>
    %103 = arith.addf %101, %102 : vector<16x32xf32>
    %104 = arith.index_cast %c0_i32 : i32 to index
    %c0_46 = arith.constant 0 : index
    %c0_47 = arith.constant 0 : index
    %105 = vector.load %arg10[%104, %c0_46, %c0_47] : memref<6x32x128xf32, #tpu.memory_space<vmem>>, vector<1x32x128xf32>
    %106 = vector.shape_cast %105 : vector<1x32x128xf32> to vector<32x128xf32>
    %cst_48 = arith.constant dense<0.000000e+00> : vector<16x128xf32>
    %107 = tpu.matmul %103, %106, %cst_48 {dimension_numbers = #tpu.dot_dimension_numbers<[1], [0], [0], [1], [0, 0, 1, 1], [], []>} : vector<16x32xf32>, vector<32x128xf32>, vector<16x128xf32> -> vector<16x128xf32>
    %108 = arith.index_cast %c0_i32 : i32 to index
    %c0_49 = arith.constant 0 : index
    %c0_50 = arith.constant 0 : index
    %109 = vector.load %arg11[%108, %c0_49, %c0_50] : memref<6x1x128xf32, #tpu.memory_space<vmem>>, vector<1x1x128xf32>
    %110 = vector.shape_cast %109 : vector<1x1x128xf32> to vector<1x128xf32>
    %111 = vector.broadcast %110 : vector<1x128xf32> to vector<16x128xf32>
    %112 = arith.addf %107, %111 : vector<16x128xf32>
    %cst_51 = arith.constant 0.000000e+00 : f32
    %113 = vector.broadcast %cst_51 : f32 to vector<16x128xf32>
    %114 = arith.maximumf %112, %113 : vector<16x128xf32>
    %115 = arith.index_cast %c0_i32 : i32 to index
    %c0_52 = arith.constant 0 : index
    %c0_53 = arith.constant 0 : index
    %116 = vector.load %arg12[%115, %c0_52, %c0_53] : memref<6x128x32xf32, #tpu.memory_space<vmem>>, vector<1x128x32xf32>
    %117 = vector.shape_cast %116 : vector<1x128x32xf32> to vector<128x32xf32>
    %cst_54 = arith.constant dense<0.000000e+00> : vector<16x32xf32>
    %118 = tpu.matmul %114, %117, %cst_54 {dimension_numbers = #tpu.dot_dimension_numbers<[1], [0], [0], [1], [0, 0, 1, 1], [], []>} : vector<16x128xf32>, vector<128x32xf32>, vector<16x32xf32> -> vector<16x32xf32>
    %119 = arith.addf %73, %118 : vector<16x32xf32>
    %120 = arith.index_cast %c0_i32 : i32 to index
    %c0_55 = arith.constant 0 : index
    %c0_56 = arith.constant 0 : index
    %121 = vector.load %arg13[%120, %c0_55, %c0_56] : memref<6x1x32xf32, #tpu.memory_space<vmem>>, vector<1x1x32xf32>
    %122 = vector.shape_cast %121 : vector<1x1x32xf32> to vector<1x32xf32>
    %123 = vector.broadcast %122 : vector<1x32xf32> to vector<16x32xf32>
    %124 = arith.addf %119, %123 : vector<16x32xf32>
    %c1_i32 = arith.constant 1 : i32
    %125 = arith.index_cast %c1_i32 : i32 to index
    %c0_57 = arith.constant 0 : index
    %c0_58 = arith.constant 0 : index
    %126 = vector.load %arg14[%125, %c0_57, %c0_58] : memref<6x1x32xf32, #tpu.memory_space<vmem>>, vector<1x1x32xf32>
    %127 = vector.shape_cast %126 : vector<1x1x32xf32> to vector<1x32xf32>
    %128 = arith.index_cast %c1_i32 : i32 to index
    %c0_59 = arith.constant 0 : index
    %c0_60 = arith.constant 0 : index
    %129 = vector.load %arg15[%128, %c0_59, %c0_60] : memref<6x1x32xf32, #tpu.memory_space<vmem>>, vector<1x1x32xf32>
    %130 = vector.shape_cast %129 : vector<1x1x32xf32> to vector<1x32xf32>
    %cst_61 = arith.constant dense<0.000000e+00> : vector<16xf32>
    %131 = vector.multi_reduction <add>, %124, %cst_61 [1] : vector<16x32xf32> to vector<16xf32>
    %132 = vector.shape_cast %131 : vector<16xf32> to vector<16x1xf32>
    %133 = arith.mulf %124, %124 : vector<16x32xf32>
    %cst_62 = arith.constant dense<0.000000e+00> : vector<16xf32>
    %134 = vector.multi_reduction <add>, %133, %cst_62 [1] : vector<16x32xf32> to vector<16xf32>
    %135 = vector.shape_cast %134 : vector<16xf32> to vector<16x1xf32>
    %cst_63 = arith.constant 3.125000e-02 : f32
    %136 = vector.broadcast %cst_63 : f32 to vector<16x1xf32>
    %137 = arith.mulf %132, %136 : vector<16x1xf32>
    %cst_64 = arith.constant 3.125000e-02 : f32
    %138 = vector.broadcast %cst_64 : f32 to vector<16x1xf32>
    %139 = arith.mulf %135, %138 : vector<16x1xf32>
    %140 = arith.mulf %137, %137 : vector<16x1xf32>
    %141 = arith.subf %139, %140 : vector<16x1xf32>
    %cst_65 = arith.constant 0.000000e+00 : f32
    %142 = vector.broadcast %cst_65 : f32 to vector<16x1xf32>
    %143 = arith.maximumf %141, %142 : vector<16x1xf32>
    %144 = vector.broadcast %137 : vector<16x1xf32> to vector<16x32xf32>
    %145 = arith.subf %124, %144 : vector<16x32xf32>
    %cst_66 = arith.constant 9.99999974E-6 : f32
    %146 = vector.broadcast %cst_66 : f32 to vector<16x1xf32>
    %147 = arith.addf %143, %146 : vector<16x1xf32>
    %148 = math.rsqrt %147 : vector<16x1xf32>
    %149 = vector.broadcast %148 : vector<16x1xf32> to vector<16x32xf32>
    %150 = arith.mulf %145, %149 : vector<16x32xf32>
    %151 = vector.broadcast %127 : vector<1x32xf32> to vector<16x32xf32>
    %152 = arith.mulf %150, %151 : vector<16x32xf32>
    %153 = vector.broadcast %130 : vector<1x32xf32> to vector<16x32xf32>
    %154 = arith.addf %152, %153 : vector<16x32xf32>
    %155 = arith.index_cast %c1_i32 : i32 to index
    %c0_67 = arith.constant 0 : index
    %c0_68 = arith.constant 0 : index
    %156 = vector.load %arg6[%155, %c0_67, %c0_68] : memref<6x32x96xf32, #tpu.memory_space<vmem>>, vector<1x32x96xf32>
    %157 = vector.shape_cast %156 : vector<1x32x96xf32> to vector<32x96xf32>
    %cst_69 = arith.constant dense<0.000000e+00> : vector<16x96xf32>
    %158 = tpu.matmul %154, %157, %cst_69 {dimension_numbers = #tpu.dot_dimension_numbers<[1], [0], [0], [1], [0, 0, 1, 1], [], []>} : vector<16x32xf32>, vector<32x96xf32>, vector<16x96xf32> -> vector<16x96xf32>
    %159 = arith.index_cast %c1_i32 : i32 to index
    %c0_70 = arith.constant 0 : index
    %c0_71 = arith.constant 0 : index
    %160 = vector.load %arg7[%159, %c0_70, %c0_71] : memref<6x1x96xf32, #tpu.memory_space<vmem>>, vector<1x1x96xf32>
    %161 = vector.shape_cast %160 : vector<1x1x96xf32> to vector<1x96xf32>
    %162 = vector.broadcast %161 : vector<1x96xf32> to vector<16x96xf32>
    %163 = arith.addf %158, %162 : vector<16x96xf32>
    %164 = vector.extract_strided_slice %163 {offsets = [0, 0], sizes = [16, 32], strides = [1, 1]} : vector<16x96xf32> to vector<16x32xf32>
    %165 = vector.extract_strided_slice %163 {offsets = [0, 32], sizes = [16, 32], strides = [1, 1]} : vector<16x96xf32> to vector<16x32xf32>
    %166 = vector.extract_strided_slice %163 {offsets = [0, 64], sizes = [16, 32], strides = [1, 1]} : vector<16x96xf32> to vector<16x32xf32>
    %167 = tpu.transpose %165, [1, 0] : vector<16x32xf32> -> vector<32x16xf32>
    %cst_72 = arith.constant dense<0.000000e+00> : vector<32x128xf32>
    %168 = tpu.matmul %167, %1, %cst_72 {dimension_numbers = #tpu.dot_dimension_numbers<[1], [0], [0], [1], [0, 0, 1, 1], [], []>} : vector<32x16xf32>, vector<16x128xf32>, vector<32x128xf32> -> vector<32x128xf32>
    %169 = arith.mulf %168, %3 : vector<32x128xf32>
    %cst_73 = arith.constant dense<0.000000e+00> : vector<16x128xf32>
    %170 = tpu.matmul %164, %169, %cst_73 {dimension_numbers = #tpu.dot_dimension_numbers<[1], [0], [0], [1], [0, 0, 1, 1], [], []>} : vector<16x32xf32>, vector<32x128xf32>, vector<16x128xf32> -> vector<16x128xf32>
    %171 = arith.addf %170, %0 : vector<16x128xf32>
    %cst_74 = arith.constant dense<0xFF800000> : vector<16xf32>
    %172 = vector.multi_reduction <maximumf>, %171, %cst_74 [1] : vector<16x128xf32> to vector<16xf32>
    %173 = vector.shape_cast %172 : vector<16xf32> to vector<16x1xf32>
    %174 = vector.broadcast %173 : vector<16x1xf32> to vector<16x128xf32>
    %175 = arith.subf %171, %174 : vector<16x128xf32>
    %176 = math.exp %175 : vector<16x128xf32>
    %cst_75 = arith.constant dense<0.000000e+00> : vector<128x32xf32>
    %177 = tpu.matmul %2, %166, %cst_75 {dimension_numbers = #tpu.dot_dimension_numbers<[1], [0], [0], [1], [0, 0, 1, 1], [], []>} : vector<128x16xf32>, vector<16x32xf32>, vector<128x32xf32> -> vector<128x32xf32>
    %178 = arith.mulf %177, %4 : vector<128x32xf32>
    %cst_76 = arith.constant dense<0.000000e+00> : vector<16x32xf32>
    %179 = tpu.matmul %176, %178, %cst_76 {dimension_numbers = #tpu.dot_dimension_numbers<[1], [0], [0], [1], [0, 0, 1, 1], [], []>} : vector<16x128xf32>, vector<128x32xf32>, vector<16x32xf32> -> vector<16x32xf32>
    %cst_77 = arith.constant dense<0.000000e+00> : vector<16x32xf32>
    %180 = tpu.matmul %176, %4, %cst_77 {dimension_numbers = #tpu.dot_dimension_numbers<[1], [0], [0], [1], [0, 0, 1, 1], [], []>} : vector<16x128xf32>, vector<128x32xf32>, vector<16x32xf32> -> vector<16x32xf32>
    %181 = tpu.reciprocal %180 {approx = true} : vector<16x32xf32> -> vector<16x32xf32>
    %182 = arith.mulf %179, %181 : vector<16x32xf32>
    %183 = arith.index_cast %c1_i32 : i32 to index
    %c0_78 = arith.constant 0 : index
    %c0_79 = arith.constant 0 : index
    %184 = vector.load %arg8[%183, %c0_78, %c0_79] : memref<6x32x32xf32, #tpu.memory_space<vmem>>, vector<1x32x32xf32>
    %185 = vector.shape_cast %184 : vector<1x32x32xf32> to vector<32x32xf32>
    %cst_80 = arith.constant dense<0.000000e+00> : vector<16x32xf32>
    %186 = tpu.matmul %182, %185, %cst_80 {dimension_numbers = #tpu.dot_dimension_numbers<[1], [0], [0], [1], [0, 0, 1, 1], [], []>} : vector<16x32xf32>, vector<32x32xf32>, vector<16x32xf32> -> vector<16x32xf32>
    %187 = arith.addf %124, %186 : vector<16x32xf32>
    %188 = arith.index_cast %c1_i32 : i32 to index
    %c0_81 = arith.constant 0 : index
    %c0_82 = arith.constant 0 : index
    %189 = vector.load %arg9[%188, %c0_81, %c0_82] : memref<6x1x32xf32, #tpu.memory_space<vmem>>, vector<1x1x32xf32>
    %190 = vector.shape_cast %189 : vector<1x1x32xf32> to vector<1x32xf32>
    %191 = vector.broadcast %190 : vector<1x32xf32> to vector<16x32xf32>
    %192 = arith.addf %187, %191 : vector<16x32xf32>
    %193 = arith.index_cast %c1_i32 : i32 to index
    %c0_83 = arith.constant 0 : index
    %c0_84 = arith.constant 0 : index
    %194 = vector.load %arg16[%193, %c0_83, %c0_84] : memref<6x1x32xf32, #tpu.memory_space<vmem>>, vector<1x1x32xf32>
    %195 = vector.shape_cast %194 : vector<1x1x32xf32> to vector<1x32xf32>
    %196 = arith.index_cast %c1_i32 : i32 to index
    %c0_85 = arith.constant 0 : index
    %c0_86 = arith.constant 0 : index
    %197 = vector.load %arg17[%196, %c0_85, %c0_86] : memref<6x1x32xf32, #tpu.memory_space<vmem>>, vector<1x1x32xf32>
    %198 = vector.shape_cast %197 : vector<1x1x32xf32> to vector<1x32xf32>
    %cst_87 = arith.constant dense<0.000000e+00> : vector<16xf32>
    %199 = vector.multi_reduction <add>, %192, %cst_87 [1] : vector<16x32xf32> to vector<16xf32>
    %200 = vector.shape_cast %199 : vector<16xf32> to vector<16x1xf32>
    %201 = arith.mulf %192, %192 : vector<16x32xf32>
    %cst_88 = arith.constant dense<0.000000e+00> : vector<16xf32>
    %202 = vector.multi_reduction <add>, %201, %cst_88 [1] : vector<16x32xf32> to vector<16xf32>
    %203 = vector.shape_cast %202 : vector<16xf32> to vector<16x1xf32>
    %cst_89 = arith.constant 3.125000e-02 : f32
    %204 = vector.broadcast %cst_89 : f32 to vector<16x1xf32>
    %205 = arith.mulf %200, %204 : vector<16x1xf32>
    %cst_90 = arith.constant 3.125000e-02 : f32
    %206 = vector.broadcast %cst_90 : f32 to vector<16x1xf32>
    %207 = arith.mulf %203, %206 : vector<16x1xf32>
    %208 = arith.mulf %205, %205 : vector<16x1xf32>
    %209 = arith.subf %207, %208 : vector<16x1xf32>
    %cst_91 = arith.constant 0.000000e+00 : f32
    %210 = vector.broadcast %cst_91 : f32 to vector<16x1xf32>
    %211 = arith.maximumf %209, %210 : vector<16x1xf32>
    %212 = vector.broadcast %205 : vector<16x1xf32> to vector<16x32xf32>
    %213 = arith.subf %192, %212 : vector<16x32xf32>
    %cst_92 = arith.constant 9.99999974E-6 : f32
    %214 = vector.broadcast %cst_92 : f32 to vector<16x1xf32>
    %215 = arith.addf %211, %214 : vector<16x1xf32>
    %216 = math.rsqrt %215 : vector<16x1xf32>
    %217 = vector.broadcast %216 : vector<16x1xf32> to vector<16x32xf32>
    %218 = arith.mulf %213, %217 : vector<16x32xf32>
    %219 = vector.broadcast %195 : vector<1x32xf32> to vector<16x32xf32>
    %220 = arith.mulf %218, %219 : vector<16x32xf32>
    %221 = vector.broadcast %198 : vector<1x32xf32> to vector<16x32xf32>
    %222 = arith.addf %220, %221 : vector<16x32xf32>
    %223 = arith.index_cast %c1_i32 : i32 to index
    %c0_93 = arith.constant 0 : index
    %c0_94 = arith.constant 0 : index
    %224 = vector.load %arg10[%223, %c0_93, %c0_94] : memref<6x32x128xf32, #tpu.memory_space<vmem>>, vector<1x32x128xf32>
    %225 = vector.shape_cast %224 : vector<1x32x128xf32> to vector<32x128xf32>
    %cst_95 = arith.constant dense<0.000000e+00> : vector<16x128xf32>
    %226 = tpu.matmul %222, %225, %cst_95 {dimension_numbers = #tpu.dot_dimension_numbers<[1], [0], [0], [1], [0, 0, 1, 1], [], []>} : vector<16x32xf32>, vector<32x128xf32>, vector<16x128xf32> -> vector<16x128xf32>
    %227 = arith.index_cast %c1_i32 : i32 to index
    %c0_96 = arith.constant 0 : index
    %c0_97 = arith.constant 0 : index
    %228 = vector.load %arg11[%227, %c0_96, %c0_97] : memref<6x1x128xf32, #tpu.memory_space<vmem>>, vector<1x1x128xf32>
    %229 = vector.shape_cast %228 : vector<1x1x128xf32> to vector<1x128xf32>
    %230 = vector.broadcast %229 : vector<1x128xf32> to vector<16x128xf32>
    %231 = arith.addf %226, %230 : vector<16x128xf32>
    %cst_98 = arith.constant 0.000000e+00 : f32
    %232 = vector.broadcast %cst_98 : f32 to vector<16x128xf32>
    %233 = arith.maximumf %231, %232 : vector<16x128xf32>
    %234 = arith.index_cast %c1_i32 : i32 to index
    %c0_99 = arith.constant 0 : index
    %c0_100 = arith.constant 0 : index
    %235 = vector.load %arg12[%234, %c0_99, %c0_100] : memref<6x128x32xf32, #tpu.memory_space<vmem>>, vector<1x128x32xf32>
    %236 = vector.shape_cast %235 : vector<1x128x32xf32> to vector<128x32xf32>
    %cst_101 = arith.constant dense<0.000000e+00> : vector<16x32xf32>
    %237 = tpu.matmul %233, %236, %cst_101 {dimension_numbers = #tpu.dot_dimension_numbers<[1], [0], [0], [1], [0, 0, 1, 1], [], []>} : vector<16x128xf32>, vector<128x32xf32>, vector<16x32xf32> -> vector<16x32xf32>
    %238 = arith.addf %192, %237 : vector<16x32xf32>
    %239 = arith.index_cast %c1_i32 : i32 to index
    %c0_102 = arith.constant 0 : index
    %c0_103 = arith.constant 0 : index
    %240 = vector.load %arg13[%239, %c0_102, %c0_103] : memref<6x1x32xf32, #tpu.memory_space<vmem>>, vector<1x1x32xf32>
    %241 = vector.shape_cast %240 : vector<1x1x32xf32> to vector<1x32xf32>
    %242 = vector.broadcast %241 : vector<1x32xf32> to vector<16x32xf32>
    %243 = arith.addf %238, %242 : vector<16x32xf32>
    %c2_i32 = arith.constant 2 : i32
    %244 = arith.index_cast %c2_i32 : i32 to index
    %c0_104 = arith.constant 0 : index
    %c0_105 = arith.constant 0 : index
    %245 = vector.load %arg14[%244, %c0_104, %c0_105] : memref<6x1x32xf32, #tpu.memory_space<vmem>>, vector<1x1x32xf32>
    %246 = vector.shape_cast %245 : vector<1x1x32xf32> to vector<1x32xf32>
    %247 = arith.index_cast %c2_i32 : i32 to index
    %c0_106 = arith.constant 0 : index
    %c0_107 = arith.constant 0 : index
    %248 = vector.load %arg15[%247, %c0_106, %c0_107] : memref<6x1x32xf32, #tpu.memory_space<vmem>>, vector<1x1x32xf32>
    %249 = vector.shape_cast %248 : vector<1x1x32xf32> to vector<1x32xf32>
    %cst_108 = arith.constant dense<0.000000e+00> : vector<16xf32>
    %250 = vector.multi_reduction <add>, %243, %cst_108 [1] : vector<16x32xf32> to vector<16xf32>
    %251 = vector.shape_cast %250 : vector<16xf32> to vector<16x1xf32>
    %252 = arith.mulf %243, %243 : vector<16x32xf32>
    %cst_109 = arith.constant dense<0.000000e+00> : vector<16xf32>
    %253 = vector.multi_reduction <add>, %252, %cst_109 [1] : vector<16x32xf32> to vector<16xf32>
    %254 = vector.shape_cast %253 : vector<16xf32> to vector<16x1xf32>
    %cst_110 = arith.constant 3.125000e-02 : f32
    %255 = vector.broadcast %cst_110 : f32 to vector<16x1xf32>
    %256 = arith.mulf %251, %255 : vector<16x1xf32>
    %cst_111 = arith.constant 3.125000e-02 : f32
    %257 = vector.broadcast %cst_111 : f32 to vector<16x1xf32>
    %258 = arith.mulf %254, %257 : vector<16x1xf32>
    %259 = arith.mulf %256, %256 : vector<16x1xf32>
    %260 = arith.subf %258, %259 : vector<16x1xf32>
    %cst_112 = arith.constant 0.000000e+00 : f32
    %261 = vector.broadcast %cst_112 : f32 to vector<16x1xf32>
    %262 = arith.maximumf %260, %261 : vector<16x1xf32>
    %263 = vector.broadcast %256 : vector<16x1xf32> to vector<16x32xf32>
    %264 = arith.subf %243, %263 : vector<16x32xf32>
    %cst_113 = arith.constant 9.99999974E-6 : f32
    %265 = vector.broadcast %cst_113 : f32 to vector<16x1xf32>
    %266 = arith.addf %262, %265 : vector<16x1xf32>
    %267 = math.rsqrt %266 : vector<16x1xf32>
    %268 = vector.broadcast %267 : vector<16x1xf32> to vector<16x32xf32>
    %269 = arith.mulf %264, %268 : vector<16x32xf32>
    %270 = vector.broadcast %246 : vector<1x32xf32> to vector<16x32xf32>
    %271 = arith.mulf %269, %270 : vector<16x32xf32>
    %272 = vector.broadcast %249 : vector<1x32xf32> to vector<16x32xf32>
    %273 = arith.addf %271, %272 : vector<16x32xf32>
    %274 = arith.index_cast %c2_i32 : i32 to index
    %c0_114 = arith.constant 0 : index
    %c0_115 = arith.constant 0 : index
    %275 = vector.load %arg6[%274, %c0_114, %c0_115] : memref<6x32x96xf32, #tpu.memory_space<vmem>>, vector<1x32x96xf32>
    %276 = vector.shape_cast %275 : vector<1x32x96xf32> to vector<32x96xf32>
    %cst_116 = arith.constant dense<0.000000e+00> : vector<16x96xf32>
    %277 = tpu.matmul %273, %276, %cst_116 {dimension_numbers = #tpu.dot_dimension_numbers<[1], [0], [0], [1], [0, 0, 1, 1], [], []>} : vector<16x32xf32>, vector<32x96xf32>, vector<16x96xf32> -> vector<16x96xf32>
    %278 = arith.index_cast %c2_i32 : i32 to index
    %c0_117 = arith.constant 0 : index
    %c0_118 = arith.constant 0 : index
    %279 = vector.load %arg7[%278, %c0_117, %c0_118] : memref<6x1x96xf32, #tpu.memory_space<vmem>>, vector<1x1x96xf32>
    %280 = vector.shape_cast %279 : vector<1x1x96xf32> to vector<1x96xf32>
    %281 = vector.broadcast %280 : vector<1x96xf32> to vector<16x96xf32>
    %282 = arith.addf %277, %281 : vector<16x96xf32>
    %283 = vector.extract_strided_slice %282 {offsets = [0, 0], sizes = [16, 32], strides = [1, 1]} : vector<16x96xf32> to vector<16x32xf32>
    %284 = vector.extract_strided_slice %282 {offsets = [0, 32], sizes = [16, 32], strides = [1, 1]} : vector<16x96xf32> to vector<16x32xf32>
    %285 = vector.extract_strided_slice %282 {offsets = [0, 64], sizes = [16, 32], strides = [1, 1]} : vector<16x96xf32> to vector<16x32xf32>
    %286 = tpu.transpose %284, [1, 0] : vector<16x32xf32> -> vector<32x16xf32>
    %cst_119 = arith.constant dense<0.000000e+00> : vector<32x128xf32>
    %287 = tpu.matmul %286, %1, %cst_119 {dimension_numbers = #tpu.dot_dimension_numbers<[1], [0], [0], [1], [0, 0, 1, 1], [], []>} : vector<32x16xf32>, vector<16x128xf32>, vector<32x128xf32> -> vector<32x128xf32>
    %288 = arith.mulf %287, %3 : vector<32x128xf32>
    %cst_120 = arith.constant dense<0.000000e+00> : vector<16x128xf32>
    %289 = tpu.matmul %283, %288, %cst_120 {dimension_numbers = #tpu.dot_dimension_numbers<[1], [0], [0], [1], [0, 0, 1, 1], [], []>} : vector<16x32xf32>, vector<32x128xf32>, vector<16x128xf32> -> vector<16x128xf32>
    %290 = arith.addf %289, %0 : vector<16x128xf32>
    %cst_121 = arith.constant dense<0xFF800000> : vector<16xf32>
    %291 = vector.multi_reduction <maximumf>, %290, %cst_121 [1] : vector<16x128xf32> to vector<16xf32>
    %292 = vector.shape_cast %291 : vector<16xf32> to vector<16x1xf32>
    %293 = vector.broadcast %292 : vector<16x1xf32> to vector<16x128xf32>
    %294 = arith.subf %290, %293 : vector<16x128xf32>
    %295 = math.exp %294 : vector<16x128xf32>
    %cst_122 = arith.constant dense<0.000000e+00> : vector<128x32xf32>
    %296 = tpu.matmul %2, %285, %cst_122 {dimension_numbers = #tpu.dot_dimension_numbers<[1], [0], [0], [1], [0, 0, 1, 1], [], []>} : vector<128x16xf32>, vector<16x32xf32>, vector<128x32xf32> -> vector<128x32xf32>
    %297 = arith.mulf %296, %4 : vector<128x32xf32>
    %cst_123 = arith.constant dense<0.000000e+00> : vector<16x32xf32>
    %298 = tpu.matmul %295, %297, %cst_123 {dimension_numbers = #tpu.dot_dimension_numbers<[1], [0], [0], [1], [0, 0, 1, 1], [], []>} : vector<16x128xf32>, vector<128x32xf32>, vector<16x32xf32> -> vector<16x32xf32>
    %cst_124 = arith.constant dense<0.000000e+00> : vector<16x32xf32>
    %299 = tpu.matmul %295, %4, %cst_124 {dimension_numbers = #tpu.dot_dimension_numbers<[1], [0], [0], [1], [0, 0, 1, 1], [], []>} : vector<16x128xf32>, vector<128x32xf32>, vector<16x32xf32> -> vector<16x32xf32>
    %300 = tpu.reciprocal %299 {approx = true} : vector<16x32xf32> -> vector<16x32xf32>
    %301 = arith.mulf %298, %300 : vector<16x32xf32>
    %302 = arith.index_cast %c2_i32 : i32 to index
    %c0_125 = arith.constant 0 : index
    %c0_126 = arith.constant 0 : index
    %303 = vector.load %arg8[%302, %c0_125, %c0_126] : memref<6x32x32xf32, #tpu.memory_space<vmem>>, vector<1x32x32xf32>
    %304 = vector.shape_cast %303 : vector<1x32x32xf32> to vector<32x32xf32>
    %cst_127 = arith.constant dense<0.000000e+00> : vector<16x32xf32>
    %305 = tpu.matmul %301, %304, %cst_127 {dimension_numbers = #tpu.dot_dimension_numbers<[1], [0], [0], [1], [0, 0, 1, 1], [], []>} : vector<16x32xf32>, vector<32x32xf32>, vector<16x32xf32> -> vector<16x32xf32>
    %306 = arith.addf %243, %305 : vector<16x32xf32>
    %307 = arith.index_cast %c2_i32 : i32 to index
    %c0_128 = arith.constant 0 : index
    %c0_129 = arith.constant 0 : index
    %308 = vector.load %arg9[%307, %c0_128, %c0_129] : memref<6x1x32xf32, #tpu.memory_space<vmem>>, vector<1x1x32xf32>
    %309 = vector.shape_cast %308 : vector<1x1x32xf32> to vector<1x32xf32>
    %310 = vector.broadcast %309 : vector<1x32xf32> to vector<16x32xf32>
    %311 = arith.addf %306, %310 : vector<16x32xf32>
    %312 = arith.index_cast %c2_i32 : i32 to index
    %c0_130 = arith.constant 0 : index
    %c0_131 = arith.constant 0 : index
    %313 = vector.load %arg16[%312, %c0_130, %c0_131] : memref<6x1x32xf32, #tpu.memory_space<vmem>>, vector<1x1x32xf32>
    %314 = vector.shape_cast %313 : vector<1x1x32xf32> to vector<1x32xf32>
    %315 = arith.index_cast %c2_i32 : i32 to index
    %c0_132 = arith.constant 0 : index
    %c0_133 = arith.constant 0 : index
    %316 = vector.load %arg17[%315, %c0_132, %c0_133] : memref<6x1x32xf32, #tpu.memory_space<vmem>>, vector<1x1x32xf32>
    %317 = vector.shape_cast %316 : vector<1x1x32xf32> to vector<1x32xf32>
    %cst_134 = arith.constant dense<0.000000e+00> : vector<16xf32>
    %318 = vector.multi_reduction <add>, %311, %cst_134 [1] : vector<16x32xf32> to vector<16xf32>
    %319 = vector.shape_cast %318 : vector<16xf32> to vector<16x1xf32>
    %320 = arith.mulf %311, %311 : vector<16x32xf32>
    %cst_135 = arith.constant dense<0.000000e+00> : vector<16xf32>
    %321 = vector.multi_reduction <add>, %320, %cst_135 [1] : vector<16x32xf32> to vector<16xf32>
    %322 = vector.shape_cast %321 : vector<16xf32> to vector<16x1xf32>
    %cst_136 = arith.constant 3.125000e-02 : f32
    %323 = vector.broadcast %cst_136 : f32 to vector<16x1xf32>
    %324 = arith.mulf %319, %323 : vector<16x1xf32>
    %cst_137 = arith.constant 3.125000e-02 : f32
    %325 = vector.broadcast %cst_137 : f32 to vector<16x1xf32>
    %326 = arith.mulf %322, %325 : vector<16x1xf32>
    %327 = arith.mulf %324, %324 : vector<16x1xf32>
    %328 = arith.subf %326, %327 : vector<16x1xf32>
    %cst_138 = arith.constant 0.000000e+00 : f32
    %329 = vector.broadcast %cst_138 : f32 to vector<16x1xf32>
    %330 = arith.maximumf %328, %329 : vector<16x1xf32>
    %331 = vector.broadcast %324 : vector<16x1xf32> to vector<16x32xf32>
    %332 = arith.subf %311, %331 : vector<16x32xf32>
    %cst_139 = arith.constant 9.99999974E-6 : f32
    %333 = vector.broadcast %cst_139 : f32 to vector<16x1xf32>
    %334 = arith.addf %330, %333 : vector<16x1xf32>
    %335 = math.rsqrt %334 : vector<16x1xf32>
    %336 = vector.broadcast %335 : vector<16x1xf32> to vector<16x32xf32>
    %337 = arith.mulf %332, %336 : vector<16x32xf32>
    %338 = vector.broadcast %314 : vector<1x32xf32> to vector<16x32xf32>
    %339 = arith.mulf %337, %338 : vector<16x32xf32>
    %340 = vector.broadcast %317 : vector<1x32xf32> to vector<16x32xf32>
    %341 = arith.addf %339, %340 : vector<16x32xf32>
    %342 = arith.index_cast %c2_i32 : i32 to index
    %c0_140 = arith.constant 0 : index
    %c0_141 = arith.constant 0 : index
    %343 = vector.load %arg10[%342, %c0_140, %c0_141] : memref<6x32x128xf32, #tpu.memory_space<vmem>>, vector<1x32x128xf32>
    %344 = vector.shape_cast %343 : vector<1x32x128xf32> to vector<32x128xf32>
    %cst_142 = arith.constant dense<0.000000e+00> : vector<16x128xf32>
    %345 = tpu.matmul %341, %344, %cst_142 {dimension_numbers = #tpu.dot_dimension_numbers<[1], [0], [0], [1], [0, 0, 1, 1], [], []>} : vector<16x32xf32>, vector<32x128xf32>, vector<16x128xf32> -> vector<16x128xf32>
    %346 = arith.index_cast %c2_i32 : i32 to index
    %c0_143 = arith.constant 0 : index
    %c0_144 = arith.constant 0 : index
    %347 = vector.load %arg11[%346, %c0_143, %c0_144] : memref<6x1x128xf32, #tpu.memory_space<vmem>>, vector<1x1x128xf32>
    %348 = vector.shape_cast %347 : vector<1x1x128xf32> to vector<1x128xf32>
    %349 = vector.broadcast %348 : vector<1x128xf32> to vector<16x128xf32>
    %350 = arith.addf %345, %349 : vector<16x128xf32>
    %cst_145 = arith.constant 0.000000e+00 : f32
    %351 = vector.broadcast %cst_145 : f32 to vector<16x128xf32>
    %352 = arith.maximumf %350, %351 : vector<16x128xf32>
    %353 = arith.index_cast %c2_i32 : i32 to index
    %c0_146 = arith.constant 0 : index
    %c0_147 = arith.constant 0 : index
    %354 = vector.load %arg12[%353, %c0_146, %c0_147] : memref<6x128x32xf32, #tpu.memory_space<vmem>>, vector<1x128x32xf32>
    %355 = vector.shape_cast %354 : vector<1x128x32xf32> to vector<128x32xf32>
    %cst_148 = arith.constant dense<0.000000e+00> : vector<16x32xf32>
    %356 = tpu.matmul %352, %355, %cst_148 {dimension_numbers = #tpu.dot_dimension_numbers<[1], [0], [0], [1], [0, 0, 1, 1], [], []>} : vector<16x128xf32>, vector<128x32xf32>, vector<16x32xf32> -> vector<16x32xf32>
    %357 = arith.addf %311, %356 : vector<16x32xf32>
    %358 = arith.index_cast %c2_i32 : i32 to index
    %c0_149 = arith.constant 0 : index
    %c0_150 = arith.constant 0 : index
    %359 = vector.load %arg13[%358, %c0_149, %c0_150] : memref<6x1x32xf32, #tpu.memory_space<vmem>>, vector<1x1x32xf32>
    %360 = vector.shape_cast %359 : vector<1x1x32xf32> to vector<1x32xf32>
    %361 = vector.broadcast %360 : vector<1x32xf32> to vector<16x32xf32>
    %362 = arith.addf %357, %361 : vector<16x32xf32>
    %c3_i32 = arith.constant 3 : i32
    %363 = arith.index_cast %c3_i32 : i32 to index
    %c0_151 = arith.constant 0 : index
    %c0_152 = arith.constant 0 : index
    %364 = vector.load %arg14[%363, %c0_151, %c0_152] : memref<6x1x32xf32, #tpu.memory_space<vmem>>, vector<1x1x32xf32>
    %365 = vector.shape_cast %364 : vector<1x1x32xf32> to vector<1x32xf32>
    %366 = arith.index_cast %c3_i32 : i32 to index
    %c0_153 = arith.constant 0 : index
    %c0_154 = arith.constant 0 : index
    %367 = vector.load %arg15[%366, %c0_153, %c0_154] : memref<6x1x32xf32, #tpu.memory_space<vmem>>, vector<1x1x32xf32>
    %368 = vector.shape_cast %367 : vector<1x1x32xf32> to vector<1x32xf32>
    %cst_155 = arith.constant dense<0.000000e+00> : vector<16xf32>
    %369 = vector.multi_reduction <add>, %362, %cst_155 [1] : vector<16x32xf32> to vector<16xf32>
    %370 = vector.shape_cast %369 : vector<16xf32> to vector<16x1xf32>
    %371 = arith.mulf %362, %362 : vector<16x32xf32>
    %cst_156 = arith.constant dense<0.000000e+00> : vector<16xf32>
    %372 = vector.multi_reduction <add>, %371, %cst_156 [1] : vector<16x32xf32> to vector<16xf32>
    %373 = vector.shape_cast %372 : vector<16xf32> to vector<16x1xf32>
    %cst_157 = arith.constant 3.125000e-02 : f32
    %374 = vector.broadcast %cst_157 : f32 to vector<16x1xf32>
    %375 = arith.mulf %370, %374 : vector<16x1xf32>
    %cst_158 = arith.constant 3.125000e-02 : f32
    %376 = vector.broadcast %cst_158 : f32 to vector<16x1xf32>
    %377 = arith.mulf %373, %376 : vector<16x1xf32>
    %378 = arith.mulf %375, %375 : vector<16x1xf32>
    %379 = arith.subf %377, %378 : vector<16x1xf32>
    %cst_159 = arith.constant 0.000000e+00 : f32
    %380 = vector.broadcast %cst_159 : f32 to vector<16x1xf32>
    %381 = arith.maximumf %379, %380 : vector<16x1xf32>
    %382 = vector.broadcast %375 : vector<16x1xf32> to vector<16x32xf32>
    %383 = arith.subf %362, %382 : vector<16x32xf32>
    %cst_160 = arith.constant 9.99999974E-6 : f32
    %384 = vector.broadcast %cst_160 : f32 to vector<16x1xf32>
    %385 = arith.addf %381, %384 : vector<16x1xf32>
    %386 = math.rsqrt %385 : vector<16x1xf32>
    %387 = vector.broadcast %386 : vector<16x1xf32> to vector<16x32xf32>
    %388 = arith.mulf %383, %387 : vector<16x32xf32>
    %389 = vector.broadcast %365 : vector<1x32xf32> to vector<16x32xf32>
    %390 = arith.mulf %388, %389 : vector<16x32xf32>
    %391 = vector.broadcast %368 : vector<1x32xf32> to vector<16x32xf32>
    %392 = arith.addf %390, %391 : vector<16x32xf32>
    %393 = arith.index_cast %c3_i32 : i32 to index
    %c0_161 = arith.constant 0 : index
    %c0_162 = arith.constant 0 : index
    %394 = vector.load %arg6[%393, %c0_161, %c0_162] : memref<6x32x96xf32, #tpu.memory_space<vmem>>, vector<1x32x96xf32>
    %395 = vector.shape_cast %394 : vector<1x32x96xf32> to vector<32x96xf32>
    %cst_163 = arith.constant dense<0.000000e+00> : vector<16x96xf32>
    %396 = tpu.matmul %392, %395, %cst_163 {dimension_numbers = #tpu.dot_dimension_numbers<[1], [0], [0], [1], [0, 0, 1, 1], [], []>} : vector<16x32xf32>, vector<32x96xf32>, vector<16x96xf32> -> vector<16x96xf32>
    %397 = arith.index_cast %c3_i32 : i32 to index
    %c0_164 = arith.constant 0 : index
    %c0_165 = arith.constant 0 : index
    %398 = vector.load %arg7[%397, %c0_164, %c0_165] : memref<6x1x96xf32, #tpu.memory_space<vmem>>, vector<1x1x96xf32>
    %399 = vector.shape_cast %398 : vector<1x1x96xf32> to vector<1x96xf32>
    %400 = vector.broadcast %399 : vector<1x96xf32> to vector<16x96xf32>
    %401 = arith.addf %396, %400 : vector<16x96xf32>
    %402 = vector.extract_strided_slice %401 {offsets = [0, 0], sizes = [16, 32], strides = [1, 1]} : vector<16x96xf32> to vector<16x32xf32>
    %403 = vector.extract_strided_slice %401 {offsets = [0, 32], sizes = [16, 32], strides = [1, 1]} : vector<16x96xf32> to vector<16x32xf32>
    %404 = vector.extract_strided_slice %401 {offsets = [0, 64], sizes = [16, 32], strides = [1, 1]} : vector<16x96xf32> to vector<16x32xf32>
    %405 = tpu.transpose %403, [1, 0] : vector<16x32xf32> -> vector<32x16xf32>
    %cst_166 = arith.constant dense<0.000000e+00> : vector<32x128xf32>
    %406 = tpu.matmul %405, %1, %cst_166 {dimension_numbers = #tpu.dot_dimension_numbers<[1], [0], [0], [1], [0, 0, 1, 1], [], []>} : vector<32x16xf32>, vector<16x128xf32>, vector<32x128xf32> -> vector<32x128xf32>
    %407 = arith.mulf %406, %3 : vector<32x128xf32>
    %cst_167 = arith.constant dense<0.000000e+00> : vector<16x128xf32>
    %408 = tpu.matmul %402, %407, %cst_167 {dimension_numbers = #tpu.dot_dimension_numbers<[1], [0], [0], [1], [0, 0, 1, 1], [], []>} : vector<16x32xf32>, vector<32x128xf32>, vector<16x128xf32> -> vector<16x128xf32>
    %409 = arith.addf %408, %0 : vector<16x128xf32>
    %cst_168 = arith.constant dense<0xFF800000> : vector<16xf32>
    %410 = vector.multi_reduction <maximumf>, %409, %cst_168 [1] : vector<16x128xf32> to vector<16xf32>
    %411 = vector.shape_cast %410 : vector<16xf32> to vector<16x1xf32>
    %412 = vector.broadcast %411 : vector<16x1xf32> to vector<16x128xf32>
    %413 = arith.subf %409, %412 : vector<16x128xf32>
    %414 = math.exp %413 : vector<16x128xf32>
    %cst_169 = arith.constant dense<0.000000e+00> : vector<128x32xf32>
    %415 = tpu.matmul %2, %404, %cst_169 {dimension_numbers = #tpu.dot_dimension_numbers<[1], [0], [0], [1], [0, 0, 1, 1], [], []>} : vector<128x16xf32>, vector<16x32xf32>, vector<128x32xf32> -> vector<128x32xf32>
    %416 = arith.mulf %415, %4 : vector<128x32xf32>
    %cst_170 = arith.constant dense<0.000000e+00> : vector<16x32xf32>
    %417 = tpu.matmul %414, %416, %cst_170 {dimension_numbers = #tpu.dot_dimension_numbers<[1], [0], [0], [1], [0, 0, 1, 1], [], []>} : vector<16x128xf32>, vector<128x32xf32>, vector<16x32xf32> -> vector<16x32xf32>
    %cst_171 = arith.constant dense<0.000000e+00> : vector<16x32xf32>
    %418 = tpu.matmul %414, %4, %cst_171 {dimension_numbers = #tpu.dot_dimension_numbers<[1], [0], [0], [1], [0, 0, 1, 1], [], []>} : vector<16x128xf32>, vector<128x32xf32>, vector<16x32xf32> -> vector<16x32xf32>
    %419 = tpu.reciprocal %418 {approx = true} : vector<16x32xf32> -> vector<16x32xf32>
    %420 = arith.mulf %417, %419 : vector<16x32xf32>
    %421 = arith.index_cast %c3_i32 : i32 to index
    %c0_172 = arith.constant 0 : index
    %c0_173 = arith.constant 0 : index
    %422 = vector.load %arg8[%421, %c0_172, %c0_173] : memref<6x32x32xf32, #tpu.memory_space<vmem>>, vector<1x32x32xf32>
    %423 = vector.shape_cast %422 : vector<1x32x32xf32> to vector<32x32xf32>
    %cst_174 = arith.constant dense<0.000000e+00> : vector<16x32xf32>
    %424 = tpu.matmul %420, %423, %cst_174 {dimension_numbers = #tpu.dot_dimension_numbers<[1], [0], [0], [1], [0, 0, 1, 1], [], []>} : vector<16x32xf32>, vector<32x32xf32>, vector<16x32xf32> -> vector<16x32xf32>
    %425 = arith.addf %362, %424 : vector<16x32xf32>
    %426 = arith.index_cast %c3_i32 : i32 to index
    %c0_175 = arith.constant 0 : index
    %c0_176 = arith.constant 0 : index
    %427 = vector.load %arg9[%426, %c0_175, %c0_176] : memref<6x1x32xf32, #tpu.memory_space<vmem>>, vector<1x1x32xf32>
    %428 = vector.shape_cast %427 : vector<1x1x32xf32> to vector<1x32xf32>
    %429 = vector.broadcast %428 : vector<1x32xf32> to vector<16x32xf32>
    %430 = arith.addf %425, %429 : vector<16x32xf32>
    %431 = arith.index_cast %c3_i32 : i32 to index
    %c0_177 = arith.constant 0 : index
    %c0_178 = arith.constant 0 : index
    %432 = vector.load %arg16[%431, %c0_177, %c0_178] : memref<6x1x32xf32, #tpu.memory_space<vmem>>, vector<1x1x32xf32>
    %433 = vector.shape_cast %432 : vector<1x1x32xf32> to vector<1x32xf32>
    %434 = arith.index_cast %c3_i32 : i32 to index
    %c0_179 = arith.constant 0 : index
    %c0_180 = arith.constant 0 : index
    %435 = vector.load %arg17[%434, %c0_179, %c0_180] : memref<6x1x32xf32, #tpu.memory_space<vmem>>, vector<1x1x32xf32>
    %436 = vector.shape_cast %435 : vector<1x1x32xf32> to vector<1x32xf32>
    %cst_181 = arith.constant dense<0.000000e+00> : vector<16xf32>
    %437 = vector.multi_reduction <add>, %430, %cst_181 [1] : vector<16x32xf32> to vector<16xf32>
    %438 = vector.shape_cast %437 : vector<16xf32> to vector<16x1xf32>
    %439 = arith.mulf %430, %430 : vector<16x32xf32>
    %cst_182 = arith.constant dense<0.000000e+00> : vector<16xf32>
    %440 = vector.multi_reduction <add>, %439, %cst_182 [1] : vector<16x32xf32> to vector<16xf32>
    %441 = vector.shape_cast %440 : vector<16xf32> to vector<16x1xf32>
    %cst_183 = arith.constant 3.125000e-02 : f32
    %442 = vector.broadcast %cst_183 : f32 to vector<16x1xf32>
    %443 = arith.mulf %438, %442 : vector<16x1xf32>
    %cst_184 = arith.constant 3.125000e-02 : f32
    %444 = vector.broadcast %cst_184 : f32 to vector<16x1xf32>
    %445 = arith.mulf %441, %444 : vector<16x1xf32>
    %446 = arith.mulf %443, %443 : vector<16x1xf32>
    %447 = arith.subf %445, %446 : vector<16x1xf32>
    %cst_185 = arith.constant 0.000000e+00 : f32
    %448 = vector.broadcast %cst_185 : f32 to vector<16x1xf32>
    %449 = arith.maximumf %447, %448 : vector<16x1xf32>
    %450 = vector.broadcast %443 : vector<16x1xf32> to vector<16x32xf32>
    %451 = arith.subf %430, %450 : vector<16x32xf32>
    %cst_186 = arith.constant 9.99999974E-6 : f32
    %452 = vector.broadcast %cst_186 : f32 to vector<16x1xf32>
    %453 = arith.addf %449, %452 : vector<16x1xf32>
    %454 = math.rsqrt %453 : vector<16x1xf32>
    %455 = vector.broadcast %454 : vector<16x1xf32> to vector<16x32xf32>
    %456 = arith.mulf %451, %455 : vector<16x32xf32>
    %457 = vector.broadcast %433 : vector<1x32xf32> to vector<16x32xf32>
    %458 = arith.mulf %456, %457 : vector<16x32xf32>
    %459 = vector.broadcast %436 : vector<1x32xf32> to vector<16x32xf32>
    %460 = arith.addf %458, %459 : vector<16x32xf32>
    %461 = arith.index_cast %c3_i32 : i32 to index
    %c0_187 = arith.constant 0 : index
    %c0_188 = arith.constant 0 : index
    %462 = vector.load %arg10[%461, %c0_187, %c0_188] : memref<6x32x128xf32, #tpu.memory_space<vmem>>, vector<1x32x128xf32>
    %463 = vector.shape_cast %462 : vector<1x32x128xf32> to vector<32x128xf32>
    %cst_189 = arith.constant dense<0.000000e+00> : vector<16x128xf32>
    %464 = tpu.matmul %460, %463, %cst_189 {dimension_numbers = #tpu.dot_dimension_numbers<[1], [0], [0], [1], [0, 0, 1, 1], [], []>} : vector<16x32xf32>, vector<32x128xf32>, vector<16x128xf32> -> vector<16x128xf32>
    %465 = arith.index_cast %c3_i32 : i32 to index
    %c0_190 = arith.constant 0 : index
    %c0_191 = arith.constant 0 : index
    %466 = vector.load %arg11[%465, %c0_190, %c0_191] : memref<6x1x128xf32, #tpu.memory_space<vmem>>, vector<1x1x128xf32>
    %467 = vector.shape_cast %466 : vector<1x1x128xf32> to vector<1x128xf32>
    %468 = vector.broadcast %467 : vector<1x128xf32> to vector<16x128xf32>
    %469 = arith.addf %464, %468 : vector<16x128xf32>
    %cst_192 = arith.constant 0.000000e+00 : f32
    %470 = vector.broadcast %cst_192 : f32 to vector<16x128xf32>
    %471 = arith.maximumf %469, %470 : vector<16x128xf32>
    %472 = arith.index_cast %c3_i32 : i32 to index
    %c0_193 = arith.constant 0 : index
    %c0_194 = arith.constant 0 : index
    %473 = vector.load %arg12[%472, %c0_193, %c0_194] : memref<6x128x32xf32, #tpu.memory_space<vmem>>, vector<1x128x32xf32>
    %474 = vector.shape_cast %473 : vector<1x128x32xf32> to vector<128x32xf32>
    %cst_195 = arith.constant dense<0.000000e+00> : vector<16x32xf32>
    %475 = tpu.matmul %471, %474, %cst_195 {dimension_numbers = #tpu.dot_dimension_numbers<[1], [0], [0], [1], [0, 0, 1, 1], [], []>} : vector<16x128xf32>, vector<128x32xf32>, vector<16x32xf32> -> vector<16x32xf32>
    %476 = arith.addf %430, %475 : vector<16x32xf32>
    %477 = arith.index_cast %c3_i32 : i32 to index
    %c0_196 = arith.constant 0 : index
    %c0_197 = arith.constant 0 : index
    %478 = vector.load %arg13[%477, %c0_196, %c0_197] : memref<6x1x32xf32, #tpu.memory_space<vmem>>, vector<1x1x32xf32>
    %479 = vector.shape_cast %478 : vector<1x1x32xf32> to vector<1x32xf32>
    %480 = vector.broadcast %479 : vector<1x32xf32> to vector<16x32xf32>
    %481 = arith.addf %476, %480 : vector<16x32xf32>
    %c4_i32 = arith.constant 4 : i32
    %482 = arith.index_cast %c4_i32 : i32 to index
    %c0_198 = arith.constant 0 : index
    %c0_199 = arith.constant 0 : index
    %483 = vector.load %arg14[%482, %c0_198, %c0_199] : memref<6x1x32xf32, #tpu.memory_space<vmem>>, vector<1x1x32xf32>
    %484 = vector.shape_cast %483 : vector<1x1x32xf32> to vector<1x32xf32>
    %485 = arith.index_cast %c4_i32 : i32 to index
    %c0_200 = arith.constant 0 : index
    %c0_201 = arith.constant 0 : index
    %486 = vector.load %arg15[%485, %c0_200, %c0_201] : memref<6x1x32xf32, #tpu.memory_space<vmem>>, vector<1x1x32xf32>
    %487 = vector.shape_cast %486 : vector<1x1x32xf32> to vector<1x32xf32>
    %cst_202 = arith.constant dense<0.000000e+00> : vector<16xf32>
    %488 = vector.multi_reduction <add>, %481, %cst_202 [1] : vector<16x32xf32> to vector<16xf32>
    %489 = vector.shape_cast %488 : vector<16xf32> to vector<16x1xf32>
    %490 = arith.mulf %481, %481 : vector<16x32xf32>
    %cst_203 = arith.constant dense<0.000000e+00> : vector<16xf32>
    %491 = vector.multi_reduction <add>, %490, %cst_203 [1] : vector<16x32xf32> to vector<16xf32>
    %492 = vector.shape_cast %491 : vector<16xf32> to vector<16x1xf32>
    %cst_204 = arith.constant 3.125000e-02 : f32
    %493 = vector.broadcast %cst_204 : f32 to vector<16x1xf32>
    %494 = arith.mulf %489, %493 : vector<16x1xf32>
    %cst_205 = arith.constant 3.125000e-02 : f32
    %495 = vector.broadcast %cst_205 : f32 to vector<16x1xf32>
    %496 = arith.mulf %492, %495 : vector<16x1xf32>
    %497 = arith.mulf %494, %494 : vector<16x1xf32>
    %498 = arith.subf %496, %497 : vector<16x1xf32>
    %cst_206 = arith.constant 0.000000e+00 : f32
    %499 = vector.broadcast %cst_206 : f32 to vector<16x1xf32>
    %500 = arith.maximumf %498, %499 : vector<16x1xf32>
    %501 = vector.broadcast %494 : vector<16x1xf32> to vector<16x32xf32>
    %502 = arith.subf %481, %501 : vector<16x32xf32>
    %cst_207 = arith.constant 9.99999974E-6 : f32
    %503 = vector.broadcast %cst_207 : f32 to vector<16x1xf32>
    %504 = arith.addf %500, %503 : vector<16x1xf32>
    %505 = math.rsqrt %504 : vector<16x1xf32>
    %506 = vector.broadcast %505 : vector<16x1xf32> to vector<16x32xf32>
    %507 = arith.mulf %502, %506 : vector<16x32xf32>
    %508 = vector.broadcast %484 : vector<1x32xf32> to vector<16x32xf32>
    %509 = arith.mulf %507, %508 : vector<16x32xf32>
    %510 = vector.broadcast %487 : vector<1x32xf32> to vector<16x32xf32>
    %511 = arith.addf %509, %510 : vector<16x32xf32>
    %512 = arith.index_cast %c4_i32 : i32 to index
    %c0_208 = arith.constant 0 : index
    %c0_209 = arith.constant 0 : index
    %513 = vector.load %arg6[%512, %c0_208, %c0_209] : memref<6x32x96xf32, #tpu.memory_space<vmem>>, vector<1x32x96xf32>
    %514 = vector.shape_cast %513 : vector<1x32x96xf32> to vector<32x96xf32>
    %cst_210 = arith.constant dense<0.000000e+00> : vector<16x96xf32>
    %515 = tpu.matmul %511, %514, %cst_210 {dimension_numbers = #tpu.dot_dimension_numbers<[1], [0], [0], [1], [0, 0, 1, 1], [], []>} : vector<16x32xf32>, vector<32x96xf32>, vector<16x96xf32> -> vector<16x96xf32>
    %516 = arith.index_cast %c4_i32 : i32 to index
    %c0_211 = arith.constant 0 : index
    %c0_212 = arith.constant 0 : index
    %517 = vector.load %arg7[%516, %c0_211, %c0_212] : memref<6x1x96xf32, #tpu.memory_space<vmem>>, vector<1x1x96xf32>
    %518 = vector.shape_cast %517 : vector<1x1x96xf32> to vector<1x96xf32>
    %519 = vector.broadcast %518 : vector<1x96xf32> to vector<16x96xf32>
    %520 = arith.addf %515, %519 : vector<16x96xf32>
    %521 = vector.extract_strided_slice %520 {offsets = [0, 0], sizes = [16, 32], strides = [1, 1]} : vector<16x96xf32> to vector<16x32xf32>
    %522 = vector.extract_strided_slice %520 {offsets = [0, 32], sizes = [16, 32], strides = [1, 1]} : vector<16x96xf32> to vector<16x32xf32>
    %523 = vector.extract_strided_slice %520 {offsets = [0, 64], sizes = [16, 32], strides = [1, 1]} : vector<16x96xf32> to vector<16x32xf32>
    %524 = tpu.transpose %522, [1, 0] : vector<16x32xf32> -> vector<32x16xf32>
    %cst_213 = arith.constant dense<0.000000e+00> : vector<32x128xf32>
    %525 = tpu.matmul %524, %1, %cst_213 {dimension_numbers = #tpu.dot_dimension_numbers<[1], [0], [0], [1], [0, 0, 1, 1], [], []>} : vector<32x16xf32>, vector<16x128xf32>, vector<32x128xf32> -> vector<32x128xf32>
    %526 = arith.mulf %525, %3 : vector<32x128xf32>
    %cst_214 = arith.constant dense<0.000000e+00> : vector<16x128xf32>
    %527 = tpu.matmul %521, %526, %cst_214 {dimension_numbers = #tpu.dot_dimension_numbers<[1], [0], [0], [1], [0, 0, 1, 1], [], []>} : vector<16x32xf32>, vector<32x128xf32>, vector<16x128xf32> -> vector<16x128xf32>
    %528 = arith.addf %527, %0 : vector<16x128xf32>
    %cst_215 = arith.constant dense<0xFF800000> : vector<16xf32>
    %529 = vector.multi_reduction <maximumf>, %528, %cst_215 [1] : vector<16x128xf32> to vector<16xf32>
    %530 = vector.shape_cast %529 : vector<16xf32> to vector<16x1xf32>
    %531 = vector.broadcast %530 : vector<16x1xf32> to vector<16x128xf32>
    %532 = arith.subf %528, %531 : vector<16x128xf32>
    %533 = math.exp %532 : vector<16x128xf32>
    %cst_216 = arith.constant dense<0.000000e+00> : vector<128x32xf32>
    %534 = tpu.matmul %2, %523, %cst_216 {dimension_numbers = #tpu.dot_dimension_numbers<[1], [0], [0], [1], [0, 0, 1, 1], [], []>} : vector<128x16xf32>, vector<16x32xf32>, vector<128x32xf32> -> vector<128x32xf32>
    %535 = arith.mulf %534, %4 : vector<128x32xf32>
    %cst_217 = arith.constant dense<0.000000e+00> : vector<16x32xf32>
    %536 = tpu.matmul %533, %535, %cst_217 {dimension_numbers = #tpu.dot_dimension_numbers<[1], [0], [0], [1], [0, 0, 1, 1], [], []>} : vector<16x128xf32>, vector<128x32xf32>, vector<16x32xf32> -> vector<16x32xf32>
    %cst_218 = arith.constant dense<0.000000e+00> : vector<16x32xf32>
    %537 = tpu.matmul %533, %4, %cst_218 {dimension_numbers = #tpu.dot_dimension_numbers<[1], [0], [0], [1], [0, 0, 1, 1], [], []>} : vector<16x128xf32>, vector<128x32xf32>, vector<16x32xf32> -> vector<16x32xf32>
    %538 = tpu.reciprocal %537 {approx = true} : vector<16x32xf32> -> vector<16x32xf32>
    %539 = arith.mulf %536, %538 : vector<16x32xf32>
    %540 = arith.index_cast %c4_i32 : i32 to index
    %c0_219 = arith.constant 0 : index
    %c0_220 = arith.constant 0 : index
    %541 = vector.load %arg8[%540, %c0_219, %c0_220] : memref<6x32x32xf32, #tpu.memory_space<vmem>>, vector<1x32x32xf32>
    %542 = vector.shape_cast %541 : vector<1x32x32xf32> to vector<32x32xf32>
    %cst_221 = arith.constant dense<0.000000e+00> : vector<16x32xf32>
    %543 = tpu.matmul %539, %542, %cst_221 {dimension_numbers = #tpu.dot_dimension_numbers<[1], [0], [0], [1], [0, 0, 1, 1], [], []>} : vector<16x32xf32>, vector<32x32xf32>, vector<16x32xf32> -> vector<16x32xf32>
    %544 = arith.addf %481, %543 : vector<16x32xf32>
    %545 = arith.index_cast %c4_i32 : i32 to index
    %c0_222 = arith.constant 0 : index
    %c0_223 = arith.constant 0 : index
    %546 = vector.load %arg9[%545, %c0_222, %c0_223] : memref<6x1x32xf32, #tpu.memory_space<vmem>>, vector<1x1x32xf32>
    %547 = vector.shape_cast %546 : vector<1x1x32xf32> to vector<1x32xf32>
    %548 = vector.broadcast %547 : vector<1x32xf32> to vector<16x32xf32>
    %549 = arith.addf %544, %548 : vector<16x32xf32>
    %550 = arith.index_cast %c4_i32 : i32 to index
    %c0_224 = arith.constant 0 : index
    %c0_225 = arith.constant 0 : index
    %551 = vector.load %arg16[%550, %c0_224, %c0_225] : memref<6x1x32xf32, #tpu.memory_space<vmem>>, vector<1x1x32xf32>
    %552 = vector.shape_cast %551 : vector<1x1x32xf32> to vector<1x32xf32>
    %553 = arith.index_cast %c4_i32 : i32 to index
    %c0_226 = arith.constant 0 : index
    %c0_227 = arith.constant 0 : index
    %554 = vector.load %arg17[%553, %c0_226, %c0_227] : memref<6x1x32xf32, #tpu.memory_space<vmem>>, vector<1x1x32xf32>
    %555 = vector.shape_cast %554 : vector<1x1x32xf32> to vector<1x32xf32>
    %cst_228 = arith.constant dense<0.000000e+00> : vector<16xf32>
    %556 = vector.multi_reduction <add>, %549, %cst_228 [1] : vector<16x32xf32> to vector<16xf32>
    %557 = vector.shape_cast %556 : vector<16xf32> to vector<16x1xf32>
    %558 = arith.mulf %549, %549 : vector<16x32xf32>
    %cst_229 = arith.constant dense<0.000000e+00> : vector<16xf32>
    %559 = vector.multi_reduction <add>, %558, %cst_229 [1] : vector<16x32xf32> to vector<16xf32>
    %560 = vector.shape_cast %559 : vector<16xf32> to vector<16x1xf32>
    %cst_230 = arith.constant 3.125000e-02 : f32
    %561 = vector.broadcast %cst_230 : f32 to vector<16x1xf32>
    %562 = arith.mulf %557, %561 : vector<16x1xf32>
    %cst_231 = arith.constant 3.125000e-02 : f32
    %563 = vector.broadcast %cst_231 : f32 to vector<16x1xf32>
    %564 = arith.mulf %560, %563 : vector<16x1xf32>
    %565 = arith.mulf %562, %562 : vector<16x1xf32>
    %566 = arith.subf %564, %565 : vector<16x1xf32>
    %cst_232 = arith.constant 0.000000e+00 : f32
    %567 = vector.broadcast %cst_232 : f32 to vector<16x1xf32>
    %568 = arith.maximumf %566, %567 : vector<16x1xf32>
    %569 = vector.broadcast %562 : vector<16x1xf32> to vector<16x32xf32>
    %570 = arith.subf %549, %569 : vector<16x32xf32>
    %cst_233 = arith.constant 9.99999974E-6 : f32
    %571 = vector.broadcast %cst_233 : f32 to vector<16x1xf32>
    %572 = arith.addf %568, %571 : vector<16x1xf32>
    %573 = math.rsqrt %572 : vector<16x1xf32>
    %574 = vector.broadcast %573 : vector<16x1xf32> to vector<16x32xf32>
    %575 = arith.mulf %570, %574 : vector<16x32xf32>
    %576 = vector.broadcast %552 : vector<1x32xf32> to vector<16x32xf32>
    %577 = arith.mulf %575, %576 : vector<16x32xf32>
    %578 = vector.broadcast %555 : vector<1x32xf32> to vector<16x32xf32>
    %579 = arith.addf %577, %578 : vector<16x32xf32>
    %580 = arith.index_cast %c4_i32 : i32 to index
    %c0_234 = arith.constant 0 : index
    %c0_235 = arith.constant 0 : index
    %581 = vector.load %arg10[%580, %c0_234, %c0_235] : memref<6x32x128xf32, #tpu.memory_space<vmem>>, vector<1x32x128xf32>
    %582 = vector.shape_cast %581 : vector<1x32x128xf32> to vector<32x128xf32>
    %cst_236 = arith.constant dense<0.000000e+00> : vector<16x128xf32>
    %583 = tpu.matmul %579, %582, %cst_236 {dimension_numbers = #tpu.dot_dimension_numbers<[1], [0], [0], [1], [0, 0, 1, 1], [], []>} : vector<16x32xf32>, vector<32x128xf32>, vector<16x128xf32> -> vector<16x128xf32>
    %584 = arith.index_cast %c4_i32 : i32 to index
    %c0_237 = arith.constant 0 : index
    %c0_238 = arith.constant 0 : index
    %585 = vector.load %arg11[%584, %c0_237, %c0_238] : memref<6x1x128xf32, #tpu.memory_space<vmem>>, vector<1x1x128xf32>
    %586 = vector.shape_cast %585 : vector<1x1x128xf32> to vector<1x128xf32>
    %587 = vector.broadcast %586 : vector<1x128xf32> to vector<16x128xf32>
    %588 = arith.addf %583, %587 : vector<16x128xf32>
    %cst_239 = arith.constant 0.000000e+00 : f32
    %589 = vector.broadcast %cst_239 : f32 to vector<16x128xf32>
    %590 = arith.maximumf %588, %589 : vector<16x128xf32>
    %591 = arith.index_cast %c4_i32 : i32 to index
    %c0_240 = arith.constant 0 : index
    %c0_241 = arith.constant 0 : index
    %592 = vector.load %arg12[%591, %c0_240, %c0_241] : memref<6x128x32xf32, #tpu.memory_space<vmem>>, vector<1x128x32xf32>
    %593 = vector.shape_cast %592 : vector<1x128x32xf32> to vector<128x32xf32>
    %cst_242 = arith.constant dense<0.000000e+00> : vector<16x32xf32>
    %594 = tpu.matmul %590, %593, %cst_242 {dimension_numbers = #tpu.dot_dimension_numbers<[1], [0], [0], [1], [0, 0, 1, 1], [], []>} : vector<16x128xf32>, vector<128x32xf32>, vector<16x32xf32> -> vector<16x32xf32>
    %595 = arith.addf %549, %594 : vector<16x32xf32>
    %596 = arith.index_cast %c4_i32 : i32 to index
    %c0_243 = arith.constant 0 : index
    %c0_244 = arith.constant 0 : index
    %597 = vector.load %arg13[%596, %c0_243, %c0_244] : memref<6x1x32xf32, #tpu.memory_space<vmem>>, vector<1x1x32xf32>
    %598 = vector.shape_cast %597 : vector<1x1x32xf32> to vector<1x32xf32>
    %599 = vector.broadcast %598 : vector<1x32xf32> to vector<16x32xf32>
    %600 = arith.addf %595, %599 : vector<16x32xf32>
    %c5_i32 = arith.constant 5 : i32
    %601 = arith.index_cast %c5_i32 : i32 to index
    %c0_245 = arith.constant 0 : index
    %c0_246 = arith.constant 0 : index
    %602 = vector.load %arg14[%601, %c0_245, %c0_246] : memref<6x1x32xf32, #tpu.memory_space<vmem>>, vector<1x1x32xf32>
    %603 = vector.shape_cast %602 : vector<1x1x32xf32> to vector<1x32xf32>
    %604 = arith.index_cast %c5_i32 : i32 to index
    %c0_247 = arith.constant 0 : index
    %c0_248 = arith.constant 0 : index
    %605 = vector.load %arg15[%604, %c0_247, %c0_248] : memref<6x1x32xf32, #tpu.memory_space<vmem>>, vector<1x1x32xf32>
    %606 = vector.shape_cast %605 : vector<1x1x32xf32> to vector<1x32xf32>
    %cst_249 = arith.constant dense<0.000000e+00> : vector<16xf32>
    %607 = vector.multi_reduction <add>, %600, %cst_249 [1] : vector<16x32xf32> to vector<16xf32>
    %608 = vector.shape_cast %607 : vector<16xf32> to vector<16x1xf32>
    %609 = arith.mulf %600, %600 : vector<16x32xf32>
    %cst_250 = arith.constant dense<0.000000e+00> : vector<16xf32>
    %610 = vector.multi_reduction <add>, %609, %cst_250 [1] : vector<16x32xf32> to vector<16xf32>
    %611 = vector.shape_cast %610 : vector<16xf32> to vector<16x1xf32>
    %cst_251 = arith.constant 3.125000e-02 : f32
    %612 = vector.broadcast %cst_251 : f32 to vector<16x1xf32>
    %613 = arith.mulf %608, %612 : vector<16x1xf32>
    %cst_252 = arith.constant 3.125000e-02 : f32
    %614 = vector.broadcast %cst_252 : f32 to vector<16x1xf32>
    %615 = arith.mulf %611, %614 : vector<16x1xf32>
    %616 = arith.mulf %613, %613 : vector<16x1xf32>
    %617 = arith.subf %615, %616 : vector<16x1xf32>
    %cst_253 = arith.constant 0.000000e+00 : f32
    %618 = vector.broadcast %cst_253 : f32 to vector<16x1xf32>
    %619 = arith.maximumf %617, %618 : vector<16x1xf32>
    %620 = vector.broadcast %613 : vector<16x1xf32> to vector<16x32xf32>
    %621 = arith.subf %600, %620 : vector<16x32xf32>
    %cst_254 = arith.constant 9.99999974E-6 : f32
    %622 = vector.broadcast %cst_254 : f32 to vector<16x1xf32>
    %623 = arith.addf %619, %622 : vector<16x1xf32>
    %624 = math.rsqrt %623 : vector<16x1xf32>
    %625 = vector.broadcast %624 : vector<16x1xf32> to vector<16x32xf32>
    %626 = arith.mulf %621, %625 : vector<16x32xf32>
    %627 = vector.broadcast %603 : vector<1x32xf32> to vector<16x32xf32>
    %628 = arith.mulf %626, %627 : vector<16x32xf32>
    %629 = vector.broadcast %606 : vector<1x32xf32> to vector<16x32xf32>
    %630 = arith.addf %628, %629 : vector<16x32xf32>
    %631 = arith.index_cast %c5_i32 : i32 to index
    %c0_255 = arith.constant 0 : index
    %c0_256 = arith.constant 0 : index
    %632 = vector.load %arg6[%631, %c0_255, %c0_256] : memref<6x32x96xf32, #tpu.memory_space<vmem>>, vector<1x32x96xf32>
    %633 = vector.shape_cast %632 : vector<1x32x96xf32> to vector<32x96xf32>
    %cst_257 = arith.constant dense<0.000000e+00> : vector<16x96xf32>
    %634 = tpu.matmul %630, %633, %cst_257 {dimension_numbers = #tpu.dot_dimension_numbers<[1], [0], [0], [1], [0, 0, 1, 1], [], []>} : vector<16x32xf32>, vector<32x96xf32>, vector<16x96xf32> -> vector<16x96xf32>
    %635 = arith.index_cast %c5_i32 : i32 to index
    %c0_258 = arith.constant 0 : index
    %c0_259 = arith.constant 0 : index
    %636 = vector.load %arg7[%635, %c0_258, %c0_259] : memref<6x1x96xf32, #tpu.memory_space<vmem>>, vector<1x1x96xf32>
    %637 = vector.shape_cast %636 : vector<1x1x96xf32> to vector<1x96xf32>
    %638 = vector.broadcast %637 : vector<1x96xf32> to vector<16x96xf32>
    %639 = arith.addf %634, %638 : vector<16x96xf32>
    %640 = vector.extract_strided_slice %639 {offsets = [0, 0], sizes = [16, 32], strides = [1, 1]} : vector<16x96xf32> to vector<16x32xf32>
    %641 = vector.extract_strided_slice %639 {offsets = [0, 32], sizes = [16, 32], strides = [1, 1]} : vector<16x96xf32> to vector<16x32xf32>
    %642 = vector.extract_strided_slice %639 {offsets = [0, 64], sizes = [16, 32], strides = [1, 1]} : vector<16x96xf32> to vector<16x32xf32>
    %643 = tpu.transpose %641, [1, 0] : vector<16x32xf32> -> vector<32x16xf32>
    %cst_260 = arith.constant dense<0.000000e+00> : vector<32x128xf32>
    %644 = tpu.matmul %643, %1, %cst_260 {dimension_numbers = #tpu.dot_dimension_numbers<[1], [0], [0], [1], [0, 0, 1, 1], [], []>} : vector<32x16xf32>, vector<16x128xf32>, vector<32x128xf32> -> vector<32x128xf32>
    %645 = arith.mulf %644, %3 : vector<32x128xf32>
    %cst_261 = arith.constant dense<0.000000e+00> : vector<16x128xf32>
    %646 = tpu.matmul %640, %645, %cst_261 {dimension_numbers = #tpu.dot_dimension_numbers<[1], [0], [0], [1], [0, 0, 1, 1], [], []>} : vector<16x32xf32>, vector<32x128xf32>, vector<16x128xf32> -> vector<16x128xf32>
    %647 = arith.addf %646, %0 : vector<16x128xf32>
    %cst_262 = arith.constant dense<0xFF800000> : vector<16xf32>
    %648 = vector.multi_reduction <maximumf>, %647, %cst_262 [1] : vector<16x128xf32> to vector<16xf32>
    %649 = vector.shape_cast %648 : vector<16xf32> to vector<16x1xf32>
    %650 = vector.broadcast %649 : vector<16x1xf32> to vector<16x128xf32>
    %651 = arith.subf %647, %650 : vector<16x128xf32>
    %652 = math.exp %651 : vector<16x128xf32>
    %cst_263 = arith.constant dense<0.000000e+00> : vector<128x32xf32>
    %653 = tpu.matmul %2, %642, %cst_263 {dimension_numbers = #tpu.dot_dimension_numbers<[1], [0], [0], [1], [0, 0, 1, 1], [], []>} : vector<128x16xf32>, vector<16x32xf32>, vector<128x32xf32> -> vector<128x32xf32>
    %654 = arith.mulf %653, %4 : vector<128x32xf32>
    %cst_264 = arith.constant dense<0.000000e+00> : vector<16x32xf32>
    %655 = tpu.matmul %652, %654, %cst_264 {dimension_numbers = #tpu.dot_dimension_numbers<[1], [0], [0], [1], [0, 0, 1, 1], [], []>} : vector<16x128xf32>, vector<128x32xf32>, vector<16x32xf32> -> vector<16x32xf32>
    %cst_265 = arith.constant dense<0.000000e+00> : vector<16x32xf32>
    %656 = tpu.matmul %652, %4, %cst_265 {dimension_numbers = #tpu.dot_dimension_numbers<[1], [0], [0], [1], [0, 0, 1, 1], [], []>} : vector<16x128xf32>, vector<128x32xf32>, vector<16x32xf32> -> vector<16x32xf32>
    %657 = tpu.reciprocal %656 {approx = true} : vector<16x32xf32> -> vector<16x32xf32>
    %658 = arith.mulf %655, %657 : vector<16x32xf32>
    %659 = arith.index_cast %c5_i32 : i32 to index
    %c0_266 = arith.constant 0 : index
    %c0_267 = arith.constant 0 : index
    %660 = vector.load %arg8[%659, %c0_266, %c0_267] : memref<6x32x32xf32, #tpu.memory_space<vmem>>, vector<1x32x32xf32>
    %661 = vector.shape_cast %660 : vector<1x32x32xf32> to vector<32x32xf32>
    %cst_268 = arith.constant dense<0.000000e+00> : vector<16x32xf32>
    %662 = tpu.matmul %658, %661, %cst_268 {dimension_numbers = #tpu.dot_dimension_numbers<[1], [0], [0], [1], [0, 0, 1, 1], [], []>} : vector<16x32xf32>, vector<32x32xf32>, vector<16x32xf32> -> vector<16x32xf32>
    %663 = arith.addf %600, %662 : vector<16x32xf32>
    %664 = arith.index_cast %c5_i32 : i32 to index
    %c0_269 = arith.constant 0 : index
    %c0_270 = arith.constant 0 : index
    %665 = vector.load %arg9[%664, %c0_269, %c0_270] : memref<6x1x32xf32, #tpu.memory_space<vmem>>, vector<1x1x32xf32>
    %666 = vector.shape_cast %665 : vector<1x1x32xf32> to vector<1x32xf32>
    %667 = vector.broadcast %666 : vector<1x32xf32> to vector<16x32xf32>
    %668 = arith.addf %663, %667 : vector<16x32xf32>
    %669 = arith.index_cast %c5_i32 : i32 to index
    %c0_271 = arith.constant 0 : index
    %c0_272 = arith.constant 0 : index
    %670 = vector.load %arg16[%669, %c0_271, %c0_272] : memref<6x1x32xf32, #tpu.memory_space<vmem>>, vector<1x1x32xf32>
    %671 = vector.shape_cast %670 : vector<1x1x32xf32> to vector<1x32xf32>
    %672 = arith.index_cast %c5_i32 : i32 to index
    %c0_273 = arith.constant 0 : index
    %c0_274 = arith.constant 0 : index
    %673 = vector.load %arg17[%672, %c0_273, %c0_274] : memref<6x1x32xf32, #tpu.memory_space<vmem>>, vector<1x1x32xf32>
    %674 = vector.shape_cast %673 : vector<1x1x32xf32> to vector<1x32xf32>
    %cst_275 = arith.constant dense<0.000000e+00> : vector<16xf32>
    %675 = vector.multi_reduction <add>, %668, %cst_275 [1] : vector<16x32xf32> to vector<16xf32>
    %676 = vector.shape_cast %675 : vector<16xf32> to vector<16x1xf32>
    %677 = arith.mulf %668, %668 : vector<16x32xf32>
    %cst_276 = arith.constant dense<0.000000e+00> : vector<16xf32>
    %678 = vector.multi_reduction <add>, %677, %cst_276 [1] : vector<16x32xf32> to vector<16xf32>
    %679 = vector.shape_cast %678 : vector<16xf32> to vector<16x1xf32>
    %cst_277 = arith.constant 3.125000e-02 : f32
    %680 = vector.broadcast %cst_277 : f32 to vector<16x1xf32>
    %681 = arith.mulf %676, %680 : vector<16x1xf32>
    %cst_278 = arith.constant 3.125000e-02 : f32
    %682 = vector.broadcast %cst_278 : f32 to vector<16x1xf32>
    %683 = arith.mulf %679, %682 : vector<16x1xf32>
    %684 = arith.mulf %681, %681 : vector<16x1xf32>
    %685 = arith.subf %683, %684 : vector<16x1xf32>
    %cst_279 = arith.constant 0.000000e+00 : f32
    %686 = vector.broadcast %cst_279 : f32 to vector<16x1xf32>
    %687 = arith.maximumf %685, %686 : vector<16x1xf32>
    %688 = vector.broadcast %681 : vector<16x1xf32> to vector<16x32xf32>
    %689 = arith.subf %668, %688 : vector<16x32xf32>
    %cst_280 = arith.constant 9.99999974E-6 : f32
    %690 = vector.broadcast %cst_280 : f32 to vector<16x1xf32>
    %691 = arith.addf %687, %690 : vector<16x1xf32>
    %692 = math.rsqrt %691 : vector<16x1xf32>
    %693 = vector.broadcast %692 : vector<16x1xf32> to vector<16x32xf32>
    %694 = arith.mulf %689, %693 : vector<16x32xf32>
    %695 = vector.broadcast %671 : vector<1x32xf32> to vector<16x32xf32>
    %696 = arith.mulf %694, %695 : vector<16x32xf32>
    %697 = vector.broadcast %674 : vector<1x32xf32> to vector<16x32xf32>
    %698 = arith.addf %696, %697 : vector<16x32xf32>
    %699 = arith.index_cast %c5_i32 : i32 to index
    %c0_281 = arith.constant 0 : index
    %c0_282 = arith.constant 0 : index
    %700 = vector.load %arg10[%699, %c0_281, %c0_282] : memref<6x32x128xf32, #tpu.memory_space<vmem>>, vector<1x32x128xf32>
    %701 = vector.shape_cast %700 : vector<1x32x128xf32> to vector<32x128xf32>
    %cst_283 = arith.constant dense<0.000000e+00> : vector<16x128xf32>
    %702 = tpu.matmul %698, %701, %cst_283 {dimension_numbers = #tpu.dot_dimension_numbers<[1], [0], [0], [1], [0, 0, 1, 1], [], []>} : vector<16x32xf32>, vector<32x128xf32>, vector<16x128xf32> -> vector<16x128xf32>
    %703 = arith.index_cast %c5_i32 : i32 to index
    %c0_284 = arith.constant 0 : index
    %c0_285 = arith.constant 0 : index
    %704 = vector.load %arg11[%703, %c0_284, %c0_285] : memref<6x1x128xf32, #tpu.memory_space<vmem>>, vector<1x1x128xf32>
    %705 = vector.shape_cast %704 : vector<1x1x128xf32> to vector<1x128xf32>
    %706 = vector.broadcast %705 : vector<1x128xf32> to vector<16x128xf32>
    %707 = arith.addf %702, %706 : vector<16x128xf32>
    %cst_286 = arith.constant 0.000000e+00 : f32
    %708 = vector.broadcast %cst_286 : f32 to vector<16x128xf32>
    %709 = arith.maximumf %707, %708 : vector<16x128xf32>
    %710 = arith.index_cast %c5_i32 : i32 to index
    %c0_287 = arith.constant 0 : index
    %c0_288 = arith.constant 0 : index
    %711 = vector.load %arg12[%710, %c0_287, %c0_288] : memref<6x128x32xf32, #tpu.memory_space<vmem>>, vector<1x128x32xf32>
    %712 = vector.shape_cast %711 : vector<1x128x32xf32> to vector<128x32xf32>
    %cst_289 = arith.constant dense<0.000000e+00> : vector<16x32xf32>
    %713 = tpu.matmul %709, %712, %cst_289 {dimension_numbers = #tpu.dot_dimension_numbers<[1], [0], [0], [1], [0, 0, 1, 1], [], []>} : vector<16x128xf32>, vector<128x32xf32>, vector<16x32xf32> -> vector<16x32xf32>
    %714 = arith.addf %668, %713 : vector<16x32xf32>
    %715 = arith.index_cast %c5_i32 : i32 to index
    %c0_290 = arith.constant 0 : index
    %c0_291 = arith.constant 0 : index
    %716 = vector.load %arg13[%715, %c0_290, %c0_291] : memref<6x1x32xf32, #tpu.memory_space<vmem>>, vector<1x1x32xf32>
    %717 = vector.shape_cast %716 : vector<1x1x32xf32> to vector<1x32xf32>
    %718 = vector.broadcast %717 : vector<1x32xf32> to vector<16x32xf32>
    %719 = arith.addf %714, %718 : vector<16x32xf32>
    %c6_i32 = arith.constant 6 : i32
    %c0_292 = arith.constant 0 : index
    %c0_293 = arith.constant 0 : index
    %720 = vector.load %arg18[%c0_292, %c0_293] : memref<16x32xf32, #tpu.memory_space<vmem>>, vector<16x32xf32>
    tpu.vector_store %arg18[%c0_292, %c0_293], %719 {strides = array<i32>} : memref<16x32xf32, #tpu.memory_space<vmem>>, vector<16x32xf32>,
    return
  }
}

</mosaic_0001>

<bundles_post_ra>
// kernel: tile.14
= control target key start
LH: loop header
LB: loop body
LE: loop exit
PB: predicated region body
PF: predicated region fallthrough
CT: control target
= control target key end

     0   :  { %vm4_vm0 = vcmask 1047556   ;;  %s209_s14 = smov 96   ;;  %s210_s19 = smov 112   ;;  %vm6_vm1 = vcmask 130048   ;;  %vm25_vm2 = vcmask 1048448   ;;  %vm46_vm3 = vcmask 917248   ;;  %s388_s0 = inlined_call_operand.vmem [shape: f32[16,8,16], index: 0, kind: input, shape index: {}]   ;;  %s389_s1 = inlined_call_operand.vmem [shape: f32[16,128], index: 1, kind: output, shape index: {}]  }
   0x1   :  { %v172_v0 = vld [vmem:[%s388_s0 + $0x6] ss:$8 sm:$0xf]   ;;  %v167_v3 = vld [vmem:[%s388_s0 + $0x7] ss:$8 sm:$0xf]  }
   0x2   :  { %v173_v1 = vld [vmem:[%s388_s0 + $0x6] ss:$8 sm:$0xf0]   ;;  %v168_v4 = vld [vmem:[%s388_s0 + $0x7] ss:$8 sm:$0xf0]  }
   0x3   :  { %v43_v2 = vsel %vm4_vm0, %v173_v1, %v172_v0  ;;  %v22_v5 = vsel %vm4_vm0, %v168_v4, %v167_v3  ;;  %v174_v6 = vld [vmem:[%s388_s0 + $0x46] ss:$8 sm:$0xf]   ;;  %v169_v9 = vld [vmem:[%s388_s0 + $0x47] ss:$8 sm:$0xf]  }
   0x4   :  { %44 = vrot.lane.b32.xlu1 %v43_v2, %s209_s14  ;;  %v175_v7 = vld [vmem:[%s388_s0 + $0x46] ss:$8 sm:$0xf0]   ;;  %23 = vrot.lane.b32.xlu0 %v22_v5, %s210_s19  ;;  %v170_v10 = vld [vmem:[%s388_s0 + $0x47] ss:$8 sm:$0xf0]  }
   0x5   :  { %v53_v8 = vsel %vm4_vm0, %v175_v7, %v174_v6  ;;  %v32_v11 = vsel %vm4_vm0, %v170_v10, %v169_v9  ;;  %v179_v12 = vld [vmem:[%s388_s0 + $0x45] ss:$8 sm:$0xf]   ;;  %v184_v18 = vld [vmem:[%s388_s0 + $0x44] ss:$8 sm:$0xf]  }
   0x6   :  { %v180_v13 = vld [vmem:[%s388_s0 + $0x45] ss:$8 sm:$0xf0]   ;;  %v185_v19 = vld [vmem:[%s388_s0 + $0x44] ss:$8 sm:$0xf0]  }
   0x7   :  { %v177_v14 = vld [vmem:[%s388_s0 + $0x5] ss:$8 sm:$0xf]   ;;  %v74_v16 = vsel %vm4_vm0, %v180_v13, %v179_v12  ;;  %v182_v20 = vld [vmem:[%s388_s0 + $0x4] ss:$8 sm:$0xf]   ;;  %v95_v22 = vsel %vm4_vm0, %v185_v19, %v184_v18 }
   0x8   :  { %54 = vrot.lane.b32.xlu1 %v53_v8, %s209_s14  ;;  %v178_v15 = vld [vmem:[%s388_s0 + $0x5] ss:$8 sm:$0xf0]   ;;  %33 = vrot.lane.b32.xlu0 %v32_v11, %s210_s19  ;;  %v183_v21 = vld [vmem:[%s388_s0 + $0x4] ss:$8 sm:$0xf0]  }
   0x9   :  { %v64_v17 = vsel %vm4_vm0, %v178_v15, %v177_v14  ;;  %s211_s11 = smov 80   ;;  %v85_v23 = vsel %vm4_vm0, %v183_v21, %v182_v20  ;;  %v189_v24 = vld [vmem:[%s388_s0 + $0x43] ss:$8 sm:$0xf]   ;;  %s212_s20 = smov 64   ;;  %vm67_vm4 = vcmask 786048  }
   0xa   :  { %v190_v25 = vld [vmem:[%s388_s0 + $0x43] ss:$8 sm:$0xf0]   ;;  %v194_v28 = vld [vmem:[%s388_s0 + $0x42] ss:$8 sm:$0xf]  }
   0xb   :  { %v187_v26 = vld [vmem:[%s388_s0 + $0x3] ss:$8 sm:$0xf]   ;;  %v195_v29 = vld [vmem:[%s388_s0 + $0x42] ss:$8 sm:$0xf0]   ;;  %v116_v30 = vsel %vm4_vm0, %v190_v25, %v189_v24 }
   0xc   :  { %75 = vrot.lane.b32.xlu1 %v74_v16, %s211_s11  ;;  %65 = vrot.lane.b32.xlu0 %v64_v17, %s211_s11  ;;  %v188_v27 = vld [vmem:[%s388_s0 + $0x3] ss:$8 sm:$0xf0]   ;;  %v192_v31 = vld [vmem:[%s388_s0 + $0x2] ss:$8 sm:$0xf]   ;;  %v137_v40 = vsel %vm4_vm0, %v195_v29, %v194_v28 }
   0xd   :  { %v2_v32 = vld [vmem:[%s388_s0] ss:$8 sm:$0xf]   ;;  %v106_v33 = vsel %vm4_vm0, %v188_v27, %v187_v26  ;;  %v193_v36 = vld [vmem:[%s388_s0 + $0x2] ss:$8 sm:$0xf0]  }
   0xe   :  { %v3_v34 = vld [vmem:[%s388_s0] ss:$8 sm:$0xf0]   ;;  %s213_s8 = smov 48   ;;  %v127_v41 = vsel %vm4_vm0, %v193_v36, %v192_v31  ;;  %s215_s21 = smov 16   ;;  %vm88_vm5 = vcmask 654848  }
   0xf   :  { %v164_v35 = vld [vmem:[%s388_s0 + $0x40] ss:$8 sm:$0xf]   ;;  %v5_v37 = vsel %vm4_vm0, %v3_v34, %v2_v32  ;;  %v199_v42 = vld [vmem:[%s388_s0 + $0x41] ss:$8 sm:$0xf]  }
  0x10   :  { %96 = vrot.lane.b32.xlu1 %v95_v22, %s212_s20  ;;  %86 = vrot.lane.b32.xlu0 %v85_v23, %s212_s20  ;;  %v165_v38 = vld [vmem:[%s388_s0 + $0x40] ss:$8 sm:$0xf0]   ;;  %7 = vst.msk [vmem:[%s389_s1] sm:$0xff] %vm6_vm1, %v5_v37   ;;  %vm109_vm6 = vcmask 523648   ;;  %vm130_vm7 = vcmask 392448  }
  0x11   :  { %v13_v39 = vsel %vm4_vm0, %v165_v38, %v164_v35  ;;  %v200_v43 = vld [vmem:[%s388_s0 + $0x41] ss:$8 sm:$0xf0]   ;;  %vm151_vm8 = vcmask 261248  }
  0x12   :  { %166 = vst.msk [vmem:[%s389_s1 + $0x8] sm:$0xff] %vm6_vm1, %v13_v39   ;;  %v197_v44 = vld [vmem:[%s388_s0 + $0x1] ss:$8 sm:$0xf]   ;;  %v158_v46 = vsel %vm4_vm0, %v200_v43, %v199_v42 }
  0x13   :  { %v198_v45 = vld [vmem:[%s388_s0 + $0x1] ss:$8 sm:$0xf0]   ;;  %s214_s0 = smov 32  }
  0x14   :  { %117 = vrot.lane.b32.xlu1 %v116_v30, %s213_s8  ;;  %107 = vrot.lane.b32.xlu0 %v106_v33, %s213_s8  ;;  %v148_v47 = vsel %vm4_vm0, %v198_v45, %v197_v44 }
  0x18   :  { %138 = vrot.lane.b32.xlu1 %v137_v40, %s214_s0  ;;  %128 = vrot.lane.b32.xlu0 %v127_v41, %s214_s0 }
  0x1c   :  { %159 = vrot.lane.b32.xlu1 %v158_v46, %s215_s21  ;;  %149 = vrot.lane.b32.xlu0 %v148_v47, %s215_s21 }
  0x76   :  { %v45_v48 = vpop.permute.xlu1 %44   ;;  %v24_v49 = vpop.permute.xlu0 %23  }
  0x77   :  { %26 = vst.msk [vmem:[%s389_s1] sm:$0xff] %vm25_vm2, %v24_v49  }
  0x78   :  { %47 = vst.msk [vmem:[%s389_s1] sm:$0xff] %vm46_vm3, %v45_v48  }
  0x7a   :  { %v55_v50 = vpop.permute.xlu1 %54   ;;  %v34_v51 = vpop.permute.xlu0 %33  }
  0x7b   :  { %171 = vst.msk [vmem:[%s389_s1 + $0x8] sm:$0xff] %vm25_vm2, %v34_v51  }
  0x7c   :  { %176 = vst.msk [vmem:[%s389_s1 + $0x8] sm:$0xff] %vm46_vm3, %v55_v50  }
  0x7e   :  { %v76_v52 = vpop.permute.xlu1 %75   ;;  %v66_v53 = vpop.permute.xlu0 %65  }
  0x7f   :  { %181 = vst.msk [vmem:[%s389_s1 + $0x8] sm:$0xff] %vm67_vm4, %v76_v52   ;;  %68 = vst.msk [vmem:[%s389_s1] sm:$0xff] %vm67_vm4, %v66_v53  }
  0x82   :  { %v97_v54 = vpop.permute.xlu1 %96   ;;  %v87_v55 = vpop.permute.xlu0 %86  }
  0x83   :  { %186 = vst.msk [vmem:[%s389_s1 + $0x8] sm:$0xff] %vm88_vm5, %v97_v54   ;;  %89 = vst.msk [vmem:[%s389_s1] sm:$0xff] %vm88_vm5, %v87_v55  }
  0x86   :  { %v118_v56 = vpop.permute.xlu1 %117   ;;  %v108_v57 = vpop.permute.xlu0 %107  }
  0x87   :  { %191 = vst.msk [vmem:[%s389_s1 + $0x8] sm:$0xff] %vm109_vm6, %v118_v56   ;;  %110 = vst.msk [vmem:[%s389_s1] sm:$0xff] %vm109_vm6, %v108_v57  }
  0x8a   :  { %v139_v58 = vpop.permute.xlu1 %138   ;;  %v129_v59 = vpop.permute.xlu0 %128  }
  0x8b   :  { %196 = vst.msk [vmem:[%s389_s1 + $0x8] sm:$0xff] %vm130_vm7, %v139_v58   ;;  %131 = vst.msk [vmem:[%s389_s1] sm:$0xff] %vm130_vm7, %v129_v59  }
  0x8e   :  { %v160_v60 = vpop.permute.xlu1 %159   ;;  %v150_v61 = vpop.permute.xlu0 %149  }
  0x8f   :  { %201 = vst.msk [vmem:[%s389_s1 + $0x8] sm:$0xff] %vm151_vm8, %v160_v60   ;;  %152 = vst.msk [vmem:[%s389_s1] sm:$0xff] %vm151_vm8, %v150_v61  }

// kernel: ext_decoder_forward.1
= control target key start
LH: loop header
LB: loop body
LE: loop exit
PB: predicated region body
PF: predicated region fallthrough
CT: control target
= control target key end

     0   :  { %s11135_s0 = inlined_call_operand.vmem [shape: f32[16,32], index: 0, kind: input, shape index: {}]   ;;  %s11136_s1 = inlined_call_operand.vmem [shape: f32[16,128], index: 1, kind: input, shape index: {}]   ;;  %s11137_s2 = inlined_call_operand.vmem [shape: f32[16,128], index: 2, kind: input, shape index: {}]   ;;  %s11138_s3 = inlined_call_operand.vmem [shape: f32[128,16], index: 3, kind: input, shape index: {}]   ;;  %s11139_s4 = inlined_call_operand.vmem [shape: f32[32,128], index: 4, kind: input, shape index: {}]   ;;  %s11140_s5 = inlined_call_operand.vmem [shape: f32[128,32], index: 5, kind: input, shape index: {}]   ;;  %s11141_s6 = inlined_call_operand.vmem [shape: f32[6,32,96], index: 6, kind: input, shape index: {}]   ;;  %s11142_s7 = inlined_call_operand.vmem [shape: f32[6,1,96], index: 7, kind: input, shape index: {}]   ;;  %s11143_s8 = inlined_call_operand.vmem [shape: f32[6,32,32], index: 8, kind: input, shape index: {}]   ;;  %s11144_s9 = inlined_call_operand.vmem [shape: f32[6,1,32], index: 9, kind: input, shape index: {}]   ;;  %s11145_s10 = inlined_call_operand.vmem [shape: f32[6,32,128], index: 10, kind: input, shape index: {}]   ;;  %s11146_s11 = inlined_call_operand.vmem [shape: f32[6,1,128], index: 11, kind: input, shape index: {}]   ;;  %s11147_s12 = inlined_call_operand.vmem [shape: f32[6,128,32], index: 12, kind: input, shape index: {}]   ;;  %s11148_s13 = inlined_call_operand.vmem [shape: f32[6,1,32], index: 13, kind: input, shape index: {}]   ;;  %s11149_s14 = inlined_call_operand.vmem [shape: f32[6,1,32], index: 14, kind: input, shape index: {}]   ;;  %s11150_s15 = inlined_call_operand.vmem [shape: f32[6,1,32], index: 15, kind: input, shape index: {}]   ;;  %s11151_s16 = inlined_call_operand.vmem [shape: f32[6,1,32], index: 16, kind: input, shape index: {}]   ;;  %s11152_s17 = inlined_call_operand.vmem [shape: f32[6,1,32], index: 17, kind: input, shape index: {}]   ;;  %s11153_s18 = inlined_call_operand.hbm [shape: f32[16,32], index: 18, kind: output, shape index: {}]  }
   0x1   :  { %11163 = sst [smem:[#allocation7_spill]] %s11135_s0 }
   0x2   :  { %11164 = sst [smem:[#allocation8_spill]] %s11136_s1 }
   0x3   :  { %11165 = sst [smem:[#allocation9_spill]] %s11137_s2 }
   0x4   :  { %s11166_s29 = sld [smem:[#allocation7_spill]]  ;;  %vm104_vm0 = vcmask 261120  }
   0xa   :  { %v8893_v0 = vld [vmem:[%s11166_s29] sm:$0xff]  ;;  %v8898_v1 = vld [vmem:[%s11166_s29 + $0x8] sm:$0xff] }
   0xb   :  { %23 = vsyncpa [#allocation3], 0  ;;  %v105_v2 = vsel %vm104_vm0, %v8893_v0, 0.0  ;;  %v111_v3 = vmul.f32 %v8893_v0, %v8893_v0  ;;  %v112_v4 = vmul.f32 %v8898_v1, %v8898_v1  ;;  %v108_v6 = vsel %vm104_vm0, %v8898_v1, 0.0  ;;  %v156_v8 = vld [vmem:[%s11141_s6 + $0x18] sm:$0xff]  ;;  %v155_v9 = vld [vmem:[%s11141_s6 + $0x10] sm:$0xff] }
   0xc   :  { %106 = vadd.xlane.f32.xlu0 %v105_v2  ;;  %7448 = vmatprep.subr.mxu0 %v156_v8  ;;  %v154_v10 = vld [vmem:[%s11141_s6 + $0x8] sm:$0xff]  ;;  %v153_v11 = vld [vmem:[%s11141_s6] sm:$0xff]  ;;  %s8790_s0 = smov 96   ;;  %s8791_s19 = smov 64   ;;  %vm285_vm1 = vcmask 130048   ;;  %v8961_v55 = vld [vmem:[%s11139_s4 + $0x18] sm:$0xff] }
   0xd   :  { %v113_v5 = vsel %vm104_vm0, %v111_v3, 0.0  ;;  %v116_v7 = vsel %vm104_vm0, %v112_v4, 0.0  ;;  %7449 = vmatpush3.msra.mxu0 %v156_v8  ;;  %v6440_v30 = vld [vmem:[%s11149_s14] ss:$0 sm:$0xff]  ;;  %s11167_s21 = sld [smem:[#allocation9_spill]]  ;;  %v8966_v57 = vld [vmem:[%s11139_s4 + $0x10] sm:$0xff] }
   0xe   :  { %114 = vadd.xlane.f32.xlu1 %v113_v5  ;;  %7450 = vmatprep.subr.mxu0 %v155_v9  ;;  %v6441_v32 = vld [vmem:[%s11150_s15] ss:$0 sm:$0xff]  ;;  %v8972_v59 = vld [vmem:[%s11139_s4 + $0x8] sm:$0xff]  ;;  %v9007_v8 = vld [vmem:[%s11138_s3 + $0x18] sm:$0xff]  ;;  %s11168_s25 = sld [smem:[#allocation8_spill]] }
   0xf   :  { %7451 = vmatpush3.msra.mxu0 %v155_v9  ;;  %v6442_v40 = vld [vmem:[%s11142_s7] ss:$0 sm:$0xff] }
  0x10   :  { %109 = vadd.xlane.f32.xlu0 %v108_v6  ;;  %7452 = vmatprep.subr.mxu0 %v154_v10  ;;  %v8978_v62 = vld [vmem:[%s11139_s4] sm:$0xff]  ;;  %v8993_v6 = vld [vmem:[%s11138_s3 + $0x8] sm:$0xff] }
  0x11   :  { %7453 = vmatpush3.msra.mxu0 %v154_v10  ;;  %v8985_v4 = vld [vmem:[%s11138_s3] sm:$0xff]  ;;  %v9021_v10 = vld [vmem:[%s11138_s3 + $0x28] sm:$0xff] }
  0x12   :  { %117 = vadd.xlane.f32.xlu1 %v116_v7  ;;  %7454 = vmatprep.subr.mxu0 %v153_v11  ;;  %v8998_v7 = vld [vmem:[%s11138_s3 + $0x10] sm:$0xff]  ;;  %v9012_v9 = vld [vmem:[%s11138_s3 + $0x20] sm:$0xff] }
  0x13   :  { %7455 = vmatpush3.msra.mxu0 %v153_v11  ;;  %v8942_v45 = vld [vmem:[%s11167_s21 + $0x8] sm:$0xff]  ;;  %v8948_v46 = vld [vmem:[%s11167_s21] sm:$0xff]  ;;  %v9026_v11 = vld [vmem:[%s11138_s3 + $0x30] sm:$0xff] }
  0x14   :  { %7459 = vmatprep.subr.mxu0 %v8942_v45 }
  0x95   :  { %v107_v12 = vpop.xlane.xlu0 %106 }
  0x96   :  { %v119_v13 = vmul.f32 0.03125, %v107_v12  ;;  %v9035_v12 = vld [vmem:[%s11138_s3 + $0x38] sm:$0xff] }
  0x97   :  { %v115_v14 = vpop.xlane.xlu1 %114 }
  0x98   :  { %v123_v15 = vmul.f32 %v119_v13, %v119_v13  ;;  %v121_v16 = vmul.f32 0.03125, %v115_v14  ;;  %v129_v28 = vsub.f32 %v8893_v0, %v119_v13  ;;  %v9040_v13 = vld [vmem:[%s11138_s3 + $0x40] sm:$0xff]  ;;  %v9049_v14 = vld [vmem:[%s11138_s3 + $0x48] sm:$0xff] }
  0x99   :  { %v110_v17 = vpop.xlane.xlu0 %109 }
  0x9a   :  { %v125_v18 = vsub.f32 %v121_v16, %v123_v15  ;;  %v120_v19 = vmul.f32 0.03125, %v110_v17  ;;  %v9054_v15 = vld [vmem:[%s11138_s3 + $0x50] sm:$0xff]  ;;  %v9063_v16 = vld [vmem:[%s11138_s3 + $0x58] sm:$0xff]  ;;  %v9068_v17 = vld [vmem:[%s11138_s3 + $0x60] sm:$0xff] }
  0x9b   :  { %v118_v20 = vpop.xlane.xlu1 %117 }
  0x9c   :  { %v127_v21 = vmax.f32 %v125_v18, 0.0  ;;  %v124_v22 = vmul.f32 %v120_v19, %v120_v19  ;;  %v122_v23 = vmul.f32 0.03125, %v118_v20  ;;  %v130_v33 = vsub.f32 %v8898_v1, %v120_v19  ;;  %v9077_v18 = vld [vmem:[%s11138_s3 + $0x68] sm:$0xff]  ;;  %v9082_v19 = vld [vmem:[%s11138_s3 + $0x70] sm:$0xff]  ;;  %v9091_v20 = vld [vmem:[%s11138_s3 + $0x78] sm:$0xff] }
  0x9e   :  { %v131_v24 = vadd.f32 1e-05, %v127_v21  ;;  %v126_v25 = vsub.f32 %v122_v23, %v124_v22  ;;  %v9098_v21 = vld [vmem:[%s11140_s5 + $0x78] sm:$0xff]  ;;  %v9104_v22 = vld [vmem:[%s11140_s5 + $0x70] sm:$0xff]  ;;  %v9111_v23 = vld [vmem:[%s11140_s5 + $0x68] sm:$0xff] }
  0x9f   :  { %7543 = vmatprep.subr.mxu1 %v9098_v21 }
  0xa0   :  { %8576 = vrsqrt.f32 %v131_v24  ;;  %v128_v26 = vmax.f32 %v126_v25, 0.0  ;;  %7544 = vmatpush3.msra.mxu1 %v9098_v21  ;;  %v9118_v24 = vld [vmem:[%s11140_s5 + $0x60] sm:$0xff]  ;;  %v9125_v25 = vld [vmem:[%s11140_s5 + $0x58] sm:$0xff] }
  0xa1   :  { %7545 = vmatprep.subr.mxu1 %v9104_v22 }
  0xa2   :  { %v132_v27 = vadd.f32 1e-05, %v128_v26  ;;  %7546 = vmatpush3.msra.mxu1 %v9104_v22  ;;  %v9132_v26 = vld [vmem:[%s11140_s5 + $0x50] sm:$0xff] }
  0xa3   :  { %7547 = vmatprep.subr.mxu1 %v9111_v23 }
  0xa4   :  { %8578 = vrsqrt.f32 %v132_v27  ;;  %7548 = vmatpush3.msra.mxu1 %v9111_v23  ;;  %v9139_v27 = vld [vmem:[%s11140_s5 + $0x48] sm:$0xff] }
  0xa5   :  { %7549 = vmatprep.subr.mxu1 %v9118_v24 }
  0xa6   :  { %7550 = vmatpush3.msra.mxu1 %v9118_v24 }
  0xa7   :  { %7551 = vmatprep.subr.mxu1 %v9125_v25 }
  0xa8   :  { %7552 = vmatpush3.msra.mxu1 %v9125_v25 }
  0xa9   :  { %7553 = vmatprep.subr.mxu1 %v9132_v26 }
  0xaa   :  { %7554 = vmatpush3.msra.mxu1 %v9132_v26 }
  0xab   :  { %7555 = vmatprep.subr.mxu1 %v9139_v27 }
  0xac   :  { %7556 = vmatpush3.msra.mxu1 %v9139_v27 }
  0xad   :  { %v8577_v29 = vpop.eup %8576 }
  0xae   :  { %v135_v31 = vmul.f32 %v8577_v29, %v129_v28  ;;  %v9146_v28 = vld [vmem:[%s11140_s5 + $0x40] sm:$0xff]  ;;  %v9153_v29 = vld [vmem:[%s11140_s5 + $0x38] sm:$0xff] }
  0xaf   :  { %7557 = vmatprep.subr.mxu1 %v9146_v28 }
  0xb0   :  { %v143_v34 = vmul.f32 %v6440_v30, %v135_v31  ;;  %7558 = vmatpush3.msra.mxu1 %v9146_v28  ;;  %v9167_v31 = vld [vmem:[%s11140_s5 + $0x28] sm:$0xff] }
  0xb1   :  { %v8579_v35 = vpop.eup %8578  ;;  %7559 = vmatprep.subr.mxu1 %v9153_v29 }
  0xb2   :  { %v136_v36 = vmul.f32 %v8579_v35, %v130_v33  ;;  %v151_v37 = vadd.f32 %v6441_v32, %v143_v34  ;;  %7560 = vmatpush3.msra.mxu1 %v9153_v29  ;;  %v9181_v33 = vld [vmem:[%s11140_s5 + $0x18] sm:$0xff]  ;;  %v9188_v34 = vld [vmem:[%s11140_s5 + $0x10] sm:$0xff]  ;;  %v9195_v35 = vld [vmem:[%s11140_s5 + $0x8] sm:$0xff] }
  0xb4   :  { %v144_v38 = vmul.f32 %v6440_v30, %v136_v36  ;;  %7456 = vmatprep.mubr.msk.f32.mxu0 %vm104_vm0, %v151_v37  ;;  %v9160_v30 = vld [vmem:[%s11140_s5 + $0x30] sm:$0xff]  ;;  %v9202_v36 = vld [vmem:[%s11140_s5] sm:$0xff] }
  0xb5   :  { %7561 = vmatprep.subr.mxu1 %v9160_v30 }
  0xb6   :  { %v152_v39 = vadd.f32 %v6441_v32, %v144_v38  ;;  %7562 = vmatpush3.msra.mxu1 %v9160_v30  ;;  %v9174_v32 = vld [vmem:[%s11140_s5 + $0x20] sm:$0xff] }
  0xb7   :  { %7563 = vmatprep.subr.mxu1 %v9167_v31  ;;  %v9210_v38 = vld [vmem:[%s11168_s25] sm:$0xff] }
  0xb8   :  { %7457 = vmatmul.mubr.msk.f32.vlgmr.msra.gmra.mxu0 %vm104_vm0, %v152_v39  ;;  %7564 = vmatpush3.msra.mxu1 %v9167_v31  ;;  %11169 = vst [vmem:[#allocation5_spill] sm:$0xff] %v9210_v38 }
  0xb9   :  { %7460 = vmatpush3.msra.mxu0 %v8942_v45  ;;  %7565 = vmatprep.subr.mxu1 %v9174_v32 }
  0xba   :  { %7461 = vmatprep.subr.mxu0 %v8948_v46  ;;  %7566 = vmatpush3.msra.mxu1 %v9174_v32 }
  0xbb   :  { %7462 = vmatpush3.msra.mxu0 %v8948_v46  ;;  %7567 = vmatprep.subr.mxu1 %v9181_v33 }
  0xbc   :  { %7568 = vmatpush3.msra.mxu1 %v9181_v33 }
  0xbd   :  { %7569 = vmatprep.subr.mxu1 %v9188_v34 }
  0xbe   :  { %7570 = vmatpush3.msra.mxu1 %v9188_v34 }
  0xbf   :  { %7571 = vmatprep.subr.mxu1 %v9195_v35 }
  0xc0   :  { %7572 = vmatpush3.msra.mxu1 %v9195_v35 }
  0xc1   :  { %7573 = vmatprep.subr.mxu1 %v9202_v36 }
  0xc2   :  { %7574 = vmatpush3.msra.mxu1 %v9202_v36 }
 0x178   :  { %v7458_v41 = vpop.f32.mrf.mxu0 }
 0x179   :  { %v242_v42 = vadd.f32 %v7458_v41, %v6442_v40  ;;  %v9218_v41 = vld [vmem:[%s11168_s25 + $0x8] sm:$0xff] }
 0x17a   :  { %v236_v43 = vpop.f32.mrf.mxu0  ;;  %11170 = vst [vmem:[#allocation6_spill] sm:$0xff] %v9218_v41 }
 0x17b   :  { %v237_v44 = vadd.f32 %v6442_v40, %v236_v43  ;;  %249 = vrot.lane.b32.xlu1 %v242_v42, %s8790_s0 }
 0x17d   :  { %247 = vrot.lane.b32.xlu0 %v237_v44, %s8790_s0 }
 0x181   :  { %478 = vrot.lane.b32.xlu0 %v242_v42, %s8791_s19 }
 0x185   :  { %476 = vrot.lane.b32.xlu0 %v237_v44, %s8791_s19 }
 0x1ed   :  { %v250_v48 = vpop.permute.xlu1 %249 }
 0x1ef   :  { %v248_v47 = vpop.permute.xlu0 %247 }
 0x1f0   :  { %253 = vxpose.xlu1.b32.start [1/2] (short) (narrow) %v248_v47, 32 }
 0x1f3   :  { %v479_v2 = vpop.permute.xlu0 %478 }
 0x1f4   :  { %254 = vxpose.xlu1.b32.end [2/2] (short) (narrow) %v250_v48, 32 }
 0x1f7   :  { %v477_v5 = vpop.permute.xlu0 %476 }
 0x26c   :  { %v269_v49 = vpop.trf.xlu1 }
 0x26d   :  { %7463 = vmatprep.mubr.msk.f32.mxu0 %vm285_vm1, %v269_v49 }
 0x270   :  { %v270_v50 = vpop.trf.xlu1 }
 0x271   :  { %7464 = vmatmul.mubr.msk.f32.vlgmr.msra.gmra.mxu0 %vm285_vm1, %v270_v50 }
 0x274   :  { %v271_v51 = vpop.trf.xlu1 }
 0x275   :  { %7466 = vmatprep.mubr.msk.f32.mxu0 %vm285_vm1, %v271_v51 }
 0x278   :  { %v272_v52 = vpop.trf.xlu1 }
 0x279   :  { %7467 = vmatmul.mubr.msk.f32.gmra.mxu0 %vm285_vm1, %v272_v52 }
 0x27a   :  { %7477 = vmatprep.mubr.msk.f32.mxu0 %vm104_vm0, %v237_v44 }
 0x331   :  { %v7465_v53 = vpop.f32.mrf.mxu0 }
 0x332   :  { %v384_v63 = vmul.f32 %v7465_v53, %v8972_v59 }
 0x333   :  { %v364_v54 = vpop.f32.mrf.mxu0 }
 0x334   :  { %v383_v3 = vmul.f32 %v364_v54, %v8978_v62 }
 0x339   :  { %v7468_v56 = vpop.f32.mrf.mxu0 }
 0x33a   :  { %v386_v58 = vmul.f32 %v7468_v56, %v8961_v55 }
 0x33b   :  { %v374_v60 = vpop.f32.mrf.mxu0 }
 0x33c   :  { %v385_v61 = vmul.f32 %v374_v60, %v8966_v57  ;;  %7469 = vmatprep.subr.mxu0 %v386_v58 }
 0x33d   :  { %7470 = vmatpush3.msra.mxu0 %v386_v58 }
 0x33e   :  { %7471 = vmatprep.subr.mxu0 %v385_v61 }
 0x33f   :  { %7472 = vmatpush3.msra.mxu0 %v385_v61 }
 0x340   :  { %7473 = vmatprep.subr.mxu0 %v384_v63 }
 0x341   :  { %7474 = vmatpush3.msra.mxu0 %v384_v63 }
 0x342   :  { %7475 = vmatprep.subr.mxu0 %v383_v3 }
 0x343   :  { %7476 = vmatpush3.msra.mxu0 %v383_v3 }
 0x344   :  { %7478 = vmatmul.mubr.msk.f32.vlgmr.msra.gmra.mxu0 %vm104_vm0, %v242_v42  ;;  %7480 = vmatprep.subr.mxu0 %v479_v2 }
 0x345   :  { %7481 = vmatpush3.msra.mxu0 %v479_v2  ;;  %7484 = vmatprep.mubr.msk.f32.mxu0 %vm285_vm1, %v8985_v4 }
 0x346   :  { %7482 = vmatprep.subr.mxu0 %v477_v5 }
 0x347   :  { %7483 = vmatpush3.msra.mxu0 %v477_v5 }
 0x348   :  { %7485 = vmatmul.mubr.msk.f32.vlgmr.msra.gmra.mxu0 %vm285_vm1, %v8993_v6 }
 0x349   :  { %7487 = vmatprep.mubr.msk.f32.mxu0 %vm285_vm1, %v8998_v7 }
 0x34c   :  { %7488 = vmatmul.mubr.msk.f32.gmra.mxu0 %vm285_vm1, %v9007_v8 }
 0x34d   :  { %7490 = vmatprep.mubr.msk.f32.mxu0 %vm285_vm1, %v9012_v9 }
 0x350   :  { %7491 = vmatmul.mubr.msk.f32.gmra.mxu0 %vm285_vm1, %v9021_v10 }
 0x351   :  { %7493 = vmatprep.mubr.msk.f32.mxu0 %vm285_vm1, %v9026_v11 }
 0x354   :  { %7494 = vmatmul.mubr.msk.f32.gmra.mxu0 %vm285_vm1, %v9035_v12 }
 0x355   :  { %7496 = vmatprep.mubr.msk.f32.mxu0 %vm285_vm1, %v9040_v13 }
 0x358   :  { %7497 = vmatmul.mubr.msk.f32.gmra.mxu0 %vm285_vm1, %v9049_v14 }
 0x359   :  { %7499 = vmatprep.mubr.msk.f32.mxu0 %vm285_vm1, %v9054_v15 }
 0x35c   :  { %7500 = vmatmul.mubr.msk.f32.gmra.mxu0 %vm285_vm1, %v9063_v16 }
 0x35d   :  { %7502 = vmatprep.mubr.msk.f32.mxu0 %vm285_vm1, %v9068_v17 }
 0x360   :  { %7503 = vmatmul.mubr.msk.f32.gmra.mxu0 %vm285_vm1, %v9077_v18 }
 0x361   :  { %7505 = vmatprep.mubr.msk.f32.mxu0 %vm285_vm1, %v9082_v19 }
 0x364   :  { %7506 = vmatmul.mubr.msk.f32.gmra.mxu0 %vm285_vm1, %v9091_v20 }
 0x404   :  { %v7479_v37 = vpop.f32.mrf.mxu0 }
 0x405   :  { %v9222_v44 = vadd.f32 %v7479_v37, %v9218_v41 }
 0x406   :  { %v457_v39 = vpop.f32.mrf.mxu0 }
 0x407   :  { %v9213_v40 = vadd.f32 %v457_v39, %v9210_v38 }
 0x408   :  { %v7486_v42 = vpop.f32.mrf.mxu0 }
 0x409   :  { %466 = vmax.xlane.f32.xlu0 %v9213_v40 }
 0x40a   :  { %v596_v43 = vpop.f32.mrf.mxu0 }
 0x40c   :  { %v7489_v47 = vpop.f32.mrf.mxu0 }
 0x40d   :  { %468 = vmax.xlane.f32.xlu0 %v9222_v44 }
 0x40e   :  { %v606_v48 = vpop.f32.mrf.mxu0 }
 0x410   :  { %v7492_v49 = vpop.f32.mrf.mxu0 }
 0x412   :  { %v616_v50 = vpop.f32.mrf.mxu0 }
 0x414   :  { %v7495_v51 = vpop.f32.mrf.mxu0 }
 0x416   :  { %v626_v52 = vpop.f32.mrf.mxu0 }
 0x418   :  { %v7498_v53 = vpop.f32.mrf.mxu0 }
 0x41a   :  { %v636_v54 = vpop.f32.mrf.mxu0 }
 0x41c   :  { %v7501_v56 = vpop.f32.mrf.mxu0 }
 0x41d   :  { %v686_v38 = vmul.f32 %v7501_v56, %v9125_v25  ;;  %v681_v56 = vmul.f32 %v626_v52, %v9160_v30 }
 0x41e   :  { %v646_v58 = vpop.f32.mrf.mxu0 }
 0x41f   :  { %v685_v41 = vmul.f32 %v646_v58, %v9132_v26  ;;  %v680_v58 = vmul.f32 %v7492_v49, %v9167_v31  ;;  %v675_v49 = vmul.f32 %v596_v43, %v9202_v36 }
 0x420   :  { %v7504_v60 = vpop.f32.mrf.mxu0 }
 0x421   :  { %v688_v5 = vmul.f32 %v7504_v60, %v9111_v23  ;;  %v683_v60 = vmul.f32 %v636_v54, %v9146_v28 }
 0x422   :  { %v656_v61 = vpop.f32.mrf.mxu0 }
 0x423   :  { %v687_v39 = vmul.f32 %v656_v61, %v9118_v24  ;;  %v682_v61 = vmul.f32 %v7495_v51, %v9153_v29  ;;  %v676_v51 = vmul.f32 %v7486_v42, %v9195_v35 }
 0x424   :  { %v7507_v63 = vpop.f32.mrf.mxu0 }
 0x425   :  { %v690_v2 = vmul.f32 %v7507_v63, %v9098_v21  ;;  %v684_v63 = vmul.f32 %v7498_v53, %v9139_v27  ;;  %v679_v53 = vmul.f32 %v616_v50, %v9174_v32 }
 0x426   :  { %v666_v3 = vpop.f32.mrf.mxu0 }
 0x427   :  { %v689_v37 = vmul.f32 %v666_v3, %v9104_v22  ;;  %7508 = vmatprep.subr.mxu0 %v690_v2  ;;  %v848_v3 = vld [vmem:[%s11143_s8 + $0x18] sm:$0xff] }
 0x428   :  { %7509 = vmatpush3.msra.mxu0 %v690_v2 }
 0x429   :  { %7510 = vmatprep.subr.mxu0 %v689_v37 }
 0x42a   :  { %7511 = vmatpush3.msra.mxu0 %v689_v37 }
 0x42b   :  { %7512 = vmatprep.subr.mxu0 %v688_v5 }
 0x42c   :  { %7513 = vmatpush3.msra.mxu0 %v688_v5  ;;  %v845_v5 = vld [vmem:[%s11143_s8] sm:$0xff] }
 0x42d   :  { %7514 = vmatprep.subr.mxu0 %v687_v39 }
 0x42e   :  { %7515 = vmatpush3.msra.mxu0 %v687_v39 }
 0x42f   :  { %7516 = vmatprep.subr.mxu0 %v686_v38 }
 0x430   :  { %7517 = vmatpush3.msra.mxu0 %v686_v38  ;;  %v678_v38 = vmul.f32 %v7489_v47, %v9181_v33 }
 0x431   :  { %7518 = vmatprep.subr.mxu0 %v685_v41 }
 0x432   :  { %7519 = vmatpush3.msra.mxu0 %v685_v41  ;;  %v677_v41 = vmul.f32 %v606_v48, %v9188_v34 }
 0x433   :  { %7520 = vmatprep.subr.mxu0 %v684_v63 }
 0x434   :  { %7521 = vmatpush3.msra.mxu0 %v684_v63 }
 0x435   :  { %7522 = vmatprep.subr.mxu0 %v683_v60 }
 0x436   :  { %7523 = vmatpush3.msra.mxu0 %v683_v60 }
 0x437   :  { %7524 = vmatprep.subr.mxu0 %v682_v61 }
 0x438   :  { %7525 = vmatpush3.msra.mxu0 %v682_v61 }
 0x439   :  { %7526 = vmatprep.subr.mxu0 %v681_v56 }
 0x43a   :  { %7527 = vmatpush3.msra.mxu0 %v681_v56 }
 0x43b   :  { %7528 = vmatprep.subr.mxu0 %v680_v58 }
 0x43c   :  { %7529 = vmatpush3.msra.mxu0 %v680_v58 }
 0x43d   :  { %7530 = vmatprep.subr.mxu0 %v679_v53 }
 0x43e   :  { %7531 = vmatpush3.msra.mxu0 %v679_v53 }
 0x43f   :  { %7532 = vmatprep.subr.mxu0 %v678_v38 }
 0x440   :  { %7533 = vmatpush3.msra.mxu0 %v678_v38 }
 0x441   :  { %7534 = vmatprep.subr.mxu0 %v677_v41 }
 0x442   :  { %7535 = vmatpush3.msra.mxu0 %v677_v41  ;;  %v6469_v41 = vld [vmem:[%s11144_s9] ss:$0 sm:$0xff] }
 0x443   :  { %7536 = vmatprep.subr.mxu0 %v676_v51 }
 0x444   :  { %7537 = vmatpush3.msra.mxu0 %v676_v51 }
 0x445   :  { %7538 = vmatprep.subr.mxu0 %v675_v49 }
 0x446   :  { %7539 = vmatpush3.msra.mxu0 %v675_v49 }
 0x447   :  { %7578 = vmatprep.subr.mxu0 %v848_v3 }
 0x492   :  { %v467_v50 = vpop.xlane.xlu0 %466 }
 0x493   :  { %v470_v47 = vsub.f32 %v9213_v40, %v467_v50  ;;  %v847_v40 = vld [vmem:[%s11143_s8 + $0x10] sm:$0xff] }
 0x495   :  { %v472_v52 = vmul.f32 1.442695, %v470_v47 }
 0x496   :  { %v469_v54 = vpop.xlane.xlu0 %468 }
 0x497   :  { %8580 = vpow2.f32 %v472_v52  ;;  %v471_v48 = vsub.f32 %v9222_v44, %v469_v54  ;;  %v846_v44 = vld [vmem:[%s11143_s8 + $0x8] sm:$0xff] }
 0x499   :  { %v474_v2 = vmul.f32 1.442695, %v471_v48 }
 0x49b   :  { %8582 = vpow2.f32 %v474_v2 }
 0x4a4   :  { %v8581_v42 = vpop.eup %8580 }
 0x4a5   :  { %7540 = vmatprep.mubr.f32.mxu0 %v8581_v42  ;;  %7575 = vmatprep.mubr.f32.mxu1 %v8581_v42 }
 0x4a8   :  { %v8583_v43 = vpop.eup %8582 }
 0x4a9   :  { %7541 = vmatmul.mubr.f32.vlgmr.msra.gmra.mxu0 %v8583_v43  ;;  %7576 = vmatmul.mubr.f32.vlgmr.msra.gmra.mxu1 %v8583_v43  ;;  %v994_v43 = vld [vmem:[%s11145_s10 + $0x18] sm:$0xff] }
 0x4aa   :  { %7579 = vmatpush3.msra.mxu0 %v848_v3  ;;  %v993_v3 = vld [vmem:[%s11145_s10 + $0x10] sm:$0xff]  ;;  %7589 = vmatprep.subr.mxu1 %v994_v43 }
 0x4ab   :  { %7580 = vmatprep.subr.mxu0 %v847_v40  ;;  %7590 = vmatpush3.msra.mxu1 %v994_v43 }
 0x4ac   :  { %7581 = vmatpush3.msra.mxu0 %v847_v40  ;;  %v992_v40 = vld [vmem:[%s11145_s10 + $0x8] sm:$0xff]  ;;  %7591 = vmatprep.subr.mxu1 %v993_v3 }
 0x4ad   :  { %7582 = vmatprep.subr.mxu0 %v846_v44  ;;  %7592 = vmatpush3.msra.mxu1 %v993_v3 }
 0x4ae   :  { %7583 = vmatpush3.msra.mxu0 %v846_v44  ;;  %7593 = vmatprep.subr.mxu1 %v992_v40  ;;  %v991_v44 = vld [vmem:[%s11145_s10] sm:$0xff] }
 0x4af   :  { %7584 = vmatprep.subr.mxu0 %v845_v5  ;;  %7594 = vmatpush3.msra.mxu1 %v992_v40 }
 0x4b0   :  { %7585 = vmatpush3.msra.mxu0 %v845_v5  ;;  %7595 = vmatprep.subr.mxu1 %v991_v44  ;;  %v1100_v5 = vld [vmem:[%s11147_s12 + $0x78] sm:$0xff] }
 0x4b1   :  { %7596 = vmatpush3.msra.mxu1 %v991_v44  ;;  %7600 = vmatprep.subr.mxu0 %v1100_v5 }
 0x569   :  { %v7577_v37 = vpop.f32.mrf.mxu1  ;;  %v7542_v63 = vpop.f32.mrf.mxu0 }
 0x56a   :  { %8584 = vrcp.f32 %v7577_v37  ;;  %v1099_v37 = vld [vmem:[%s11147_s12 + $0x70] sm:$0xff] }
 0x56b   :  { %v832_v39 = vpop.f32.mrf.mxu1  ;;  %v757_v56 = vpop.f32.mrf.mxu0 }
 0x56c   :  { %8586 = vrcp.f32 %v832_v39  ;;  %v1098_v39 = vld [vmem:[%s11147_s12 + $0x68] sm:$0xff] }
 0x577   :  { %v8585_v60 = vpop.eup %8584 }
 0x578   :  { %v844_v53 = vmul.f32 %v8585_v60, %v7542_v63  ;;  %v1097_v63 = vld [vmem:[%s11147_s12 + $0x60] sm:$0xff]  ;;  %v1096_v60 = vld [vmem:[%s11147_s12 + $0x58] sm:$0xff] }
 0x579   :  { %v8587_v61 = vpop.eup %8586 }
 0x57a   :  { %v843_v58 = vmul.f32 %v8587_v61, %v757_v56  ;;  %v1095_v61 = vld [vmem:[%s11147_s12 + $0x50] sm:$0xff]  ;;  %v1094_v56 = vld [vmem:[%s11147_s12 + $0x48] sm:$0xff] }
 0x57c   :  { %7586 = vmatprep.mubr.msk.f32.mxu0 %vm104_vm0, %v843_v58  ;;  %v1093_v58 = vld [vmem:[%s11147_s12 + $0x40] sm:$0xff] }
 0x57d   :  { %7587 = vmatmul.mubr.msk.f32.vlgmr.msra.gmra.mxu0 %vm104_vm0, %v844_v53  ;;  %v1092_v53 = vld [vmem:[%s11147_s12 + $0x38] sm:$0xff] }
 0x57e   :  { %7601 = vmatpush3.msra.mxu0 %v1100_v5 }
 0x57f   :  { %7602 = vmatprep.subr.mxu0 %v1099_v37 }
 0x580   :  { %7603 = vmatpush3.msra.mxu0 %v1099_v37 }
 0x581   :  { %7604 = vmatprep.subr.mxu0 %v1098_v39 }
 0x582   :  { %7605 = vmatpush3.msra.mxu0 %v1098_v39 }
 0x583   :  { %7606 = vmatprep.subr.mxu0 %v1097_v63 }
 0x584   :  { %7607 = vmatpush3.msra.mxu0 %v1097_v63 }
 0x585   :  { %7608 = vmatprep.subr.mxu0 %v1096_v60 }
 0x586   :  { %7609 = vmatpush3.msra.mxu0 %v1096_v60 }
 0x587   :  { %7610 = vmatprep.subr.mxu0 %v1095_v61 }
 0x588   :  { %7611 = vmatpush3.msra.mxu0 %v1095_v61 }
 0x589   :  { %7612 = vmatprep.subr.mxu0 %v1094_v56 }
 0x58a   :  { %7613 = vmatpush3.msra.mxu0 %v1094_v56  ;;  %v6470_v56 = vld [vmem:[%s11151_s16] ss:$0 sm:$0xff] }
 0x58b   :  { %7614 = vmatprep.subr.mxu0 %v1093_v58 }
 0x58c   :  { %7615 = vmatpush3.msra.mxu0 %v1093_v58 }
 0x58d   :  { %7616 = vmatprep.subr.mxu0 %v1092_v53 }
 0x58e   :  { %7617 = vmatpush3.msra.mxu0 %v1092_v53  ;;  %v6471_v53 = vld [vmem:[%s11152_s17] ss:$0 sm:$0xff] }
 0x63d   :  { %v7588_v38 = vpop.f32.mrf.mxu0 }
 0x63e   :  { %v931_v51 = vadd.f32 %v7588_v38, %v8898_v1  ;;  %v1091_v38 = vld [vmem:[%s11147_s12 + $0x30] sm:$0xff] }
 0x63f   :  { %v921_v49 = vpop.f32.mrf.mxu0  ;;  %7618 = vmatprep.subr.mxu0 %v1091_v38 }
 0x640   :  { %v9261_v50 = vadd.f32 %v6469_v41, %v931_v51  ;;  %v930_v47 = vadd.f32 %v921_v49, %v8893_v0  ;;  %7619 = vmatpush3.msra.mxu0 %v1091_v38  ;;  %v1089_v51 = vld [vmem:[%s11147_s12 + $0x20] sm:$0xff] }
 0x642   :  { %v9264_v52 = vadd.f32 %v6469_v41, %v930_v47  ;;  %v946_v54 = vsel %vm104_vm0, %v9261_v50, 0.0  ;;  %v950_v42 = vmul.f32 %v9261_v50, %v9261_v50  ;;  %v1090_v41 = vld [vmem:[%s11147_s12 + $0x28] sm:$0xff] }
 0x643   :  { %947 = vadd.xlane.f32.xlu0 %v946_v54  ;;  %7620 = vmatprep.subr.mxu0 %v1090_v41 }
 0x644   :  { %v943_v48 = vsel %vm104_vm0, %v9264_v52, 0.0  ;;  %v949_v2 = vmul.f32 %v9264_v52, %v9264_v52  ;;  %v954_v0 = vsel %vm104_vm0, %v950_v42, 0.0  ;;  %7621 = vmatpush3.msra.mxu0 %v1090_v41 }
 0x645   :  { %944 = vadd.xlane.f32.xlu1 %v943_v48  ;;  %7622 = vmatprep.subr.mxu0 %v1089_v51 }
 0x646   :  { %v951_v1 = vsel %vm104_vm0, %v949_v2, 0.0  ;;  %7623 = vmatpush3.msra.mxu0 %v1089_v51 }
 0x647   :  { %952 = vadd.xlane.f32.xlu0 %v951_v1 }
 0x64b   :  { %955 = vadd.xlane.f32.xlu0 %v954_v0 }
 0x6cc   :  { %v948_v49 = vpop.xlane.xlu0 %947 }
 0x6cd   :  { %v958_v2 = vmul.f32 0.03125, %v948_v49 }
 0x6ce   :  { %v945_v47 = vpop.xlane.xlu1 %944 }
 0x6cf   :  { %v957_v54 = vmul.f32 0.03125, %v945_v47  ;;  %v962_v3 = vmul.f32 %v958_v2, %v958_v2  ;;  %v968_v38 = vsub.f32 %v9261_v50, %v958_v2  ;;  %v1087_v2 = vld [vmem:[%s11147_s12 + $0x10] sm:$0xff] }
 0x6d0   :  { %v953_v48 = vpop.xlane.xlu0 %952 }
 0x6d1   :  { %v961_v1 = vmul.f32 %v957_v54, %v957_v54  ;;  %v959_v42 = vmul.f32 0.03125, %v953_v48  ;;  %v967_v60 = vsub.f32 %v9264_v52, %v957_v54 }
 0x6d3   :  { %v963_v0 = vsub.f32 %v959_v42, %v961_v1  ;;  %v1088_v1 = vld [vmem:[%s11147_s12 + $0x18] sm:$0xff]  ;;  %v1086_v42 = vld [vmem:[%s11147_s12 + $0x8] sm:$0xff] }
 0x6d4   :  { %v956_v43 = vpop.xlane.xlu0 %955  ;;  %7624 = vmatprep.subr.mxu0 %v1088_v1 }
 0x6d5   :  { %v965_v40 = vmax.f32 %v963_v0, 0.0  ;;  %v960_v44 = vmul.f32 0.03125, %v956_v43  ;;  %7625 = vmatpush3.msra.mxu0 %v1088_v1  ;;  %v1085_v0 = vld [vmem:[%s11147_s12] sm:$0xff]  ;;  %v6481_v1 = vld [vmem:[%s11141_s6 + $0x28] sm:$0xff] }
 0x6d6   :  { %7626 = vmatprep.subr.mxu0 %v1087_v2  ;;  %v6472_v43 = vld [vmem:[%s11146_s11] ss:$0 sm:$0xff] }
 0x6d7   :  { %v969_v5 = vadd.f32 1e-05, %v965_v40  ;;  %v964_v37 = vsub.f32 %v960_v44, %v962_v3  ;;  %7627 = vmatpush3.msra.mxu0 %v1087_v2  ;;  %v6480_v2 = vld [vmem:[%s11141_s6 + $0x20] sm:$0xff] }
 0x6d8   :  { %7628 = vmatprep.subr.mxu0 %v1086_v42 }
 0x6d9   :  { %8588 = vrsqrt.f32 %v969_v5  ;;  %v966_v39 = vmax.f32 %v964_v37, 0.0  ;;  %7629 = vmatpush3.msra.mxu0 %v1086_v42 }
 0x6da   :  { %7630 = vmatprep.subr.mxu0 %v1085_v0 }
 0x6db   :  { %v970_v63 = vadd.f32 1e-05, %v966_v39  ;;  %7631 = vmatpush3.msra.mxu0 %v1085_v0 }
 0x6dc   :  { %7730 = vmatprep.subr.mxu0 %v9098_v21 }
 0x6dd   :  { %8590 = vrsqrt.f32 %v970_v63 }
 0x6e6   :  { %v8589_v61 = vpop.eup %8588 }
 0x6e7   :  { %v973_v58 = vmul.f32 %v8589_v61, %v967_v60  ;;  %v6475_v60 = vld [vmem:[%s11148_s13] ss:$0 sm:$0xff] }
 0x6e9   :  { %v981_v41 = vmul.f32 %v6470_v56, %v973_v58 }
 0x6ea   :  { %v8591_v51 = vpop.eup %8590 }
 0x6eb   :  { %v974_v49 = vmul.f32 %v8591_v51, %v968_v38  ;;  %v989_v47 = vadd.f32 %v6471_v53, %v981_v41 }
 0x6ed   :  { %v982_v48 = vmul.f32 %v6470_v56, %v974_v49  ;;  %7597 = vmatprep.mubr.msk.f32.mxu1 %vm104_vm0, %v989_v47 }
 0x6ef   :  { %v990_v54 = vadd.f32 %v6471_v53, %v982_v48  ;;  %v6483_v48 = vld [vmem:[%s11141_s6 + $0x38] sm:$0xff] }
 0x6f0   :  { %7635 = vmatprep.subr.mxu1 %v6483_v48 }
 0x6f1   :  { %7598 = vmatmul.mubr.msk.f32.vlgmr.msra.gmra.mxu1 %vm104_vm0, %v990_v54  ;;  %v6482_v54 = vld [vmem:[%s11141_s6 + $0x30] sm:$0xff] }
 0x6f2   :  { %7636 = vmatpush3.msra.mxu1 %v6483_v48  ;;  %v6479_v48 = vld [vmem:[%s11150_s15 + $0x1] ss:$0 sm:$0xff] }
 0x6f3   :  { %7637 = vmatprep.subr.mxu1 %v6482_v54 }
 0x6f4   :  { %7638 = vmatpush3.msra.mxu1 %v6482_v54 }
 0x6f5   :  { %7639 = vmatprep.subr.mxu1 %v6481_v1 }
 0x6f6   :  { %7640 = vmatpush3.msra.mxu1 %v6481_v1 }
 0x6f7   :  { %7641 = vmatprep.subr.mxu1 %v6480_v2 }
 0x6f8   :  { %7642 = vmatpush3.msra.mxu1 %v6480_v2 }
 0x6f9   :  { %7646 = vmatprep.subr.mxu1 %v8942_v45 }
 0x7b1   :  { %v7599_v3 = vpop.f32.mrf.mxu1 }
 0x7b2   :  { %v1080_v40 = vadd.f32 %v7599_v3, %v6472_v43 }
 0x7b3   :  { %v1074_v44 = vpop.f32.mrf.mxu1 }
 0x7b4   :  { %v1075_v5 = vadd.f32 %v6472_v43, %v1074_v44  ;;  %v1084_v39 = vmax.f32 %v1080_v40, 0.0 }
 0x7b6   :  { %v1083_v37 = vmax.f32 %v1075_v5, 0.0 }
 0x7b8   :  { %7632 = vmatprep.mubr.f32.mxu0 %v1083_v37 }
 0x7b9   :  { %7633 = vmatmul.mubr.f32.vlgmr.msra.gmra.mxu0 %v1084_v39 }
 0x7ba   :  { %7731 = vmatpush3.msra.mxu0 %v9098_v21 }
 0x7bb   :  { %7732 = vmatprep.subr.mxu0 %v9104_v22 }
 0x7bc   :  { %7733 = vmatpush3.msra.mxu0 %v9104_v22 }
 0x7bd   :  { %7734 = vmatprep.subr.mxu0 %v9111_v23 }
 0x7be   :  { %7735 = vmatpush3.msra.mxu0 %v9111_v23 }
 0x7bf   :  { %7736 = vmatprep.subr.mxu0 %v9118_v24 }
 0x7c0   :  { %7737 = vmatpush3.msra.mxu0 %v9118_v24 }
 0x7c1   :  { %7738 = vmatprep.subr.mxu0 %v9125_v25 }
 0x7c2   :  { %7739 = vmatpush3.msra.mxu0 %v9125_v25 }
 0x7c3   :  { %7740 = vmatprep.subr.mxu0 %v9132_v26 }
 0x7c4   :  { %7741 = vmatpush3.msra.mxu0 %v9132_v26 }
 0x7c5   :  { %7742 = vmatprep.subr.mxu0 %v9139_v27 }
 0x7c6   :  { %7743 = vmatpush3.msra.mxu0 %v9139_v27 }
 0x7c7   :  { %7744 = vmatprep.subr.mxu0 %v9146_v28 }
 0x7c8   :  { %7745 = vmatpush3.msra.mxu0 %v9146_v28 }
 0x7c9   :  { %7746 = vmatprep.subr.mxu0 %v9153_v29 }
 0x7ca   :  { %7747 = vmatpush3.msra.mxu0 %v9153_v29 }
 0x7cb   :  { %7748 = vmatprep.subr.mxu0 %v9160_v30 }
 0x7cc   :  { %7749 = vmatpush3.msra.mxu0 %v9160_v30 }
 0x7cd   :  { %7750 = vmatprep.subr.mxu0 %v9167_v31 }
 0x7ce   :  { %7751 = vmatpush3.msra.mxu0 %v9167_v31 }
 0x7cf   :  { %7752 = vmatprep.subr.mxu0 %v9174_v32 }
 0x7d0   :  { %7753 = vmatpush3.msra.mxu0 %v9174_v32 }
 0x7d1   :  { %7754 = vmatprep.subr.mxu0 %v9181_v33 }
 0x7d2   :  { %7755 = vmatpush3.msra.mxu0 %v9181_v33 }
 0x7d3   :  { %7756 = vmatprep.subr.mxu0 %v9188_v34 }
 0x7d4   :  { %7757 = vmatpush3.msra.mxu0 %v9188_v34 }
 0x7d5   :  { %7758 = vmatprep.subr.mxu0 %v9195_v35 }
 0x7d6   :  { %7759 = vmatpush3.msra.mxu0 %v9195_v35 }
 0x7d7   :  { %7760 = vmatprep.subr.mxu0 %v9202_v36 }
 0x7d8   :  { %7761 = vmatpush3.msra.mxu0 %v9202_v36 }
 0x879   :  { %v7634_v63 = vpop.f32.mrf.mxu0 }
 0x87a   :  { %v1177_v61 = vadd.f32 %v7634_v63, %v9261_v50 }
 0x87b   :  { %v1167_v56 = vpop.f32.mrf.mxu0 }
 0x87c   :  { %v9385_v58 = vadd.f32 %v6475_v60, %v1177_v61  ;;  %v1176_v53 = vadd.f32 %v1167_v56, %v9264_v52 }
 0x87e   :  { %v9388_v38 = vadd.f32 %v6475_v60, %v1176_v53  ;;  %v1194_v41 = vsel %vm104_vm0, %v9385_v58, 0.0  ;;  %v1198_v47 = vmul.f32 %v9385_v58, %v9385_v58 }
 0x87f   :  { %1195 = vadd.xlane.f32.xlu0 %v1194_v41 }
 0x880   :  { %v1191_v51 = vsel %vm104_vm0, %v9388_v38, 0.0  ;;  %v1197_v49 = vmul.f32 %v9388_v38, %v9388_v38  ;;  %v1202_v52 = vsel %vm104_vm0, %v1198_v47, 0.0  ;;  %v6478_v47 = vld [vmem:[%s11149_s14 + $0x1] ss:$0 sm:$0xff] }
 0x882   :  { %v1199_v50 = vsel %vm104_vm0, %v1197_v49, 0.0 }
 0x883   :  { %1192 = vadd.xlane.f32.xlu0 %v1191_v51 }
 0x887   :  { %1200 = vadd.xlane.f32.xlu0 %v1199_v50 }
 0x88b   :  { %1203 = vadd.xlane.f32.xlu0 %v1202_v52 }
 0x908   :  { %v1196_v42 = vpop.xlane.xlu0 %1195 }
 0x909   :  { %v1206_v40 = vmul.f32 0.03125, %v1196_v42 }
 0x90b   :  { %v1210_v63 = vmul.f32 %v1206_v40, %v1206_v40  ;;  %v1216_v54 = vsub.f32 %v9385_v58, %v1206_v40  ;;  %v6485_v40 = vld [vmem:[%s11142_s7 + $0x1] ss:$0 sm:$0xff] }
 0x90c   :  { %v1193_v0 = vpop.xlane.xlu0 %1192 }
 0x90d   :  { %v1205_v43 = vmul.f32 0.03125, %v1193_v0 }
 0x90f   :  { %v1209_v44 = vmul.f32 %v1205_v43, %v1205_v43  ;;  %v1215_v49 = vsub.f32 %v9388_v38, %v1205_v43 }
 0x910   :  { %v1201_v3 = vpop.xlane.xlu0 %1200 }
 0x911   :  { %v1207_v5 = vmul.f32 0.03125, %v1201_v3 }
 0x913   :  { %v1211_v37 = vsub.f32 %v1207_v5, %v1209_v44 }
 0x914   :  { %v1204_v39 = vpop.xlane.xlu0 %1203 }
 0x915   :  { %v1213_v60 = vmax.f32 %v1211_v37, 0.0  ;;  %v1208_v61 = vmul.f32 0.03125, %v1204_v39 }
 0x917   :  { %v1217_v56 = vadd.f32 1e-05, %v1213_v60  ;;  %v1212_v53 = vsub.f32 %v1208_v61, %v1210_v63 }
 0x919   :  { %8592 = vrsqrt.f32 %v1217_v56  ;;  %v1214_v41 = vmax.f32 %v1212_v53, 0.0 }
 0x91b   :  { %v1218_v51 = vadd.f32 1e-05, %v1214_v41 }
 0x91d   :  { %8594 = vrsqrt.f32 %v1218_v51 }
 0x926   :  { %v8593_v50 = vpop.eup %8592 }
 0x927   :  { %v1221_v52 = vmul.f32 %v8593_v50, %v1215_v49 }
 0x929   :  { %v1229_v1 = vmul.f32 %v6478_v47, %v1221_v52 }
 0x92a   :  { %v8595_v2 = vpop.eup %8594 }
 0x92b   :  { %v1222_v42 = vmul.f32 %v8595_v2, %v1216_v54  ;;  %v1237_v0 = vadd.f32 %v6479_v48, %v1229_v1 }
 0x92d   :  { %v1230_v3 = vmul.f32 %v6478_v47, %v1222_v42  ;;  %7643 = vmatprep.mubr.msk.f32.mxu1 %vm104_vm0, %v1237_v0 }
 0x92f   :  { %v1238_v43 = vadd.f32 %v6479_v48, %v1230_v3 }
 0x931   :  { %7644 = vmatmul.mubr.msk.f32.vlgmr.msra.gmra.mxu1 %vm104_vm0, %v1238_v43 }
 0x932   :  { %7647 = vmatpush3.msra.mxu1 %v8942_v45 }
 0x933   :  { %7648 = vmatprep.subr.mxu1 %v8948_v46 }
 0x934   :  { %7649 = vmatpush3.msra.mxu1 %v8948_v46 }
 0x9f1   :  { %v7645_v44 = vpop.f32.mrf.mxu1 }
 0x9f2   :  { %v1330_v5 = vadd.f32 %v7645_v44, %v6485_v40 }
 0x9f3   :  { %v1324_v37 = vpop.f32.mrf.mxu1 }
 0x9f4   :  { %v1325_v39 = vadd.f32 %v6485_v40, %v1324_v37  ;;  %1337 = vrot.lane.b32.xlu1 %v1330_v5, %s8790_s0 }
 0x9f6   :  { %1335 = vrot.lane.b32.xlu0 %v1325_v39, %s8790_s0 }
 0x9f8   :  { %1565 = vrot.lane.b32.xlu1 %v1330_v5, %s8791_s19 }
 0x9fc   :  { %1563 = vrot.lane.b32.xlu1 %v1325_v39, %s8791_s19 }
 0xa66   :  { %v1338_v63 = vpop.permute.xlu1 %1337 }
 0xa68   :  { %v1336_v45 = vpop.permute.xlu0 %1335 }
 0xa69   :  { %1341 = vxpose.xlu0.b32.start [1/2] (short) (narrow) %v1336_v45, 32 }
 0xa6a   :  { %v1566_v48 = vpop.permute.xlu1 %1565 }
 0xa6d   :  { %1342 = vxpose.xlu0.b32.end [2/2] (short) (narrow) %v1338_v63, 32  ;;  %v6512_v63 = vld [vmem:[%s11143_s8 + $0x30] sm:$0xff] }
 0xae5   :  { %v1357_v46 = vpop.trf.xlu0 }
 0xae6   :  { %7650 = vmatprep.mubr.msk.f32.mxu1 %vm285_vm1, %v1357_v46  ;;  %v6511_v46 = vld [vmem:[%s11143_s8 + $0x28] sm:$0xff] }
 0xae9   :  { %v1358_v60 = vpop.trf.xlu0 }
 0xaea   :  { %7651 = vmatmul.mubr.msk.f32.vlgmr.msra.gmra.mxu1 %vm285_vm1, %v1358_v60  ;;  %v6510_v60 = vld [vmem:[%s11143_s8 + $0x20] sm:$0xff] }
 0xaed   :  { %v1359_v61 = vpop.trf.xlu0 }
 0xaee   :  { %7653 = vmatprep.mubr.msk.f32.mxu1 %vm285_vm1, %v1359_v61 }
 0xaf1   :  { %v1360_v56 = vpop.trf.xlu0 }
 0xaf2   :  { %7654 = vmatmul.mubr.msk.f32.gmra.mxu1 %vm285_vm1, %v1360_v56 }
 0xaf3   :  { %7664 = vmatprep.mubr.msk.f32.mxu1 %vm104_vm0, %v1325_v39 }
 0xbaa   :  { %v7652_v53 = vpop.f32.mrf.mxu1 }
 0xbab   :  { %v1471_v52 = vmul.f32 %v7652_v53, %v8972_v59  ;;  %v11171_v59 = vld [vmem:[#allocation6_spill] sm:$0xff] }
 0xbac   :  { %v1451_v41 = vpop.f32.mrf.mxu1 }
 0xbad   :  { %v1470_v54 = vmul.f32 %v1451_v41, %v8978_v62 }
 0xbb2   :  { %v7655_v51 = vpop.f32.mrf.mxu1 }
 0xbb3   :  { %v1473_v49 = vmul.f32 %v7655_v51, %v8961_v55  ;;  %v1564_v55 = vpop.permute.xlu1 %1563 }
 0xbb4   :  { %v1461_v50 = vpop.f32.mrf.mxu1 }
 0xbb5   :  { %v1472_v47 = vmul.f32 %v1461_v50, %v8966_v57  ;;  %7656 = vmatprep.subr.mxu1 %v1473_v49 }
 0xbb6   :  { %7657 = vmatpush3.msra.mxu1 %v1473_v49 }
 0xbb7   :  { %7658 = vmatprep.subr.mxu1 %v1472_v47 }
 0xbb8   :  { %7659 = vmatpush3.msra.mxu1 %v1472_v47 }
 0xbb9   :  { %7660 = vmatprep.subr.mxu1 %v1471_v52 }
 0xbba   :  { %7661 = vmatpush3.msra.mxu1 %v1471_v52 }
 0xbbb   :  { %7662 = vmatprep.subr.mxu1 %v1470_v54 }
 0xbbc   :  { %7663 = vmatpush3.msra.mxu1 %v1470_v54 }
 0xbbd   :  { %7665 = vmatmul.mubr.msk.f32.vlgmr.msra.gmra.mxu1 %vm104_vm0, %v1330_v5  ;;  %7667 = vmatprep.subr.mxu1 %v1566_v48 }
 0xbbe   :  { %7668 = vmatpush3.msra.mxu1 %v1566_v48  ;;  %7671 = vmatprep.mubr.msk.f32.mxu1 %vm285_vm1, %v8985_v4  ;;  %v6517_v48 = vld [vmem:[%s11144_s9 + $0x1] ss:$0 sm:$0xff] }
 0xbbf   :  { %7669 = vmatprep.subr.mxu1 %v1564_v55 }
 0xbc0   :  { %7670 = vmatpush3.msra.mxu1 %v1564_v55 }
 0xbc1   :  { %7672 = vmatmul.mubr.msk.f32.vlgmr.msra.gmra.mxu1 %vm285_vm1, %v8993_v6  ;;  %v11172_v6 = vld [vmem:[#allocation5_spill] sm:$0xff] }
 0xbc2   :  { %7674 = vmatprep.mubr.msk.f32.mxu1 %vm285_vm1, %v8998_v7 }
 0xbc5   :  { %7675 = vmatmul.mubr.msk.f32.gmra.mxu1 %vm285_vm1, %v9007_v8 }
 0xbc6   :  { %7677 = vmatprep.mubr.msk.f32.mxu1 %vm285_vm1, %v9012_v9 }
 0xbc9   :  { %7678 = vmatmul.mubr.msk.f32.gmra.mxu1 %vm285_vm1, %v9021_v10 }
 0xbca   :  { %7680 = vmatprep.mubr.msk.f32.mxu1 %vm285_vm1, %v9026_v11 }
 0xbcd   :  { %7681 = vmatmul.mubr.msk.f32.gmra.mxu1 %vm285_vm1, %v9035_v12 }
 0xbce   :  { %7683 = vmatprep.mubr.msk.f32.mxu1 %vm285_vm1, %v9040_v13 }
 0xbd1   :  { %7684 = vmatmul.mubr.msk.f32.gmra.mxu1 %vm285_vm1, %v9049_v14 }
 0xbd2   :  { %7686 = vmatprep.mubr.msk.f32.mxu1 %vm285_vm1, %v9054_v15 }
 0xbd5   :  { %7687 = vmatmul.mubr.msk.f32.gmra.mxu1 %vm285_vm1, %v9063_v16 }
 0xbd6   :  { %7689 = vmatprep.mubr.msk.f32.mxu1 %vm285_vm1, %v9068_v17 }
 0xbd9   :  { %7690 = vmatmul.mubr.msk.f32.gmra.mxu1 %vm285_vm1, %v9077_v18 }
 0xbda   :  { %7692 = vmatprep.mubr.msk.f32.mxu1 %vm285_vm1, %v9082_v19 }
 0xbdd   :  { %7693 = vmatmul.mubr.msk.f32.gmra.mxu1 %vm285_vm1, %v9091_v20 }
 0xc7d   :  { %v7666_v57 = vpop.f32.mrf.mxu1 }
 0xc7e   :  { %v9476_v62 = vadd.f32 %v7666_v57, %v11171_v59 }
 0xc7f   :  { %v1544_v4 = vpop.f32.mrf.mxu1 }
 0xc80   :  { %v9479_v7 = vadd.f32 %v1544_v4, %v11172_v6  ;;  %1555 = vmax.xlane.f32.xlu0 %v9476_v62 }
 0xc81   :  { %v7673_v8 = vpop.f32.mrf.mxu1 }
 0xc82   :  { %1553 = vmax.xlane.f32.xlu1 %v9479_v7 }
 0xc83   :  { %v1635_v9 = vpop.f32.mrf.mxu1 }
 0xc85   :  { %v7676_v10 = vpop.f32.mrf.mxu1 }
 0xc87   :  { %v1645_v11 = vpop.f32.mrf.mxu1 }
 0xc89   :  { %v7679_v12 = vpop.f32.mrf.mxu1 }
 0xc8b   :  { %v1655_v13 = vpop.f32.mrf.mxu1 }
 0xc8d   :  { %v7682_v14 = vpop.f32.mrf.mxu1 }
 0xc8f   :  { %v1665_v15 = vpop.f32.mrf.mxu1 }
 0xc91   :  { %v7685_v16 = vpop.f32.mrf.mxu1 }
 0xc93   :  { %v1675_v17 = vpop.f32.mrf.mxu1 }
 0xc95   :  { %v7688_v18 = vpop.f32.mrf.mxu1 }
 0xc96   :  { %v1725_v44 = vmul.f32 %v7688_v18, %v9125_v25  ;;  %v1719_v25 = vmul.f32 %v7679_v12, %v9167_v31  ;;  %v6522_v12 = vld [vmem:[%s11145_s10 + $0x20] sm:$0xff]  ;;  %v6540_v18 = vld [vmem:[%s11147_s12 + $0xd0] sm:$0xff] }
 0xc97   :  { %v1685_v19 = vpop.f32.mrf.mxu1 }
 0xc98   :  { %v1724_v5 = vmul.f32 %v1685_v19, %v9132_v26  ;;  %v1718_v26 = vmul.f32 %v1655_v13, %v9174_v32  ;;  %v6545_v13 = vld [vmem:[%s11147_s12 + $0xf8] sm:$0xff]  ;;  %v6539_v19 = vld [vmem:[%s11147_s12 + $0xc8] sm:$0xff] }
 0xc99   :  { %v7691_v20 = vpop.f32.mrf.mxu1 }
 0xc9a   :  { %v1727_v3 = vmul.f32 %v7691_v20, %v9111_v23  ;;  %v1721_v23 = vmul.f32 %v7682_v14, %v9153_v29  ;;  %v1715_v29 = vmul.f32 %v7673_v8, %v9195_v35  ;;  %v6544_v14 = vld [vmem:[%s11147_s12 + $0xf0] sm:$0xff]  ;;  %v6538_v20 = vld [vmem:[%s11147_s12 + $0xc0] sm:$0xff] }
 0xc9b   :  { %v1695_v1 = vpop.f32.mrf.mxu1 }
 0xc9c   :  { %v1726_v40 = vmul.f32 %v1695_v1, %v9118_v24  ;;  %v1720_v24 = vmul.f32 %v1665_v15, %v9160_v30  ;;  %v1714_v30 = vmul.f32 %v1635_v9, %v9202_v36  ;;  %v6513_v36 = vld [vmem:[%s11143_s8 + $0x38] sm:$0xff]  ;;  %v6543_v15 = vld [vmem:[%s11147_s12 + $0xe8] sm:$0xff] }
 0xc9d   :  { %v7694_v2 = vpop.f32.mrf.mxu1  ;;  %v6525_v9 = vld [vmem:[%s11145_s10 + $0x38] sm:$0xff] }
 0xc9e   :  { %v1729_v42 = vmul.f32 %v7694_v2, %v9098_v21  ;;  %v1723_v21 = vmul.f32 %v7685_v16, %v9139_v27  ;;  %v1717_v27 = vmul.f32 %v7676_v10, %v9181_v33  ;;  %v6524_v10 = vld [vmem:[%s11145_s10 + $0x30] sm:$0xff]  ;;  %7776 = vmatprep.subr.mxu0 %v6525_v9  ;;  %v6542_v16 = vld [vmem:[%s11147_s12 + $0xe0] sm:$0xff]  ;;  %v6537_v1 = vld [vmem:[%s11147_s12 + $0xb8] sm:$0xff] }
 0xc9f   :  { %v1705_v0 = vpop.f32.mrf.mxu1  ;;  %v6536_v2 = vld [vmem:[%s11147_s12 + $0xb0] sm:$0xff] }
 0xca0   :  { %v1728_v43 = vmul.f32 %v1705_v0, %v9104_v22  ;;  %7695 = vmatprep.subr.mxu1 %v1729_v42  ;;  %v1722_v22 = vmul.f32 %v1675_v17, %v9146_v28  ;;  %v1716_v28 = vmul.f32 %v1645_v11, %v9188_v34  ;;  %v6523_v11 = vld [vmem:[%s11145_s10 + $0x28] sm:$0xff]  ;;  %v6541_v17 = vld [vmem:[%s11147_s12 + $0xd8] sm:$0xff]  ;;  %v6534_v0 = vld [vmem:[%s11147_s12 + $0xa0] sm:$0xff] }
 0xca1   :  { %7696 = vmatpush3.msra.mxu1 %v1729_v42  ;;  %v6535_v42 = vld [vmem:[%s11147_s12 + $0xa8] sm:$0xff] }
 0xca2   :  { %7697 = vmatprep.subr.mxu1 %v1728_v43 }
 0xca3   :  { %7698 = vmatpush3.msra.mxu1 %v1728_v43 }
 0xca4   :  { %7699 = vmatprep.subr.mxu1 %v1727_v3 }
 0xca5   :  { %7700 = vmatpush3.msra.mxu1 %v1727_v3 }
 0xca6   :  { %7701 = vmatprep.subr.mxu1 %v1726_v40 }
 0xca7   :  { %7702 = vmatpush3.msra.mxu1 %v1726_v40 }
 0xca8   :  { %7703 = vmatprep.subr.mxu1 %v1725_v44 }
 0xca9   :  { %7704 = vmatpush3.msra.mxu1 %v1725_v44 }
 0xcaa   :  { %7705 = vmatprep.subr.mxu1 %v1724_v5 }
 0xcab   :  { %7706 = vmatpush3.msra.mxu1 %v1724_v5 }
 0xcac   :  { %7707 = vmatprep.subr.mxu1 %v1723_v21 }
 0xcad   :  { %7708 = vmatpush3.msra.mxu1 %v1723_v21 }
 0xcae   :  { %7709 = vmatprep.subr.mxu1 %v1722_v22 }
 0xcaf   :  { %7710 = vmatpush3.msra.mxu1 %v1722_v22 }
 0xcb0   :  { %7711 = vmatprep.subr.mxu1 %v1721_v23 }
 0xcb1   :  { %7712 = vmatpush3.msra.mxu1 %v1721_v23 }
 0xcb2   :  { %7713 = vmatprep.subr.mxu1 %v1720_v24 }
 0xcb3   :  { %7714 = vmatpush3.msra.mxu1 %v1720_v24 }
 0xcb4   :  { %7715 = vmatprep.subr.mxu1 %v1719_v25 }
 0xcb5   :  { %7716 = vmatpush3.msra.mxu1 %v1719_v25 }
 0xcb6   :  { %7717 = vmatprep.subr.mxu1 %v1718_v26 }
 0xcb7   :  { %7718 = vmatpush3.msra.mxu1 %v1718_v26 }
 0xcb8   :  { %7719 = vmatprep.subr.mxu1 %v1717_v27 }
 0xcb9   :  { %7720 = vmatpush3.msra.mxu1 %v1717_v27 }
 0xcba   :  { %7721 = vmatprep.subr.mxu1 %v1716_v28 }
 0xcbb   :  { %7722 = vmatpush3.msra.mxu1 %v1716_v28 }
 0xcbc   :  { %7723 = vmatprep.subr.mxu1 %v1715_v29 }
 0xcbd   :  { %7724 = vmatpush3.msra.mxu1 %v1715_v29 }
 0xcbe   :  { %7725 = vmatprep.subr.mxu1 %v1714_v30 }
 0xcbf   :  { %7726 = vmatpush3.msra.mxu1 %v1714_v30 }
 0xcc0   :  { %7765 = vmatprep.subr.mxu1 %v6513_v36 }
 0xd09   :  { %v1556_v31 = vpop.xlane.xlu0 %1555 }
 0xd0a   :  { %v1558_v32 = vsub.f32 %v9476_v62, %v1556_v31 }
 0xd0b   :  { %v1554_v33 = vpop.xlane.xlu1 %1553 }
 0xd0c   :  { %v1557_v34 = vsub.f32 %v9479_v7, %v1554_v33  ;;  %v1561_v37 = vmul.f32 1.442695, %v1558_v32 }
 0xd0e   :  { %v1559_v39 = vmul.f32 1.442695, %v1557_v34  ;;  %v6520_v34 = vld [vmem:[%s11151_s16 + $0x1] ss:$0 sm:$0xff] }
 0xd10   :  { %8596 = vpow2.f32 %v1559_v39  ;;  %v6521_v39 = vld [vmem:[%s11152_s17 + $0x1] ss:$0 sm:$0xff] }
 0xd11   :  { %8598 = vpow2.f32 %v1561_v37 }
 0xd1d   :  { %v8597_v35 = vpop.eup %8596 }
 0xd1e   :  { %v8599_v45 = vpop.eup %8598  ;;  %7727 = vmatprep.mubr.f32.mxu1 %v8597_v35  ;;  %7762 = vmatprep.mubr.f32.mxu0 %v8597_v35 }
 0xd1f   :  { %7728 = vmatmul.mubr.f32.vlgmr.msra.gmra.mxu1 %v8599_v45  ;;  %7763 = vmatmul.mubr.f32.vlgmr.msra.gmra.mxu0 %v8599_v45 }
 0xd20   :  { %7766 = vmatpush3.msra.mxu1 %v6513_v36  ;;  %7777 = vmatpush3.msra.mxu0 %v6525_v9  ;;  %v9659_v9 = vld [vmem:[%s11140_s5 + $0x40] sm:$0xff] }
 0xd21   :  { %7767 = vmatprep.subr.mxu1 %v6512_v63  ;;  %7778 = vmatprep.subr.mxu0 %v6524_v10 }
 0xd22   :  { %7768 = vmatpush3.msra.mxu1 %v6512_v63  ;;  %7779 = vmatpush3.msra.mxu0 %v6524_v10  ;;  %v9666_v10 = vld [vmem:[%s11140_s5 + $0x38] sm:$0xff] }
 0xd23   :  { %7769 = vmatprep.subr.mxu1 %v6511_v46  ;;  %7780 = vmatprep.subr.mxu0 %v6523_v11 }
 0xd24   :  { %7770 = vmatpush3.msra.mxu1 %v6511_v46  ;;  %7781 = vmatpush3.msra.mxu0 %v6523_v11  ;;  %v9673_v11 = vld [vmem:[%s11140_s5 + $0x30] sm:$0xff] }
 0xd25   :  { %7771 = vmatprep.subr.mxu1 %v6510_v60  ;;  %7782 = vmatprep.subr.mxu0 %v6522_v12 }
 0xd26   :  { %7772 = vmatpush3.msra.mxu1 %v6510_v60  ;;  %7783 = vmatpush3.msra.mxu0 %v6522_v12  ;;  %v9680_v12 = vld [vmem:[%s11140_s5 + $0x28] sm:$0xff] }
 0xd27   :  { %7787 = vmatprep.subr.mxu1 %v6545_v13 }
 0xddf   :  { %v7764_v61 = vpop.f32.mrf.mxu0  ;;  %v7729_v53 = vpop.f32.mrf.mxu1 }
 0xde0   :  { %8600 = vrcp.f32 %v7764_v61 }
 0xde1   :  { %v1871_v56 = vpop.f32.mrf.mxu0  ;;  %v1796_v49 = vpop.f32.mrf.mxu1 }
 0xde2   :  { %8602 = vrcp.f32 %v1871_v56  ;;  %v6533_v56 = vld [vmem:[%s11147_s12 + $0x98] sm:$0xff] }
 0xded   :  { %v8601_v41 = vpop.eup %8600 }
 0xdee   :  { %v1883_v47 = vmul.f32 %v8601_v41, %v7729_v53  ;;  %v6532_v53 = vld [vmem:[%s11147_s12 + $0x90] sm:$0xff]  ;;  %v6531_v41 = vld [vmem:[%s11147_s12 + $0x88] sm:$0xff] }
 0xdef   :  { %v8603_v51 = vpop.eup %8602 }
 0xdf0   :  { %v1882_v50 = vmul.f32 %v8603_v51, %v1796_v49  ;;  %v6530_v51 = vld [vmem:[%s11147_s12 + $0x80] sm:$0xff]  ;;  %v9607_v49 = vld [vmem:[%s11140_s5 + $0x78] sm:$0xff] }
 0xdf2   :  { %7773 = vmatprep.mubr.msk.f32.mxu1 %vm104_vm0, %v1882_v50  ;;  %v6527_v50 = vld [vmem:[%s11146_s11 + $0x1] ss:$0 sm:$0xff] }
 0xdf3   :  { %7774 = vmatmul.mubr.msk.f32.vlgmr.msra.gmra.mxu1 %vm104_vm0, %v1883_v47 }
 0xdf4   :  { %7788 = vmatpush3.msra.mxu1 %v6545_v13  ;;  %v9687_v13 = vld [vmem:[%s11140_s5 + $0x20] sm:$0xff] }
 0xdf5   :  { %7789 = vmatprep.subr.mxu1 %v6544_v14 }
 0xdf6   :  { %7790 = vmatpush3.msra.mxu1 %v6544_v14  ;;  %v9694_v14 = vld [vmem:[%s11140_s5 + $0x18] sm:$0xff] }
 0xdf7   :  { %7791 = vmatprep.subr.mxu1 %v6543_v15 }
 0xdf8   :  { %7792 = vmatpush3.msra.mxu1 %v6543_v15  ;;  %v9701_v15 = vld [vmem:[%s11140_s5 + $0x10] sm:$0xff] }
 0xdf9   :  { %7793 = vmatprep.subr.mxu1 %v6542_v16 }
 0xdfa   :  { %7794 = vmatpush3.msra.mxu1 %v6542_v16  ;;  %v9708_v16 = vld [vmem:[%s11140_s5 + $0x8] sm:$0xff] }
 0xdfb   :  { %7795 = vmatprep.subr.mxu1 %v6541_v17 }
 0xdfc   :  { %7796 = vmatpush3.msra.mxu1 %v6541_v17  ;;  %v9715_v17 = vld [vmem:[%s11140_s5] sm:$0xff] }
 0xdfd   :  { %7797 = vmatprep.subr.mxu1 %v6540_v18 }
 0xdfe   :  { %7798 = vmatpush3.msra.mxu1 %v6540_v18 }
 0xdff   :  { %7799 = vmatprep.subr.mxu1 %v6539_v19 }
 0xe00   :  { %7800 = vmatpush3.msra.mxu1 %v6539_v19  ;;  %v6547_v19 = vld [vmem:[%s11148_s13 + $0x1] ss:$0 sm:$0xff] }
 0xe01   :  { %7801 = vmatprep.subr.mxu1 %v6538_v20 }
 0xe02   :  { %7802 = vmatpush3.msra.mxu1 %v6538_v20 }
 0xe03   :  { %7803 = vmatprep.subr.mxu1 %v6537_v1 }
 0xe04   :  { %7804 = vmatpush3.msra.mxu1 %v6537_v1 }
 0xe05   :  { %7805 = vmatprep.subr.mxu1 %v6536_v2 }
 0xe06   :  { %7806 = vmatpush3.msra.mxu1 %v6536_v2 }
 0xe07   :  { %7807 = vmatprep.subr.mxu1 %v6535_v42 }
 0xe08   :  { %7808 = vmatpush3.msra.mxu1 %v6535_v42 }
 0xe09   :  { %7809 = vmatprep.subr.mxu1 %v6534_v0 }
 0xe0a   :  { %7810 = vmatpush3.msra.mxu1 %v6534_v0 }
 0xe0b   :  { %7811 = vmatprep.subr.mxu1 %v6533_v56 }
 0xe0c   :  { %7812 = vmatpush3.msra.mxu1 %v6533_v56 }
 0xe0d   :  { %7813 = vmatprep.subr.mxu1 %v6532_v53 }
 0xe0e   :  { %7814 = vmatpush3.msra.mxu1 %v6532_v53  ;;  %v6551_v53 = vld [vmem:[%s11150_s15 + $0x2] ss:$0 sm:$0xff] }
 0xe0f   :  { %7815 = vmatprep.subr.mxu1 %v6531_v41 }
 0xe10   :  { %7816 = vmatpush3.msra.mxu1 %v6531_v41 }
 0xe11   :  { %7817 = vmatprep.subr.mxu1 %v6530_v51 }
 0xe12   :  { %7818 = vmatpush3.msra.mxu1 %v6530_v51 }
 0xe13   :  { %7917 = vmatprep.subr.mxu1 %v9607_v49 }
 0xeb3   :  { %v7775_v52 = vpop.f32.mrf.mxu1 }
 0xeb4   :  { %v1971_v54 = vadd.f32 %v7775_v52, %v9385_v58 }
 0xeb5   :  { %v1961_v55 = vpop.f32.mrf.mxu1 }
 0xeb6   :  { %v9519_v57 = vadd.f32 %v6517_v48, %v1971_v54  ;;  %v1970_v59 = vadd.f32 %v1961_v55, %v9388_v38 }
 0xeb8   :  { %v9522_v62 = vadd.f32 %v6517_v48, %v1970_v59  ;;  %v1989_v4 = vsel %vm104_vm0, %v9519_v57, 0.0  ;;  %v1993_v8 = vmul.f32 %v9519_v57, %v9519_v57 }
 0xeb9   :  { %1990 = vadd.xlane.f32.xlu1 %v1989_v4  ;;  %v9617_v4 = vld [vmem:[%s11140_s5 + $0x70] sm:$0xff] }
 0xeba   :  { %v1986_v6 = vsel %vm104_vm0, %v9522_v62, 0.0  ;;  %v1992_v7 = vmul.f32 %v9522_v62, %v9522_v62  ;;  %v1997_v38 = vsel %vm104_vm0, %v1993_v8, 0.0  ;;  %v9645_v8 = vld [vmem:[%s11140_s5 + $0x50] sm:$0xff] }
 0xebc   :  { %v1994_v58 = vsel %vm104_vm0, %v1992_v7, 0.0  ;;  %v9631_v7 = vld [vmem:[%s11140_s5 + $0x60] sm:$0xff] }
 0xebd   :  { %1987 = vadd.xlane.f32.xlu1 %v1986_v6  ;;  %v9624_v6 = vld [vmem:[%s11140_s5 + $0x68] sm:$0xff] }
 0xec1   :  { %1995 = vadd.xlane.f32.xlu1 %v1994_v58  ;;  %v9638_v58 = vld [vmem:[%s11140_s5 + $0x58] sm:$0xff] }
 0xec5   :  { %1998 = vadd.xlane.f32.xlu1 %v1997_v38  ;;  %v9652_v38 = vld [vmem:[%s11140_s5 + $0x48] sm:$0xff] }
 0xf42   :  { %v1991_v3 = vpop.xlane.xlu1 %1990 }
 0xf43   :  { %v2001_v5 = vmul.f32 0.03125, %v1991_v3 }
 0xf45   :  { %v2005_v25 = vmul.f32 %v2001_v5, %v2001_v5  ;;  %v2011_v35 = vsub.f32 %v9519_v57, %v2001_v5  ;;  %v6555_v5 = vld [vmem:[%s11141_s6 + $0x58] sm:$0xff] }
 0xf46   :  { %v1988_v43 = vpop.xlane.xlu1 %1987  ;;  %7822 = vmatprep.subr.mxu0 %v6555_v5 }
 0xf47   :  { %v2000_v40 = vmul.f32 0.03125, %v1988_v43 }
 0xf49   :  { %v2004_v21 = vmul.f32 %v2000_v40, %v2000_v40  ;;  %v2010_v32 = vsub.f32 %v9522_v62, %v2000_v40 }
 0xf4a   :  { %v1996_v44 = vpop.xlane.xlu1 %1995 }
 0xf4b   :  { %v2002_v22 = vmul.f32 0.03125, %v1996_v44 }
 0xf4d   :  { %v2006_v23 = vsub.f32 %v2002_v22, %v2004_v21  ;;  %v6554_v21 = vld [vmem:[%s11141_s6 + $0x50] sm:$0xff]  ;;  %v6553_v22 = vld [vmem:[%s11141_s6 + $0x48] sm:$0xff] }
 0xf4e   :  { %v1999_v24 = vpop.xlane.xlu1 %1998 }
 0xf4f   :  { %v2008_v26 = vmax.f32 %v2006_v23, 0.0  ;;  %v2003_v27 = vmul.f32 0.03125, %v1999_v24  ;;  %v6552_v23 = vld [vmem:[%s11141_s6 + $0x40] sm:$0xff]  ;;  %v9753_v24 = vld [vmem:[%s11167_s21 + $0x8] sm:$0xff] }
 0xf51   :  { %v2012_v28 = vadd.f32 1e-05, %v2008_v26  ;;  %v2007_v29 = vsub.f32 %v2003_v27, %v2005_v25 }
 0xf53   :  { %8604 = vrsqrt.f32 %v2012_v28  ;;  %v2009_v30 = vmax.f32 %v2007_v29, 0.0 }
 0xf55   :  { %v2013_v31 = vadd.f32 1e-05, %v2009_v30 }
 0xf57   :  { %8606 = vrsqrt.f32 %v2013_v31 }
 0xf60   :  { %v8605_v33 = vpop.eup %8604 }
 0xf61   :  { %v2016_v37 = vmul.f32 %v8605_v33, %v2010_v32 }
 0xf63   :  { %v2024_v45 = vmul.f32 %v6520_v34, %v2016_v37 }
 0xf64   :  { %v8607_v36 = vpop.eup %8606 }
 0xf65   :  { %v2017_v63 = vmul.f32 %v8607_v36, %v2011_v35  ;;  %v2032_v46 = vadd.f32 %v6521_v39, %v2024_v45 }
 0xf67   :  { %v2025_v60 = vmul.f32 %v6520_v34, %v2017_v63  ;;  %7784 = vmatprep.mubr.msk.f32.mxu0 %vm104_vm0, %v2032_v46 }
 0xf69   :  { %v2033_v61 = vadd.f32 %v6521_v39, %v2025_v60 }
 0xf6b   :  { %7785 = vmatmul.mubr.msk.f32.vlgmr.msra.gmra.mxu0 %vm104_vm0, %v2033_v61  ;;  %v6550_v61 = vld [vmem:[%s11149_s14 + $0x2] ss:$0 sm:$0xff] }
 0xf6c   :  { %7823 = vmatpush3.msra.mxu0 %v6555_v5 }
 0xf6d   :  { %7824 = vmatprep.subr.mxu0 %v6554_v21 }
 0xf6e   :  { %7825 = vmatpush3.msra.mxu0 %v6554_v21 }
 0xf6f   :  { %7826 = vmatprep.subr.mxu0 %v6553_v22 }
 0xf70   :  { %7827 = vmatpush3.msra.mxu0 %v6553_v22  ;;  %v9789_v22 = vld [vmem:[%s11139_s4 + $0x18] sm:$0xff] }
 0xf71   :  { %7828 = vmatprep.subr.mxu0 %v6552_v23 }
 0xf72   :  { %7829 = vmatpush3.msra.mxu0 %v6552_v23 }
 0xf73   :  { %7833 = vmatprep.subr.mxu0 %v9753_v24 }
0x102b   :  { %v7786_v47 = vpop.f32.mrf.mxu0 }
0x102c   :  { %v2125_v52 = vadd.f32 %v7786_v47, %v6527_v50 }
0x102d   :  { %v2119_v48 = vpop.f32.mrf.mxu0 }
0x102e   :  { %v2120_v54 = vadd.f32 %v6527_v50, %v2119_v48  ;;  %v2129_v59 = vmax.f32 %v2125_v52, 0.0 }
0x1030   :  { %v2128_v55 = vmax.f32 %v2120_v54, 0.0 }
0x1032   :  { %7819 = vmatprep.mubr.f32.mxu1 %v2128_v55  ;;  %v9770_v55 = vld [vmem:[%s11167_s21] sm:$0xff] }
0x1033   :  { %7820 = vmatmul.mubr.f32.vlgmr.msra.gmra.mxu1 %v2129_v59  ;;  %v6557_v59 = vld [vmem:[%s11142_s7 + $0x2] ss:$0 sm:$0xff] }
0x1034   :  { %7918 = vmatpush3.msra.mxu1 %v9607_v49 }
0x1035   :  { %7919 = vmatprep.subr.mxu1 %v9617_v4 }
0x1036   :  { %7920 = vmatpush3.msra.mxu1 %v9617_v4 }
0x1037   :  { %7921 = vmatprep.subr.mxu1 %v9624_v6 }
0x1038   :  { %7922 = vmatpush3.msra.mxu1 %v9624_v6 }
0x1039   :  { %7923 = vmatprep.subr.mxu1 %v9631_v7 }
0x103a   :  { %7924 = vmatpush3.msra.mxu1 %v9631_v7 }
0x103b   :  { %7925 = vmatprep.subr.mxu1 %v9638_v58 }
0x103c   :  { %7926 = vmatpush3.msra.mxu1 %v9638_v58 }
0x103d   :  { %7927 = vmatprep.subr.mxu1 %v9645_v8 }
0x103e   :  { %7928 = vmatpush3.msra.mxu1 %v9645_v8 }
0x103f   :  { %7929 = vmatprep.subr.mxu1 %v9652_v38 }
0x1040   :  { %7930 = vmatpush3.msra.mxu1 %v9652_v38 }
0x1041   :  { %7931 = vmatprep.subr.mxu1 %v9659_v9 }
0x1042   :  { %7932 = vmatpush3.msra.mxu1 %v9659_v9 }
0x1043   :  { %7933 = vmatprep.subr.mxu1 %v9666_v10 }
0x1044   :  { %7934 = vmatpush3.msra.mxu1 %v9666_v10 }
0x1045   :  { %7935 = vmatprep.subr.mxu1 %v9673_v11 }
0x1046   :  { %7936 = vmatpush3.msra.mxu1 %v9673_v11 }
0x1047   :  { %7937 = vmatprep.subr.mxu1 %v9680_v12 }
0x1048   :  { %7938 = vmatpush3.msra.mxu1 %v9680_v12 }
0x1049   :  { %7939 = vmatprep.subr.mxu1 %v9687_v13 }
0x104a   :  { %7940 = vmatpush3.msra.mxu1 %v9687_v13 }
0x104b   :  { %7941 = vmatprep.subr.mxu1 %v9694_v14 }
0x104c   :  { %7942 = vmatpush3.msra.mxu1 %v9694_v14 }
0x104d   :  { %7943 = vmatprep.subr.mxu1 %v9701_v15 }
0x104e   :  { %7944 = vmatpush3.msra.mxu1 %v9701_v15 }
0x104f   :  { %7945 = vmatprep.subr.mxu1 %v9708_v16 }
0x1050   :  { %7946 = vmatpush3.msra.mxu1 %v9708_v16 }
0x1051   :  { %7947 = vmatprep.subr.mxu1 %v9715_v17 }
0x1052   :  { %7948 = vmatpush3.msra.mxu1 %v9715_v17 }
0x10f3   :  { %v7821_v18 = vpop.f32.mrf.mxu1 }
0x10f4   :  { %v2223_v20 = vadd.f32 %v7821_v18, %v9519_v57 }
0x10f5   :  { %v2213_v1 = vpop.f32.mrf.mxu1 }
0x10f6   :  { %v9723_v2 = vadd.f32 %v6547_v19, %v2223_v20  ;;  %v2222_v42 = vadd.f32 %v2213_v1, %v9522_v62 }
0x10f8   :  { %v9726_v0 = vadd.f32 %v6547_v19, %v2222_v42  ;;  %v2241_v3 = vsel %vm104_vm0, %v9723_v2, 0.0  ;;  %v2245_v44 = vmul.f32 %v9723_v2, %v9723_v2 }
0x10f9   :  { %2242 = vadd.xlane.f32.xlu1 %v2241_v3 }
0x10fa   :  { %v2238_v43 = vsel %vm104_vm0, %v9726_v0, 0.0  ;;  %v2244_v40 = vmul.f32 %v9726_v0, %v9726_v0  ;;  %v2249_v62 = vsel %vm104_vm0, %v2245_v44, 0.0 }
0x10fc   :  { %v2246_v57 = vsel %vm104_vm0, %v2244_v40, 0.0 }
0x10fd   :  { %2239 = vadd.xlane.f32.xlu1 %v2238_v43 }
0x1101   :  { %2247 = vadd.xlane.f32.xlu1 %v2246_v57 }
0x1105   :  { %2250 = vadd.xlane.f32.xlu1 %v2249_v62 }
0x1182   :  { %v2243_v25 = vpop.xlane.xlu1 %2242 }
0x1183   :  { %v2253_v29 = vmul.f32 0.03125, %v2243_v25 }
0x1185   :  { %v2257_v34 = vmul.f32 %v2253_v29, %v2253_v29  ;;  %v2263_v41 = vsub.f32 %v9723_v2, %v2253_v29 }
0x1186   :  { %v2240_v26 = vpop.xlane.xlu1 %2239 }
0x1187   :  { %v2252_v27 = vmul.f32 0.03125, %v2240_v26  ;;  %v9795_v26 = vld [vmem:[%s11139_s4 + $0x10] sm:$0xff] }
0x1189   :  { %v2256_v30 = vmul.f32 %v2252_v27, %v2252_v27  ;;  %v2262_v46 = vsub.f32 %v9726_v0, %v2252_v27 }
0x118a   :  { %v2248_v28 = vpop.xlane.xlu1 %2247 }
0x118b   :  { %v2254_v31 = vmul.f32 0.03125, %v2248_v28  ;;  %v9801_v28 = vld [vmem:[%s11139_s4 + $0x8] sm:$0xff] }
0x118d   :  { %v2258_v32 = vsub.f32 %v2254_v31, %v2256_v30  ;;  %v9807_v31 = vld [vmem:[%s11139_s4] sm:$0xff] }
0x118e   :  { %v2251_v33 = vpop.xlane.xlu1 %2250 }
0x118f   :  { %v2260_v37 = vmax.f32 %v2258_v32, 0.0  ;;  %v2255_v39 = vmul.f32 0.03125, %v2251_v33 }
0x1191   :  { %v2264_v35 = vadd.f32 1e-05, %v2260_v37  ;;  %v2259_v45 = vsub.f32 %v2255_v39, %v2257_v34  ;;  %v9814_v34 = vld [vmem:[%s11138_s3] sm:$0xff]  ;;  %v9821_v37 = vld [vmem:[%s11138_s3 + $0x8] sm:$0xff]  ;;  %v9828_v39 = vld [vmem:[%s11138_s3 + $0x10] sm:$0xff] }
0x1193   :  { %8608 = vrsqrt.f32 %v2264_v35  ;;  %v2261_v36 = vmax.f32 %v2259_v45, 0.0  ;;  %v9835_v35 = vld [vmem:[%s11138_s3 + $0x18] sm:$0xff]  ;;  %v9842_v45 = vld [vmem:[%s11138_s3 + $0x20] sm:$0xff] }
0x1195   :  { %v2265_v63 = vadd.f32 1e-05, %v2261_v36  ;;  %v9849_v36 = vld [vmem:[%s11138_s3 + $0x28] sm:$0xff] }
0x1197   :  { %8610 = vrsqrt.f32 %v2265_v63  ;;  %v9856_v63 = vld [vmem:[%s11138_s3 + $0x30] sm:$0xff] }
0x11a0   :  { %v8609_v60 = vpop.eup %8608 }
0x11a1   :  { %v2268_v56 = vmul.f32 %v8609_v60, %v2262_v46  ;;  %v9863_v46 = vld [vmem:[%s11138_s3 + $0x38] sm:$0xff]  ;;  %v9870_v60 = vld [vmem:[%s11138_s3 + $0x40] sm:$0xff] }
0x11a3   :  { %v2276_v51 = vmul.f32 %v6550_v61, %v2268_v56  ;;  %v9884_v56 = vld [vmem:[%s11138_s3 + $0x50] sm:$0xff] }
0x11a4   :  { %v8611_v50 = vpop.eup %8610 }
0x11a5   :  { %v2269_v47 = vmul.f32 %v8611_v50, %v2263_v41  ;;  %v2284_v52 = vadd.f32 %v6551_v53, %v2276_v51  ;;  %v9898_v41 = vld [vmem:[%s11138_s3 + $0x60] sm:$0xff]  ;;  %v9905_v51 = vld [vmem:[%s11138_s3 + $0x68] sm:$0xff]  ;;  %v9912_v50 = vld [vmem:[%s11138_s3 + $0x70] sm:$0xff] }
0x11a7   :  { %v2277_v48 = vmul.f32 %v6550_v61, %v2269_v47  ;;  %7830 = vmatprep.mubr.msk.f32.mxu0 %vm104_vm0, %v2284_v52  ;;  %v9877_v61 = vld [vmem:[%s11138_s3 + $0x48] sm:$0xff]  ;;  %v9919_v47 = vld [vmem:[%s11138_s3 + $0x78] sm:$0xff] }
0x11a9   :  { %v2285_v54 = vadd.f32 %v6551_v53, %v2277_v48  ;;  %v9891_v53 = vld [vmem:[%s11138_s3 + $0x58] sm:$0xff] }
0x11ab   :  { %7831 = vmatmul.mubr.msk.f32.vlgmr.msra.gmra.mxu0 %vm104_vm0, %v2285_v54  ;;  %v9926_v54 = vld [vmem:[%s11168_s25] sm:$0xff] }
0x11ac   :  { %7834 = vmatpush3.msra.mxu0 %v9753_v24  ;;  %11173 = vst [vmem:[#allocation6_spill] sm:$0xff] %v9926_v54 }
0x11ad   :  { %7835 = vmatprep.subr.mxu0 %v9770_v55 }
0x11ae   :  { %7836 = vmatpush3.msra.mxu0 %v9770_v55 }
0x126b   :  { %v7832_v18 = vpop.f32.mrf.mxu0 }
0x126c   :  { %v2377_v19 = vadd.f32 %v7832_v18, %v6557_v59 }
0x126d   :  { %v2371_v20 = vpop.f32.mrf.mxu0 }
0x126e   :  { %v2372_v1 = vadd.f32 %v6557_v59, %v2371_v20  ;;  %2384 = vrot.lane.b32.xlu1 %v2377_v19, %s8790_s0  ;;  %v9935_v20 = vld [vmem:[%s11168_s25 + $0x8] sm:$0xff] }
0x126f   :  { %11174 = vst [vmem:[#allocation5_spill] sm:$0xff] %v9935_v20 }
0x1270   :  { %2382 = vrot.lane.b32.xlu0 %v2372_v1, %s8790_s0 }
0x1274   :  { %2612 = vrot.lane.b32.xlu0 %v2377_v19, %s8791_s19 }
0x1278   :  { %2610 = vrot.lane.b32.xlu0 %v2372_v1, %s8791_s19 }
0x12e0   :  { %v2385_v3 = vpop.permute.xlu1 %2384 }
0x12e2   :  { %v2383_v42 = vpop.permute.xlu0 %2382 }
0x12e3   :  { %2388 = vxpose.xlu1.b32.start [1/2] (short) (narrow) %v2383_v42, 32 }
0x12e6   :  { %v2613_v30 = vpop.permute.xlu0 %2612 }
0x12e7   :  { %2389 = vxpose.xlu1.b32.end [2/2] (short) (narrow) %v2385_v3, 32 }
0x12ea   :  { %v2611_v33 = vpop.permute.xlu0 %2610 }
0x135f   :  { %v2404_v43 = vpop.trf.xlu1 }
0x1360   :  { %7837 = vmatprep.mubr.msk.f32.mxu0 %vm285_vm1, %v2404_v43 }
0x1363   :  { %v2405_v40 = vpop.trf.xlu1 }
0x1364   :  { %7838 = vmatmul.mubr.msk.f32.vlgmr.msra.gmra.mxu0 %vm285_vm1, %v2405_v40 }
0x1367   :  { %v2406_v57 = vpop.trf.xlu1 }
0x1368   :  { %7840 = vmatprep.mubr.msk.f32.mxu0 %vm285_vm1, %v2406_v57 }
0x136b   :  { %v2407_v44 = vpop.trf.xlu1 }
0x136c   :  { %7841 = vmatmul.mubr.msk.f32.gmra.mxu0 %vm285_vm1, %v2407_v44 }
0x136d   :  { %7851 = vmatprep.mubr.msk.f32.mxu0 %vm104_vm0, %v2372_v1 }
0x1424   :  { %v7839_v62 = vpop.f32.mrf.mxu0 }
0x1425   :  { %v2518_v29 = vmul.f32 %v9801_v28, %v7839_v62 }
0x1426   :  { %v2498_v5 = vpop.f32.mrf.mxu0 }
0x1427   :  { %v2517_v32 = vmul.f32 %v9807_v31, %v2498_v5 }
0x142c   :  { %v7842_v21 = vpop.f32.mrf.mxu0 }
0x142d   :  { %v2520_v23 = vmul.f32 %v9789_v22, %v7842_v21 }
0x142e   :  { %v2508_v25 = vpop.f32.mrf.mxu0 }
0x142f   :  { %v2519_v27 = vmul.f32 %v9795_v26, %v2508_v25  ;;  %7843 = vmatprep.subr.mxu0 %v2520_v23 }
0x1430   :  { %7844 = vmatpush3.msra.mxu0 %v2520_v23 }
0x1431   :  { %7845 = vmatprep.subr.mxu0 %v2519_v27 }
0x1432   :  { %7846 = vmatpush3.msra.mxu0 %v2519_v27 }
0x1433   :  { %7847 = vmatprep.subr.mxu0 %v2518_v29 }
0x1434   :  { %7848 = vmatpush3.msra.mxu0 %v2518_v29 }
0x1435   :  { %7849 = vmatprep.subr.mxu0 %v2517_v32 }
0x1436   :  { %7850 = vmatpush3.msra.mxu0 %v2517_v32 }
0x1437   :  { %7852 = vmatmul.mubr.msk.f32.vlgmr.msra.gmra.mxu0 %vm104_vm0, %v2377_v19  ;;  %7854 = vmatprep.subr.mxu0 %v2613_v30 }
0x1438   :  { %7855 = vmatpush3.msra.mxu0 %v2613_v30  ;;  %7858 = vmatprep.mubr.msk.f32.mxu0 %vm285_vm1, %v9814_v34 }
0x1439   :  { %7856 = vmatprep.subr.mxu0 %v2611_v33 }
0x143a   :  { %7857 = vmatpush3.msra.mxu0 %v2611_v33 }
0x143b   :  { %7859 = vmatmul.mubr.msk.f32.vlgmr.msra.gmra.mxu0 %vm285_vm1, %v9821_v37 }
0x143c   :  { %7861 = vmatprep.mubr.msk.f32.mxu0 %vm285_vm1, %v9828_v39 }
0x143f   :  { %7862 = vmatmul.mubr.msk.f32.gmra.mxu0 %vm285_vm1, %v9835_v35 }
0x1440   :  { %7864 = vmatprep.mubr.msk.f32.mxu0 %vm285_vm1, %v9842_v45 }
0x1443   :  { %7865 = vmatmul.mubr.msk.f32.gmra.mxu0 %vm285_vm1, %v9849_v36 }
0x1444   :  { %7867 = vmatprep.mubr.msk.f32.mxu0 %vm285_vm1, %v9856_v63 }
0x1447   :  { %7868 = vmatmul.mubr.msk.f32.gmra.mxu0 %vm285_vm1, %v9863_v46 }
0x1448   :  { %7870 = vmatprep.mubr.msk.f32.mxu0 %vm285_vm1, %v9870_v60 }
0x144b   :  { %7871 = vmatmul.mubr.msk.f32.gmra.mxu0 %vm285_vm1, %v9877_v61 }
0x144c   :  { %7873 = vmatprep.mubr.msk.f32.mxu0 %vm285_vm1, %v9884_v56 }
0x144f   :  { %7874 = vmatmul.mubr.msk.f32.gmra.mxu0 %vm285_vm1, %v9891_v53 }
0x1450   :  { %7876 = vmatprep.mubr.msk.f32.mxu0 %vm285_vm1, %v9898_v41 }
0x1453   :  { %7877 = vmatmul.mubr.msk.f32.gmra.mxu0 %vm285_vm1, %v9905_v51 }
0x1454   :  { %7879 = vmatprep.mubr.msk.f32.mxu0 %vm285_vm1, %v9912_v50 }
0x1457   :  { %7880 = vmatmul.mubr.msk.f32.gmra.mxu0 %vm285_vm1, %v9919_v47 }
0x14f7   :  { %v7853_v52 = vpop.f32.mrf.mxu0 }
0x14f8   :  { %v9938_v1 = vadd.f32 %v9935_v20, %v7853_v52 }
0x14f9   :  { %v2591_v48 = vpop.f32.mrf.mxu0 }
0x14fa   :  { %v9929_v59 = vadd.f32 %v9926_v54, %v2591_v48 }
0x14fb   :  { %v7860_v18 = vpop.f32.mrf.mxu0 }
0x14fc   :  { %2600 = vmax.xlane.f32.xlu0 %v9929_v59 }
0x14fd   :  { %v2682_v19 = vpop.f32.mrf.mxu0 }
0x14ff   :  { %v7863_v42 = vpop.f32.mrf.mxu0 }
0x1500   :  { %2602 = vmax.xlane.f32.xlu0 %v9938_v1 }
0x1501   :  { %v2692_v3 = vpop.f32.mrf.mxu0 }
0x1503   :  { %v7866_v43 = vpop.f32.mrf.mxu0 }
0x1505   :  { %v2702_v40 = vpop.f32.mrf.mxu0 }
0x1507   :  { %v7869_v57 = vpop.f32.mrf.mxu0 }
0x1509   :  { %v2712_v44 = vpop.f32.mrf.mxu0 }
0x150b   :  { %v7872_v62 = vpop.f32.mrf.mxu0 }
0x150d   :  { %v2722_v5 = vpop.f32.mrf.mxu0 }
0x150f   :  { %v7875_v21 = vpop.f32.mrf.mxu0 }
0x1510   :  { %v2772_v54 = vmul.f32 %v9638_v58, %v7875_v21  ;;  %v2767_v21 = vmul.f32 %v9673_v11, %v2712_v44 }
0x1511   :  { %v2732_v23 = vpop.f32.mrf.mxu0 }
0x1512   :  { %v2771_v20 = vmul.f32 %v9645_v8, %v2732_v23  ;;  %v2766_v23 = vmul.f32 %v9680_v12, %v7866_v43  ;;  %v2761_v43 = vmul.f32 %v9715_v17, %v2682_v19 }
0x1513   :  { %v7878_v25 = vpop.f32.mrf.mxu0 }
0x1514   :  { %v2774_v33 = vmul.f32 %v9624_v6, %v7878_v25  ;;  %v2769_v25 = vmul.f32 %v9659_v9, %v2722_v5 }
0x1515   :  { %v2742_v27 = vpop.f32.mrf.mxu0 }
0x1516   :  { %v2773_v48 = vmul.f32 %v9631_v7, %v2742_v27  ;;  %v2768_v27 = vmul.f32 %v9666_v10, %v7869_v57  ;;  %v2762_v57 = vmul.f32 %v9708_v16, %v7860_v18 }
0x1517   :  { %v7881_v29 = vpop.f32.mrf.mxu0 }
0x1518   :  { %v2776_v30 = vmul.f32 %v9607_v49, %v7881_v29  ;;  %v2770_v29 = vmul.f32 %v9652_v38, %v7872_v62  ;;  %v2765_v62 = vmul.f32 %v9687_v13, %v2702_v40 }
0x1519   :  { %v2752_v32 = vpop.f32.mrf.mxu0 }
0x151a   :  { %v2775_v52 = vmul.f32 %v9617_v4, %v2752_v32  ;;  %7882 = vmatprep.subr.mxu0 %v2776_v30  ;;  %v6585_v32 = vld [vmem:[%s11143_s8 + $0x58] sm:$0xff] }
0x151b   :  { %7883 = vmatpush3.msra.mxu0 %v2776_v30 }
0x151c   :  { %7884 = vmatprep.subr.mxu0 %v2775_v52 }
0x151d   :  { %7885 = vmatpush3.msra.mxu0 %v2775_v52 }
0x151e   :  { %7886 = vmatprep.subr.mxu0 %v2774_v33 }
0x151f   :  { %7887 = vmatpush3.msra.mxu0 %v2774_v33  ;;  %v6582_v33 = vld [vmem:[%s11143_s8 + $0x40] sm:$0xff] }
0x1520   :  { %7888 = vmatprep.subr.mxu0 %v2773_v48 }
0x1521   :  { %7889 = vmatpush3.msra.mxu0 %v2773_v48 }
0x1522   :  { %7890 = vmatprep.subr.mxu0 %v2772_v54 }
0x1523   :  { %7891 = vmatpush3.msra.mxu0 %v2772_v54  ;;  %v2764_v54 = vmul.f32 %v9694_v14, %v7863_v42 }
0x1524   :  { %7892 = vmatprep.subr.mxu0 %v2771_v20 }
0x1525   :  { %7893 = vmatpush3.msra.mxu0 %v2771_v20  ;;  %v2763_v20 = vmul.f32 %v9701_v15, %v2692_v3 }
0x1526   :  { %7894 = vmatprep.subr.mxu0 %v2770_v29 }
0x1527   :  { %7895 = vmatpush3.msra.mxu0 %v2770_v29 }
0x1528   :  { %7896 = vmatprep.subr.mxu0 %v2769_v25 }
0x1529   :  { %7897 = vmatpush3.msra.mxu0 %v2769_v25 }
0x152a   :  { %7898 = vmatprep.subr.mxu0 %v2768_v27 }
0x152b   :  { %7899 = vmatpush3.msra.mxu0 %v2768_v27 }
0x152c   :  { %7900 = vmatprep.subr.mxu0 %v2767_v21 }
0x152d   :  { %7901 = vmatpush3.msra.mxu0 %v2767_v21 }
0x152e   :  { %7902 = vmatprep.subr.mxu0 %v2766_v23 }
0x152f   :  { %7903 = vmatpush3.msra.mxu0 %v2766_v23 }
0x1530   :  { %7904 = vmatprep.subr.mxu0 %v2765_v62 }
0x1531   :  { %7905 = vmatpush3.msra.mxu0 %v2765_v62 }
0x1532   :  { %7906 = vmatprep.subr.mxu0 %v2764_v54 }
0x1533   :  { %7907 = vmatpush3.msra.mxu0 %v2764_v54 }
0x1534   :  { %7908 = vmatprep.subr.mxu0 %v2763_v20 }
0x1535   :  { %7909 = vmatpush3.msra.mxu0 %v2763_v20  ;;  %v6589_v20 = vld [vmem:[%s11144_s9 + $0x2] ss:$0 sm:$0xff] }
0x1536   :  { %7910 = vmatprep.subr.mxu0 %v2762_v57 }
0x1537   :  { %7911 = vmatpush3.msra.mxu0 %v2762_v57 }
0x1538   :  { %7912 = vmatprep.subr.mxu0 %v2761_v43 }
0x1539   :  { %7913 = vmatpush3.msra.mxu0 %v2761_v43 }
0x153a   :  { %7952 = vmatprep.subr.mxu0 %v6585_v32 }
0x1585   :  { %v2601_v40 = vpop.xlane.xlu0 %2600 }
0x1586   :  { %v2604_v42 = vsub.f32 %v9929_v59, %v2601_v40  ;;  %v6584_v59 = vld [vmem:[%s11143_s8 + $0x50] sm:$0xff] }
0x1588   :  { %v2606_v44 = vmul.f32 1.442695, %v2604_v42 }
0x1589   :  { %v2603_v5 = vpop.xlane.xlu0 %2602 }
0x158a   :  { %8612 = vpow2.f32 %v2606_v44  ;;  %v2605_v3 = vsub.f32 %v9938_v1, %v2603_v5  ;;  %v6583_v1 = vld [vmem:[%s11143_s8 + $0x48] sm:$0xff] }
0x158c   :  { %v2608_v30 = vmul.f32 1.442695, %v2605_v3 }
0x158e   :  { %8614 = vpow2.f32 %v2608_v30 }
0x1597   :  { %v8613_v18 = vpop.eup %8612 }
0x1598   :  { %7914 = vmatprep.mubr.f32.mxu0 %v8613_v18  ;;  %7949 = vmatprep.mubr.f32.mxu1 %v8613_v18 }
0x159b   :  { %v8615_v19 = vpop.eup %8614 }
0x159c   :  { %7915 = vmatmul.mubr.f32.vlgmr.msra.gmra.mxu0 %v8615_v19  ;;  %7950 = vmatmul.mubr.f32.vlgmr.msra.gmra.mxu1 %v8615_v19  ;;  %v6597_v19 = vld [vmem:[%s11145_s10 + $0x58] sm:$0xff] }
0x159d   :  { %7953 = vmatpush3.msra.mxu0 %v6585_v32  ;;  %v6596_v32 = vld [vmem:[%s11145_s10 + $0x50] sm:$0xff]  ;;  %7963 = vmatprep.subr.mxu1 %v6597_v19 }
0x159e   :  { %7954 = vmatprep.subr.mxu0 %v6584_v59  ;;  %7964 = vmatpush3.msra.mxu1 %v6597_v19 }
0x159f   :  { %7955 = vmatpush3.msra.mxu0 %v6584_v59  ;;  %v6595_v59 = vld [vmem:[%s11145_s10 + $0x48] sm:$0xff]  ;;  %7965 = vmatprep.subr.mxu1 %v6596_v32 }
0x15a0   :  { %7956 = vmatprep.subr.mxu0 %v6583_v1  ;;  %7966 = vmatpush3.msra.mxu1 %v6596_v32 }
0x15a1   :  { %7957 = vmatpush3.msra.mxu0 %v6583_v1  ;;  %7967 = vmatprep.subr.mxu1 %v6595_v59  ;;  %v6594_v1 = vld [vmem:[%s11145_s10 + $0x40] sm:$0xff] }
0x15a2   :  { %7958 = vmatprep.subr.mxu0 %v6582_v33  ;;  %7968 = vmatpush3.msra.mxu1 %v6595_v59 }
0x15a3   :  { %7959 = vmatpush3.msra.mxu0 %v6582_v33  ;;  %7969 = vmatprep.subr.mxu1 %v6594_v1  ;;  %v6617_v33 = vld [vmem:[%s11147_s12 + $0x178] sm:$0xff] }
0x15a4   :  { %7970 = vmatpush3.msra.mxu1 %v6594_v1  ;;  %7974 = vmatprep.subr.mxu0 %v6617_v33 }
0x165c   :  { %v7951_v52 = vpop.f32.mrf.mxu1  ;;  %v7916_v29 = vpop.f32.mrf.mxu0 }
0x165d   :  { %8616 = vrcp.f32 %v7951_v52  ;;  %v6616_v52 = vld [vmem:[%s11147_s12 + $0x170] sm:$0xff] }
0x165e   :  { %v2918_v48 = vpop.f32.mrf.mxu1  ;;  %v2843_v21 = vpop.f32.mrf.mxu0 }
0x165f   :  { %8618 = vrcp.f32 %v2918_v48  ;;  %v6615_v48 = vld [vmem:[%s11147_s12 + $0x168] sm:$0xff] }
0x166a   :  { %v8617_v25 = vpop.eup %8616 }
0x166b   :  { %v2930_v62 = vmul.f32 %v8617_v25, %v7916_v29  ;;  %v6614_v29 = vld [vmem:[%s11147_s12 + $0x160] sm:$0xff]  ;;  %v6613_v25 = vld [vmem:[%s11147_s12 + $0x158] sm:$0xff] }
0x166c   :  { %v8619_v27 = vpop.eup %8618 }
0x166d   :  { %v2929_v23 = vmul.f32 %v8619_v27, %v2843_v21  ;;  %v6612_v27 = vld [vmem:[%s11147_s12 + $0x150] sm:$0xff]  ;;  %v6611_v21 = vld [vmem:[%s11147_s12 + $0x148] sm:$0xff] }
0x166f   :  { %7960 = vmatprep.mubr.msk.f32.mxu0 %vm104_vm0, %v2929_v23  ;;  %v6610_v23 = vld [vmem:[%s11147_s12 + $0x140] sm:$0xff] }
0x1670   :  { %7961 = vmatmul.mubr.msk.f32.vlgmr.msra.gmra.mxu0 %vm104_vm0, %v2930_v62  ;;  %v6609_v62 = vld [vmem:[%s11147_s12 + $0x138] sm:$0xff] }
0x1671   :  { %7975 = vmatpush3.msra.mxu0 %v6617_v33 }
0x1672   :  { %7976 = vmatprep.subr.mxu0 %v6616_v52 }
0x1673   :  { %7977 = vmatpush3.msra.mxu0 %v6616_v52 }
0x1674   :  { %7978 = vmatprep.subr.mxu0 %v6615_v48 }
0x1675   :  { %7979 = vmatpush3.msra.mxu0 %v6615_v48 }
0x1676   :  { %7980 = vmatprep.subr.mxu0 %v6614_v29 }
0x1677   :  { %7981 = vmatpush3.msra.mxu0 %v6614_v29 }
0x1678   :  { %7982 = vmatprep.subr.mxu0 %v6613_v25 }
0x1679   :  { %7983 = vmatpush3.msra.mxu0 %v6613_v25 }
0x167a   :  { %7984 = vmatprep.subr.mxu0 %v6612_v27 }
0x167b   :  { %7985 = vmatpush3.msra.mxu0 %v6612_v27 }
0x167c   :  { %7986 = vmatprep.subr.mxu0 %v6611_v21 }
0x167d   :  { %7987 = vmatpush3.msra.mxu0 %v6611_v21  ;;  %v6592_v21 = vld [vmem:[%s11151_s16 + $0x2] ss:$0 sm:$0xff] }
0x167e   :  { %7988 = vmatprep.subr.mxu0 %v6610_v23 }
0x167f   :  { %7989 = vmatpush3.msra.mxu0 %v6610_v23 }
0x1680   :  { %7990 = vmatprep.subr.mxu0 %v6609_v62 }
0x1681   :  { %7991 = vmatpush3.msra.mxu0 %v6609_v62  ;;  %v6593_v62 = vld [vmem:[%s11152_s17 + $0x2] ss:$0 sm:$0xff] }
0x1730   :  { %v7962_v54 = vpop.f32.mrf.mxu0 }
0x1731   :  { %v3018_v57 = vadd.f32 %v7962_v54, %v9723_v2  ;;  %v6608_v54 = vld [vmem:[%s11147_s12 + $0x130] sm:$0xff] }
0x1732   :  { %v3008_v43 = vpop.f32.mrf.mxu0  ;;  %7992 = vmatprep.subr.mxu0 %v6608_v54 }
0x1733   :  { %v9977_v40 = vadd.f32 %v6589_v20, %v3018_v57  ;;  %v3017_v42 = vadd.f32 %v3008_v43, %v9726_v0  ;;  %7993 = vmatpush3.msra.mxu0 %v6608_v54  ;;  %v6606_v57 = vld [vmem:[%s11147_s12 + $0x120] sm:$0xff] }
0x1735   :  { %v9980_v44 = vadd.f32 %v6589_v20, %v3017_v42  ;;  %v3036_v5 = vsel %vm104_vm0, %v9977_v40, 0.0  ;;  %v3040_v18 = vmul.f32 %v9977_v40, %v9977_v40  ;;  %v6607_v20 = vld [vmem:[%s11147_s12 + $0x128] sm:$0xff] }
0x1736   :  { %3037 = vadd.xlane.f32.xlu0 %v3036_v5  ;;  %7994 = vmatprep.subr.mxu0 %v6607_v20 }
0x1737   :  { %v3033_v3 = vsel %vm104_vm0, %v9980_v44, 0.0  ;;  %v3039_v30 = vmul.f32 %v9980_v44, %v9980_v44  ;;  %v3044_v0 = vsel %vm104_vm0, %v3040_v18, 0.0  ;;  %7995 = vmatpush3.msra.mxu0 %v6607_v20 }
0x1738   :  { %3034 = vadd.xlane.f32.xlu1 %v3033_v3  ;;  %7996 = vmatprep.subr.mxu0 %v6606_v57 }
0x1739   :  { %v3041_v2 = vsel %vm104_vm0, %v3039_v30, 0.0  ;;  %7997 = vmatpush3.msra.mxu0 %v6606_v57 }
0x173a   :  { %3042 = vadd.xlane.f32.xlu0 %v3041_v2 }
0x173e   :  { %3045 = vadd.xlane.f32.xlu0 %v3044_v0 }
0x17bf   :  { %v3038_v43 = vpop.xlane.xlu0 %3037 }
0x17c0   :  { %v3048_v30 = vmul.f32 0.03125, %v3038_v43 }
0x17c1   :  { %v3035_v42 = vpop.xlane.xlu1 %3034 }
0x17c2   :  { %v3047_v5 = vmul.f32 0.03125, %v3035_v42  ;;  %v3052_v32 = vmul.f32 %v3048_v30, %v3048_v30  ;;  %v3058_v54 = vsub.f32 %v9977_v40, %v3048_v30  ;;  %v6604_v30 = vld [vmem:[%s11147_s12 + $0x110] sm:$0xff] }
0x17c3   :  { %v3043_v3 = vpop.xlane.xlu0 %3042 }
0x17c4   :  { %v3051_v2 = vmul.f32 %v3047_v5, %v3047_v5  ;;  %v3049_v18 = vmul.f32 0.03125, %v3043_v3  ;;  %v3057_v25 = vsub.f32 %v9980_v44, %v3047_v5 }
0x17c6   :  { %v3053_v0 = vsub.f32 %v3049_v18, %v3051_v2  ;;  %v6605_v2 = vld [vmem:[%s11147_s12 + $0x118] sm:$0xff]  ;;  %v6603_v18 = vld [vmem:[%s11147_s12 + $0x108] sm:$0xff] }
0x17c7   :  { %v3046_v19 = vpop.xlane.xlu0 %3045  ;;  %7998 = vmatprep.subr.mxu0 %v6605_v2 }
0x17c8   :  { %v3055_v59 = vmax.f32 %v3053_v0, 0.0  ;;  %v3050_v1 = vmul.f32 0.03125, %v3046_v19  ;;  %7999 = vmatpush3.msra.mxu0 %v6605_v2  ;;  %v6602_v0 = vld [vmem:[%s11147_s12 + $0x100] sm:$0xff] }
0x17c9   :  { %8000 = vmatprep.subr.mxu0 %v6604_v30  ;;  %v6599_v19 = vld [vmem:[%s11146_s11 + $0x2] ss:$0 sm:$0xff] }
0x17ca   :  { %v3059_v33 = vadd.f32 1e-05, %v3055_v59  ;;  %v3054_v52 = vsub.f32 %v3050_v1, %v3052_v32  ;;  %8001 = vmatpush3.msra.mxu0 %v6604_v30 }
0x17cb   :  { %8002 = vmatprep.subr.mxu0 %v6603_v18 }
0x17cc   :  { %8620 = vrsqrt.f32 %v3059_v33  ;;  %v3056_v48 = vmax.f32 %v3054_v52, 0.0  ;;  %8003 = vmatpush3.msra.mxu0 %v6603_v18 }
0x17cd   :  { %8004 = vmatprep.subr.mxu0 %v6602_v0 }
0x17ce   :  { %v3060_v29 = vadd.f32 1e-05, %v3056_v48  ;;  %8005 = vmatpush3.msra.mxu0 %v6602_v0 }
0x17cf   :  { %8104 = vmatprep.subr.mxu0 %v9607_v49 }
0x17d0   :  { %8622 = vrsqrt.f32 %v3060_v29 }
0x17d9   :  { %v8621_v27 = vpop.eup %8620 }
0x17da   :  { %v3063_v23 = vmul.f32 %v8621_v27, %v3057_v25 }
0x17dc   :  { %v3071_v20 = vmul.f32 %v6592_v21, %v3063_v23 }
0x17dd   :  { %v8623_v57 = vpop.eup %8622 }
0x17de   :  { %v3064_v43 = vmul.f32 %v8623_v57, %v3058_v54  ;;  %v3079_v42 = vadd.f32 %v6593_v62, %v3071_v20 }
0x17e0   :  { %v3072_v3 = vmul.f32 %v6592_v21, %v3064_v43  ;;  %7971 = vmatprep.mubr.msk.f32.mxu1 %vm104_vm0, %v3079_v42 }
0x17e2   :  { %v3080_v5 = vadd.f32 %v6593_v62, %v3072_v3 }
0x17e4   :  { %7972 = vmatmul.mubr.msk.f32.vlgmr.msra.gmra.mxu1 %vm104_vm0, %v3080_v5 }
0x18a4   :  { %v7973_v32 = vpop.f32.mrf.mxu1 }
0x18a5   :  { %v3172_v59 = vadd.f32 %v7973_v32, %v6599_v19 }
0x18a6   :  { %v3166_v1 = vpop.f32.mrf.mxu1 }
0x18a7   :  { %v3167_v33 = vadd.f32 %v6599_v19, %v3166_v1  ;;  %v3176_v48 = vmax.f32 %v3172_v59, 0.0  ;;  %v6622_v19 = vld [vmem:[%s11149_s14 + $0x3] ss:$0 sm:$0xff] }
0x18a8   :  { %v6623_v59 = vld [vmem:[%s11150_s15 + $0x3] ss:$0 sm:$0xff] }
0x18a9   :  { %v3175_v52 = vmax.f32 %v3167_v33, 0.0 }
0x18ab   :  { %8006 = vmatprep.mubr.f32.mxu0 %v3175_v52 }
0x18ac   :  { %8007 = vmatmul.mubr.f32.vlgmr.msra.gmra.mxu0 %v3176_v48 }
0x18ad   :  { %8105 = vmatpush3.msra.mxu0 %v9607_v49 }
0x18ae   :  { %8106 = vmatprep.subr.mxu0 %v9617_v4 }
0x18af   :  { %8107 = vmatpush3.msra.mxu0 %v9617_v4  ;;  %v6619_v4 = vld [vmem:[%s11148_s13 + $0x2] ss:$0 sm:$0xff] }
0x18b0   :  { %8108 = vmatprep.subr.mxu0 %v9624_v6 }
0x18b1   :  { %8109 = vmatpush3.msra.mxu0 %v9624_v6 }
0x18b2   :  { %8110 = vmatprep.subr.mxu0 %v9631_v7 }
0x18b3   :  { %8111 = vmatpush3.msra.mxu0 %v9631_v7 }
0x18b4   :  { %8112 = vmatprep.subr.mxu0 %v9638_v58 }
0x18b5   :  { %8113 = vmatpush3.msra.mxu0 %v9638_v58 }
0x18b6   :  { %8114 = vmatprep.subr.mxu0 %v9645_v8 }
0x18b7   :  { %8115 = vmatpush3.msra.mxu0 %v9645_v8 }
0x18b8   :  { %8116 = vmatprep.subr.mxu0 %v9652_v38 }
0x18b9   :  { %8117 = vmatpush3.msra.mxu0 %v9652_v38 }
0x18ba   :  { %8118 = vmatprep.subr.mxu0 %v9659_v9 }
0x18bb   :  { %8119 = vmatpush3.msra.mxu0 %v9659_v9 }
0x18bc   :  { %8120 = vmatprep.subr.mxu0 %v9666_v10 }
0x18bd   :  { %8121 = vmatpush3.msra.mxu0 %v9666_v10 }
0x18be   :  { %8122 = vmatprep.subr.mxu0 %v9673_v11 }
0x18bf   :  { %8123 = vmatpush3.msra.mxu0 %v9673_v11 }
0x18c0   :  { %8124 = vmatprep.subr.mxu0 %v9680_v12 }
0x18c1   :  { %8125 = vmatpush3.msra.mxu0 %v9680_v12 }
0x18c2   :  { %8126 = vmatprep.subr.mxu0 %v9687_v13 }
0x18c3   :  { %8127 = vmatpush3.msra.mxu0 %v9687_v13 }
0x18c4   :  { %8128 = vmatprep.subr.mxu0 %v9694_v14 }
0x18c5   :  { %8129 = vmatpush3.msra.mxu0 %v9694_v14 }
0x18c6   :  { %8130 = vmatprep.subr.mxu0 %v9701_v15 }
0x18c7   :  { %8131 = vmatpush3.msra.mxu0 %v9701_v15  ;;  %v6627_v15 = vld [vmem:[%s11141_s6 + $0x78] sm:$0xff] }
0x18c8   :  { %8132 = vmatprep.subr.mxu0 %v9708_v16  ;;  %8009 = vmatprep.subr.mxu1 %v6627_v15 }
0x18c9   :  { %8133 = vmatpush3.msra.mxu0 %v9708_v16  ;;  %v6626_v16 = vld [vmem:[%s11141_s6 + $0x70] sm:$0xff]  ;;  %8010 = vmatpush3.msra.mxu1 %v6627_v15 }
0x18ca   :  { %8134 = vmatprep.subr.mxu0 %v9715_v17  ;;  %8011 = vmatprep.subr.mxu1 %v6626_v16 }
0x18cb   :  { %8135 = vmatpush3.msra.mxu0 %v9715_v17  ;;  %v6625_v17 = vld [vmem:[%s11141_s6 + $0x68] sm:$0xff]  ;;  %8012 = vmatpush3.msra.mxu1 %v6626_v16 }
0x18cc   :  { %8013 = vmatprep.subr.mxu1 %v6625_v17 }
0x18cd   :  { %8014 = vmatpush3.msra.mxu1 %v6625_v17 }
0x196c   :  { %v8008_v49 = vpop.f32.mrf.mxu0 }
0x196d   :  { %v3270_v6 = vadd.f32 %v8008_v49, %v9977_v40  ;;  %v6624_v40 = vld [vmem:[%s11141_s6 + $0x60] sm:$0xff] }
0x196e   :  { %v3260_v7 = vpop.f32.mrf.mxu0  ;;  %8015 = vmatprep.subr.mxu1 %v6624_v40 }
0x196f   :  { %v10101_v58 = vadd.f32 %v6619_v4, %v3270_v6  ;;  %v3269_v8 = vadd.f32 %v3260_v7, %v9980_v44  ;;  %8016 = vmatpush3.msra.mxu1 %v6624_v40  ;;  %v6629_v7 = vld [vmem:[%s11142_s7 + $0x3] ss:$0 sm:$0xff] }
0x1970   :  { %8020 = vmatprep.subr.mxu1 %v9753_v24 }
0x1971   :  { %v10104_v38 = vadd.f32 %v6619_v4, %v3269_v8  ;;  %v3288_v9 = vsel %vm104_vm0, %v10101_v58, 0.0  ;;  %v3292_v13 = vmul.f32 %v10101_v58, %v10101_v58 }
0x1972   :  { %3289 = vadd.xlane.f32.xlu0 %v3288_v9 }
0x1973   :  { %v3285_v10 = vsel %vm104_vm0, %v10104_v38, 0.0  ;;  %v3291_v11 = vmul.f32 %v10104_v38, %v10104_v38  ;;  %v3296_v14 = vsel %vm104_vm0, %v3292_v13, 0.0 }
0x1975   :  { %v3293_v12 = vsel %vm104_vm0, %v3291_v11, 0.0 }
0x1976   :  { %3286 = vadd.xlane.f32.xlu0 %v3285_v10 }
0x197a   :  { %3294 = vadd.xlane.f32.xlu0 %v3293_v12 }
0x197e   :  { %3297 = vadd.xlane.f32.xlu0 %v3296_v14 }
0x19fb   :  { %v3290_v44 = vpop.xlane.xlu0 %3289 }
0x19fc   :  { %v3300_v21 = vmul.f32 0.03125, %v3290_v44 }
0x19fe   :  { %v3304_v57 = vmul.f32 %v3300_v21, %v3300_v21  ;;  %v3310_v1 = vsub.f32 %v10101_v58, %v3300_v21 }
0x19ff   :  { %v3287_v29 = vpop.xlane.xlu0 %3286 }
0x1a00   :  { %v3299_v25 = vmul.f32 0.03125, %v3287_v29 }
0x1a02   :  { %v3303_v23 = vmul.f32 %v3299_v25, %v3299_v25  ;;  %v3309_v18 = vsub.f32 %v10104_v38, %v3299_v25 }
0x1a03   :  { %v3295_v27 = vpop.xlane.xlu0 %3294 }
0x1a04   :  { %v3301_v62 = vmul.f32 0.03125, %v3295_v27 }
0x1a06   :  { %v3305_v54 = vsub.f32 %v3301_v62, %v3303_v23 }
0x1a07   :  { %v3298_v20 = vpop.xlane.xlu0 %3297 }
0x1a08   :  { %v3307_v43 = vmax.f32 %v3305_v54, 0.0  ;;  %v3302_v42 = vmul.f32 0.03125, %v3298_v20  ;;  %v10206_v20 = vld [vmem:[%s11140_s5 + $0x78] sm:$0xff] }
0x1a0a   :  { %v3311_v3 = vadd.f32 1e-05, %v3307_v43  ;;  %v3306_v5 = vsub.f32 %v3302_v42, %v3304_v57  ;;  %v10212_v42 = vld [vmem:[%s11140_s5 + $0x68] sm:$0xff] }
0x1a0c   :  { %8624 = vrsqrt.f32 %v3311_v3  ;;  %v3308_v2 = vmax.f32 %v3306_v5, 0.0  ;;  %v10218_v5 = vld [vmem:[%s11140_s5 + $0x70] sm:$0xff] }
0x1a0e   :  { %v3312_v30 = vadd.f32 1e-05, %v3308_v2 }
0x1a10   :  { %8626 = vrsqrt.f32 %v3312_v30  ;;  %v10224_v30 = vld [vmem:[%s11140_s5 + $0x60] sm:$0xff] }
0x1a19   :  { %v8625_v0 = vpop.eup %8624 }
0x1a1a   :  { %v3315_v32 = vmul.f32 %v8625_v0, %v3309_v18  ;;  %v10230_v0 = vld [vmem:[%s11140_s5 + $0x58] sm:$0xff] }
0x1a1c   :  { %v3323_v33 = vmul.f32 %v6622_v19, %v3315_v32  ;;  %v10236_v32 = vld [vmem:[%s11140_s5 + $0x50] sm:$0xff] }
0x1a1d   :  { %v8627_v52 = vpop.eup %8626 }
0x1a1e   :  { %v3316_v48 = vmul.f32 %v8627_v52, %v3310_v1  ;;  %v3331_v49 = vadd.f32 %v6623_v59, %v3323_v33  ;;  %v10242_v1 = vld [vmem:[%s11140_s5 + $0x48] sm:$0xff]  ;;  %v10248_v52 = vld [vmem:[%s11140_s5 + $0x40] sm:$0xff] }
0x1a20   :  { %v3324_v4 = vmul.f32 %v6622_v19, %v3316_v48  ;;  %8017 = vmatprep.mubr.msk.f32.mxu1 %vm104_vm0, %v3331_v49  ;;  %v10254_v49 = vld [vmem:[%s11140_s5 + $0x38] sm:$0xff] }
0x1a22   :  { %v3332_v6 = vadd.f32 %v6623_v59, %v3324_v4 }
0x1a24   :  { %8018 = vmatmul.mubr.msk.f32.vlgmr.msra.gmra.mxu1 %vm104_vm0, %v3332_v6  ;;  %v10260_v6 = vld [vmem:[%s11140_s5 + $0x30] sm:$0xff] }
0x1a25   :  { %8021 = vmatpush3.msra.mxu1 %v9753_v24 }
0x1a26   :  { %8022 = vmatprep.subr.mxu1 %v9770_v55 }
0x1a27   :  { %8023 = vmatpush3.msra.mxu1 %v9770_v55 }
0x1ae4   :  { %v8019_v8 = vpop.f32.mrf.mxu1 }
0x1ae5   :  { %v3424_v9 = vadd.f32 %v8019_v8, %v6629_v7  ;;  %v10266_v8 = vld [vmem:[%s11140_s5 + $0x28] sm:$0xff] }
0x1ae6   :  { %v3418_v10 = vpop.f32.mrf.mxu1 }
0x1ae7   :  { %v3419_v11 = vadd.f32 %v6629_v7, %v3418_v10  ;;  %3431 = vrot.lane.b32.xlu1 %v3424_v9, %s8790_s0  ;;  %v10272_v10 = vld [vmem:[%s11140_s5 + $0x20] sm:$0xff] }
0x1ae9   :  { %3429 = vrot.lane.b32.xlu0 %v3419_v11, %s8790_s0 }
0x1aeb   :  { %3659 = vrot.lane.b32.xlu1 %v3424_v9, %s8791_s19 }
0x1aef   :  { %3657 = vrot.lane.b32.xlu1 %v3419_v11, %s8791_s19 }
0x1b59   :  { %v3432_v12 = vpop.permute.xlu1 %3431 }
0x1b5b   :  { %v3430_v24 = vpop.permute.xlu0 %3429 }
0x1b5c   :  { %3435 = vxpose.xlu0.b32.start [1/2] (short) (narrow) %v3430_v24, 32  ;;  %v10278_v24 = vld [vmem:[%s11140_s5 + $0x18] sm:$0xff] }
0x1b5d   :  { %v3660_v21 = vpop.permute.xlu1 %3659 }
0x1b60   :  { %3436 = vxpose.xlu0.b32.end [2/2] (short) (narrow) %v3432_v12, 32 }
0x1bd8   :  { %v3451_v55 = vpop.trf.xlu0 }
0x1bd9   :  { %8024 = vmatprep.mubr.msk.f32.mxu1 %vm285_vm1, %v3451_v55  ;;  %v10284_v55 = vld [vmem:[%s11140_s5 + $0x10] sm:$0xff] }
0x1bdc   :  { %v3452_v13 = vpop.trf.xlu0 }
0x1bdd   :  { %8025 = vmatmul.mubr.msk.f32.vlgmr.msra.gmra.mxu1 %vm285_vm1, %v3452_v13 }
0x1be0   :  { %v3453_v14 = vpop.trf.xlu0 }
0x1be1   :  { %8027 = vmatprep.mubr.msk.f32.mxu1 %vm285_vm1, %v3453_v14  ;;  %v10290_v14 = vld [vmem:[%s11140_s5 + $0x8] sm:$0xff] }
0x1be4   :  { %v3454_v15 = vpop.trf.xlu0 }
0x1be5   :  { %8028 = vmatmul.mubr.msk.f32.gmra.mxu1 %vm285_vm1, %v3454_v15 }
0x1be6   :  { %8038 = vmatprep.mubr.msk.f32.mxu1 %vm104_vm0, %v3419_v11 }
0x1c9d   :  { %v8026_v16 = vpop.f32.mrf.mxu1 }
0x1c9e   :  { %v3565_v27 = vmul.f32 %v9801_v28, %v8026_v16  ;;  %v11175_v28 = vld [vmem:[#allocation5_spill] sm:$0xff]  ;;  %v10297_v16 = vld [vmem:[%s11140_s5] sm:$0xff] }
0x1c9f   :  { %v3545_v17 = vpop.f32.mrf.mxu1 }
0x1ca0   :  { %v3564_v23 = vmul.f32 %v9807_v31, %v3545_v17 }
0x1ca5   :  { %v8029_v40 = vpop.f32.mrf.mxu1 }
0x1ca6   :  { %v3567_v44 = vmul.f32 %v9789_v22, %v8029_v40  ;;  %v3658_v22 = vpop.permute.xlu1 %3657 }
0x1ca7   :  { %v3555_v29 = vpop.f32.mrf.mxu1 }
0x1ca8   :  { %v3566_v25 = vmul.f32 %v9795_v26, %v3555_v29  ;;  %8030 = vmatprep.subr.mxu1 %v3567_v44 }
0x1ca9   :  { %8031 = vmatpush3.msra.mxu1 %v3567_v44 }
0x1caa   :  { %8032 = vmatprep.subr.mxu1 %v3566_v25 }
0x1cab   :  { %8033 = vmatpush3.msra.mxu1 %v3566_v25 }
0x1cac   :  { %8034 = vmatprep.subr.mxu1 %v3565_v27 }
0x1cad   :  { %8035 = vmatpush3.msra.mxu1 %v3565_v27 }
0x1cae   :  { %8036 = vmatprep.subr.mxu1 %v3564_v23 }
0x1caf   :  { %8037 = vmatpush3.msra.mxu1 %v3564_v23 }
0x1cb0   :  { %8039 = vmatmul.mubr.msk.f32.vlgmr.msra.gmra.mxu1 %vm104_vm0, %v3424_v9  ;;  %8041 = vmatprep.subr.mxu1 %v3660_v21 }
0x1cb1   :  { %8042 = vmatpush3.msra.mxu1 %v3660_v21  ;;  %8045 = vmatprep.mubr.msk.f32.mxu1 %vm285_vm1, %v9814_v34 }
0x1cb2   :  { %8043 = vmatprep.subr.mxu1 %v3658_v22 }
0x1cb3   :  { %8044 = vmatpush3.msra.mxu1 %v3658_v22 }
0x1cb4   :  { %8046 = vmatmul.mubr.msk.f32.vlgmr.msra.gmra.mxu1 %vm285_vm1, %v9821_v37  ;;  %v11176_v37 = vld [vmem:[#allocation6_spill] sm:$0xff] }
0x1cb5   :  { %8048 = vmatprep.mubr.msk.f32.mxu1 %vm285_vm1, %v9828_v39 }
0x1cb8   :  { %8049 = vmatmul.mubr.msk.f32.gmra.mxu1 %vm285_vm1, %v9835_v35 }
0x1cb9   :  { %8051 = vmatprep.mubr.msk.f32.mxu1 %vm285_vm1, %v9842_v45 }
0x1cbc   :  { %8052 = vmatmul.mubr.msk.f32.gmra.mxu1 %vm285_vm1, %v9849_v36 }
0x1cbd   :  { %8054 = vmatprep.mubr.msk.f32.mxu1 %vm285_vm1, %v9856_v63 }
0x1cc0   :  { %8055 = vmatmul.mubr.msk.f32.gmra.mxu1 %vm285_vm1, %v9863_v46 }
0x1cc1   :  { %8057 = vmatprep.mubr.msk.f32.mxu1 %vm285_vm1, %v9870_v60 }
0x1cc4   :  { %8058 = vmatmul.mubr.msk.f32.gmra.mxu1 %vm285_vm1, %v9877_v61 }
0x1cc5   :  { %8060 = vmatprep.mubr.msk.f32.mxu1 %vm285_vm1, %v9884_v56 }
0x1cc8   :  { %8061 = vmatmul.mubr.msk.f32.gmra.mxu1 %vm285_vm1, %v9891_v53 }
0x1cc9   :  { %8063 = vmatprep.mubr.msk.f32.mxu1 %vm285_vm1, %v9898_v41 }
0x1ccc   :  { %8064 = vmatmul.mubr.msk.f32.gmra.mxu1 %vm285_vm1, %v9905_v51 }
0x1ccd   :  { %8066 = vmatprep.mubr.msk.f32.mxu1 %vm285_vm1, %v9912_v50 }
0x1cd0   :  { %8067 = vmatmul.mubr.msk.f32.gmra.mxu1 %vm285_vm1, %v9919_v47 }
0x1d70   :  { %v8040_v26 = vpop.f32.mrf.mxu1 }
0x1d71   :  { %v10192_v31 = vadd.f32 %v11175_v28, %v8040_v26  ;;  %v6657_v26 = vld [vmem:[%s11143_s8 + $0x78] sm:$0xff]  ;;  %v6656_v28 = vld [vmem:[%s11143_s8 + $0x70] sm:$0xff] }
0x1d72   :  { %v3638_v34 = vpop.f32.mrf.mxu1 }
0x1d73   :  { %v10195_v39 = vadd.f32 %v11176_v37, %v3638_v34  ;;  %3649 = vmax.xlane.f32.xlu0 %v10192_v31  ;;  %v6654_v34 = vld [vmem:[%s11143_s8 + $0x60] sm:$0xff] }
0x1d74   :  { %v10198_v35 = vpop.f32.mrf.mxu1 }
0x1d75   :  { %3647 = vmax.xlane.f32.xlu1 %v10195_v39  ;;  %v3809_v15 = vmul.f32 %v10290_v14, %v10198_v35 }
0x1d76   :  { %v10201_v45 = vpop.f32.mrf.mxu1 }
0x1d77   :  { %v3808_v17 = vmul.f32 %v10297_v16, %v10201_v45 }
0x1d78   :  { %v8050_v36 = vpop.f32.mrf.mxu1 }
0x1d79   :  { %v3811_v12 = vmul.f32 %v10278_v24, %v8050_v36 }
0x1d7a   :  { %v3739_v63 = vpop.f32.mrf.mxu1 }
0x1d7b   :  { %v3810_v13 = vmul.f32 %v10284_v55, %v3739_v63 }
0x1d7c   :  { %v8053_v46 = vpop.f32.mrf.mxu1 }
0x1d7d   :  { %v3813_v9 = vmul.f32 %v10266_v8, %v8053_v46 }
0x1d7e   :  { %v3749_v60 = vpop.f32.mrf.mxu1 }
0x1d7f   :  { %v3812_v11 = vmul.f32 %v10272_v10, %v3749_v60 }
0x1d80   :  { %v8056_v61 = vpop.f32.mrf.mxu1 }
0x1d81   :  { %v3815_v4 = vmul.f32 %v10254_v49, %v8056_v61 }
0x1d82   :  { %v3759_v56 = vpop.f32.mrf.mxu1 }
0x1d83   :  { %v3814_v7 = vmul.f32 %v10260_v6, %v3759_v56  ;;  %v6661_v56 = vld [vmem:[%s11144_s9 + $0x3] ss:$0 sm:$0xff] }
0x1d84   :  { %v8059_v53 = vpop.f32.mrf.mxu1 }
0x1d85   :  { %v3817_v33 = vmul.f32 %v10242_v1, %v8059_v53 }
0x1d86   :  { %v3769_v41 = vpop.f32.mrf.mxu1 }
0x1d87   :  { %v3816_v48 = vmul.f32 %v10248_v52, %v3769_v41 }
0x1d88   :  { %v8062_v51 = vpop.f32.mrf.mxu1 }
0x1d89   :  { %v3819_v19 = vmul.f32 %v10230_v0, %v8062_v51 }
0x1d8a   :  { %v3779_v50 = vpop.f32.mrf.mxu1 }
0x1d8b   :  { %v3818_v59 = vmul.f32 %v10236_v32, %v3779_v50 }
0x1d8c   :  { %v8065_v47 = vpop.f32.mrf.mxu1 }
0x1d8d   :  { %v3821_v3 = vmul.f32 %v10212_v42, %v8065_v47 }
0x1d8e   :  { %v3789_v62 = vpop.f32.mrf.mxu1 }
0x1d8f   :  { %v3820_v18 = vmul.f32 %v10224_v30, %v3789_v62 }
0x1d90   :  { %v8068_v54 = vpop.f32.mrf.mxu1 }
0x1d91   :  { %v3823_v57 = vmul.f32 %v10206_v20, %v8068_v54 }
0x1d92   :  { %v3799_v43 = vpop.f32.mrf.mxu1 }
0x1d93   :  { %v3822_v2 = vmul.f32 %v10218_v5, %v3799_v43  ;;  %8069 = vmatprep.subr.mxu1 %v3823_v57 }
0x1d94   :  { %8070 = vmatpush3.msra.mxu1 %v3823_v57 }
0x1d95   :  { %8071 = vmatprep.subr.mxu1 %v3822_v2 }
0x1d96   :  { %8072 = vmatpush3.msra.mxu1 %v3822_v2  ;;  %v6668_v2 = vld [vmem:[%s11145_s10 + $0x70] sm:$0xff] }
0x1d97   :  { %8073 = vmatprep.subr.mxu1 %v3821_v3 }
0x1d98   :  { %8074 = vmatpush3.msra.mxu1 %v3821_v3  ;;  %v6669_v3 = vld [vmem:[%s11145_s10 + $0x78] sm:$0xff] }
0x1d99   :  { %8075 = vmatprep.subr.mxu1 %v3820_v18  ;;  %8150 = vmatprep.subr.mxu0 %v6669_v3 }
0x1d9a   :  { %8076 = vmatpush3.msra.mxu1 %v3820_v18  ;;  %v6667_v18 = vld [vmem:[%s11145_s10 + $0x68] sm:$0xff] }
0x1d9b   :  { %8077 = vmatprep.subr.mxu1 %v3819_v19 }
0x1d9c   :  { %8078 = vmatpush3.msra.mxu1 %v3819_v19  ;;  %v6666_v19 = vld [vmem:[%s11145_s10 + $0x60] sm:$0xff] }
0x1d9d   :  { %8079 = vmatprep.subr.mxu1 %v3818_v59 }
0x1d9e   :  { %8080 = vmatpush3.msra.mxu1 %v3818_v59  ;;  %v6689_v59 = vld [vmem:[%s11147_s12 + $0x1f8] sm:$0xff] }
0x1d9f   :  { %8081 = vmatprep.subr.mxu1 %v3817_v33 }
0x1da0   :  { %8082 = vmatpush3.msra.mxu1 %v3817_v33  ;;  %v6688_v33 = vld [vmem:[%s11147_s12 + $0x1f0] sm:$0xff] }
0x1da1   :  { %8083 = vmatprep.subr.mxu1 %v3816_v48 }
0x1da2   :  { %8084 = vmatpush3.msra.mxu1 %v3816_v48  ;;  %v6687_v48 = vld [vmem:[%s11147_s12 + $0x1e8] sm:$0xff] }
0x1da3   :  { %8085 = vmatprep.subr.mxu1 %v3815_v4 }
0x1da4   :  { %8086 = vmatpush3.msra.mxu1 %v3815_v4  ;;  %v6686_v4 = vld [vmem:[%s11147_s12 + $0x1e0] sm:$0xff] }
0x1da5   :  { %8087 = vmatprep.subr.mxu1 %v3814_v7 }
0x1da6   :  { %8088 = vmatpush3.msra.mxu1 %v3814_v7  ;;  %v6685_v7 = vld [vmem:[%s11147_s12 + $0x1d8] sm:$0xff] }
0x1da7   :  { %8089 = vmatprep.subr.mxu1 %v3813_v9 }
0x1da8   :  { %8090 = vmatpush3.msra.mxu1 %v3813_v9  ;;  %v6684_v9 = vld [vmem:[%s11147_s12 + $0x1d0] sm:$0xff] }
0x1da9   :  { %8091 = vmatprep.subr.mxu1 %v3812_v11 }
0x1daa   :  { %8092 = vmatpush3.msra.mxu1 %v3812_v11  ;;  %v6683_v11 = vld [vmem:[%s11147_s12 + $0x1c8] sm:$0xff] }
0x1dab   :  { %8093 = vmatprep.subr.mxu1 %v3811_v12 }
0x1dac   :  { %8094 = vmatpush3.msra.mxu1 %v3811_v12  ;;  %v6682_v12 = vld [vmem:[%s11147_s12 + $0x1c0] sm:$0xff] }
0x1dad   :  { %8095 = vmatprep.subr.mxu1 %v3810_v13 }
0x1dae   :  { %8096 = vmatpush3.msra.mxu1 %v3810_v13  ;;  %v6681_v13 = vld [vmem:[%s11147_s12 + $0x1b8] sm:$0xff] }
0x1daf   :  { %8097 = vmatprep.subr.mxu1 %v3809_v15 }
0x1db0   :  { %8098 = vmatpush3.msra.mxu1 %v3809_v15  ;;  %v6680_v15 = vld [vmem:[%s11147_s12 + $0x1b0] sm:$0xff] }
0x1db1   :  { %8099 = vmatprep.subr.mxu1 %v3808_v17 }
0x1db2   :  { %8100 = vmatpush3.msra.mxu1 %v3808_v17  ;;  %v6679_v17 = vld [vmem:[%s11147_s12 + $0x1a8] sm:$0xff] }
0x1db3   :  { %8139 = vmatprep.subr.mxu1 %v6657_v26 }
0x1dfc   :  { %v3650_v40 = vpop.xlane.xlu0 %3649 }
0x1dfd   :  { %v3652_v44 = vsub.f32 %v10192_v31, %v3650_v40  ;;  %v6655_v31 = vld [vmem:[%s11143_s8 + $0x68] sm:$0xff]  ;;  %v6678_v40 = vld [vmem:[%s11147_s12 + $0x1a0] sm:$0xff] }
0x1dfe   :  { %v3648_v29 = vpop.xlane.xlu1 %3647 }
0x1dff   :  { %v3651_v25 = vsub.f32 %v10195_v39, %v3648_v29  ;;  %v3655_v27 = vmul.f32 1.442695, %v3652_v44 }
0x1e01   :  { %v3653_v21 = vmul.f32 1.442695, %v3651_v25 }
0x1e03   :  { %8628 = vpow2.f32 %v3653_v21 }
0x1e04   :  { %8630 = vpow2.f32 %v3655_v27 }
0x1e10   :  { %v8629_v23 = vpop.eup %8628 }
0x1e11   :  { %v8631_v22 = vpop.eup %8630  ;;  %8101 = vmatprep.mubr.f32.mxu1 %v8629_v23  ;;  %8136 = vmatprep.mubr.f32.mxu0 %v8629_v23 }
0x1e12   :  { %8102 = vmatmul.mubr.f32.vlgmr.msra.gmra.mxu1 %v8631_v22  ;;  %8137 = vmatmul.mubr.f32.vlgmr.msra.gmra.mxu0 %v8631_v22 }
0x1e13   :  { %8140 = vmatpush3.msra.mxu1 %v6657_v26  ;;  %8151 = vmatpush3.msra.mxu0 %v6669_v3  ;;  %v6675_v3 = vld [vmem:[%s11147_s12 + $0x188] sm:$0xff] }
0x1e14   :  { %8141 = vmatprep.subr.mxu1 %v6656_v28  ;;  %8152 = vmatprep.subr.mxu0 %v6668_v2 }
0x1e15   :  { %8142 = vmatpush3.msra.mxu1 %v6656_v28  ;;  %8153 = vmatpush3.msra.mxu0 %v6668_v2  ;;  %v6674_v2 = vld [vmem:[%s11147_s12 + $0x180] sm:$0xff] }
0x1e16   :  { %8143 = vmatprep.subr.mxu1 %v6655_v31  ;;  %8154 = vmatprep.subr.mxu0 %v6667_v18 }
0x1e17   :  { %8144 = vmatpush3.msra.mxu1 %v6655_v31  ;;  %8155 = vmatpush3.msra.mxu0 %v6667_v18  ;;  %v6671_v18 = vld [vmem:[%s11146_s11 + $0x3] ss:$0 sm:$0xff] }
0x1e18   :  { %8145 = vmatprep.subr.mxu1 %v6654_v34  ;;  %8156 = vmatprep.subr.mxu0 %v6666_v19 }
0x1e19   :  { %8146 = vmatpush3.msra.mxu1 %v6654_v34  ;;  %8157 = vmatpush3.msra.mxu0 %v6666_v19 }
0x1e1a   :  { %8161 = vmatprep.subr.mxu1 %v6689_v59 }
0x1ed2   :  { %v8138_v37 = vpop.f32.mrf.mxu0  ;;  %v8103_v35 = vpop.f32.mrf.mxu1 }
0x1ed3   :  { %8632 = vrcp.f32 %v8138_v37 }
0x1ed4   :  { %v3965_v39 = vpop.f32.mrf.mxu0  ;;  %v3890_v63 = vpop.f32.mrf.mxu1 }
0x1ed5   :  { %8634 = vrcp.f32 %v3965_v39 }
0x1ee0   :  { %v8633_v45 = vpop.eup %8632 }
0x1ee1   :  { %v3977_v60 = vmul.f32 %v8633_v45, %v8103_v35 }
0x1ee2   :  { %v8635_v36 = vpop.eup %8634 }
0x1ee3   :  { %v3976_v46 = vmul.f32 %v8635_v36, %v3890_v63 }
0x1ee5   :  { %8147 = vmatprep.mubr.msk.f32.mxu1 %vm104_vm0, %v3976_v46 }
0x1ee6   :  { %8148 = vmatmul.mubr.msk.f32.vlgmr.msra.gmra.mxu1 %vm104_vm0, %v3977_v60  ;;  %v6664_v60 = vld [vmem:[%s11151_s16 + $0x3] ss:$0 sm:$0xff] }
0x1ee7   :  { %8162 = vmatpush3.msra.mxu1 %v6689_v59 }
0x1ee8   :  { %8163 = vmatprep.subr.mxu1 %v6688_v33 }
0x1ee9   :  { %8164 = vmatpush3.msra.mxu1 %v6688_v33 }
0x1eea   :  { %8165 = vmatprep.subr.mxu1 %v6687_v48 }
0x1eeb   :  { %8166 = vmatpush3.msra.mxu1 %v6687_v48 }
0x1eec   :  { %8167 = vmatprep.subr.mxu1 %v6686_v4 }
0x1eed   :  { %8168 = vmatpush3.msra.mxu1 %v6686_v4 }
0x1eee   :  { %8169 = vmatprep.subr.mxu1 %v6685_v7 }
0x1eef   :  { %8170 = vmatpush3.msra.mxu1 %v6685_v7 }
0x1ef0   :  { %8171 = vmatprep.subr.mxu1 %v6684_v9 }
0x1ef1   :  { %8172 = vmatpush3.msra.mxu1 %v6684_v9 }
0x1ef2   :  { %8173 = vmatprep.subr.mxu1 %v6683_v11 }
0x1ef3   :  { %8174 = vmatpush3.msra.mxu1 %v6683_v11  ;;  %v6691_v11 = vld [vmem:[%s11148_s13 + $0x3] ss:$0 sm:$0xff] }
0x1ef4   :  { %8175 = vmatprep.subr.mxu1 %v6682_v12 }
0x1ef5   :  { %8176 = vmatpush3.msra.mxu1 %v6682_v12 }
0x1ef6   :  { %8177 = vmatprep.subr.mxu1 %v6681_v13 }
0x1ef7   :  { %8178 = vmatpush3.msra.mxu1 %v6681_v13 }
0x1ef8   :  { %8179 = vmatprep.subr.mxu1 %v6680_v15 }
0x1ef9   :  { %8180 = vmatpush3.msra.mxu1 %v6680_v15 }
0x1efa   :  { %8181 = vmatprep.subr.mxu1 %v6679_v17 }
0x1efb   :  { %8182 = vmatpush3.msra.mxu1 %v6679_v17 }
0x1efc   :  { %8183 = vmatprep.subr.mxu1 %v6678_v40 }
0x1efd   :  { %8184 = vmatpush3.msra.mxu1 %v6678_v40 }
0x1fa6   :  { %v8149_v61 = vpop.f32.mrf.mxu1 }
0x1fa7   :  { %v4065_v53 = vadd.f32 %v8149_v61, %v10101_v58 }
0x1fa8   :  { %v4055_v41 = vpop.f32.mrf.mxu1 }
0x1fa9   :  { %v10321_v51 = vadd.f32 %v6661_v56, %v4065_v53  ;;  %v4064_v50 = vadd.f32 %v4055_v41, %v10104_v38 }
0x1fab   :  { %v10324_v47 = vadd.f32 %v6661_v56, %v4064_v50  ;;  %v4083_v62 = vsel %vm104_vm0, %v10321_v51, 0.0  ;;  %v4087_v43 = vmul.f32 %v10321_v51, %v10321_v51  ;;  %v6665_v56 = vld [vmem:[%s11152_s17 + $0x3] ss:$0 sm:$0xff] }
0x1fac   :  { %4084 = vadd.xlane.f32.xlu1 %v4083_v62 }
0x1fad   :  { %v4080_v54 = vsel %vm104_vm0, %v10324_v47, 0.0  ;;  %v4086_v57 = vmul.f32 %v10324_v47, %v10324_v47  ;;  %v4091_v38 = vsel %vm104_vm0, %v4087_v43, 0.0  ;;  %v6677_v43 = vld [vmem:[%s11147_s12 + $0x198] sm:$0xff] }
0x1fae   :  { %8185 = vmatprep.subr.mxu1 %v6677_v43 }
0x1faf   :  { %v4088_v58 = vsel %vm104_vm0, %v4086_v57, 0.0  ;;  %8186 = vmatpush3.msra.mxu1 %v6677_v43 }
0x1fb0   :  { %4081 = vadd.xlane.f32.xlu1 %v4080_v54 }
0x1fb4   :  { %4089 = vadd.xlane.f32.xlu1 %v4088_v58 }
0x1fb8   :  { %4092 = vadd.xlane.f32.xlu1 %v4091_v38  ;;  %v6676_v38 = vld [vmem:[%s11147_s12 + $0x190] sm:$0xff] }
0x1fb9   :  { %8187 = vmatprep.subr.mxu1 %v6676_v38 }
0x1fba   :  { %8188 = vmatpush3.msra.mxu1 %v6676_v38  ;;  %v6695_v38 = vld [vmem:[%s11150_s15 + $0x4] ss:$0 sm:$0xff] }
0x1fbb   :  { %8189 = vmatprep.subr.mxu1 %v6675_v3 }
0x1fbc   :  { %8190 = vmatpush3.msra.mxu1 %v6675_v3 }
0x1fbd   :  { %8191 = vmatprep.subr.mxu1 %v6674_v2 }
0x1fbe   :  { %8192 = vmatpush3.msra.mxu1 %v6674_v2 }
0x1fbf   :  { %8291 = vmatprep.subr.mxu1 %v10206_v20 }
0x2035   :  { %v4085_v44 = vpop.xlane.xlu1 %4084 }
0x2036   :  { %v4095_v21 = vmul.f32 0.03125, %v4085_v44 }
0x2038   :  { %v4099_v31 = vmul.f32 %v4095_v21, %v4095_v21  ;;  %v4105_v53 = vsub.f32 %v10321_v51, %v4095_v21  ;;  %v6699_v21 = vld [vmem:[%s11141_s6 + $0x98] sm:$0xff] }
0x2039   :  { %v4082_v29 = vpop.xlane.xlu1 %4081  ;;  %8196 = vmatprep.subr.mxu0 %v6699_v21 }
0x203a   :  { %v4094_v25 = vmul.f32 0.03125, %v4082_v29 }
0x203c   :  { %v4098_v23 = vmul.f32 %v4094_v25, %v4094_v25  ;;  %v4104_v63 = vsub.f32 %v10324_v47, %v4094_v25 }
0x203d   :  { %v4090_v27 = vpop.xlane.xlu1 %4089 }
0x203e   :  { %v4096_v22 = vmul.f32 0.03125, %v4090_v27 }
0x2040   :  { %v4100_v26 = vsub.f32 %v4096_v22, %v4098_v23  ;;  %v6698_v23 = vld [vmem:[%s11141_s6 + $0x90] sm:$0xff]  ;;  %v6697_v22 = vld [vmem:[%s11141_s6 + $0x88] sm:$0xff] }
0x2041   :  { %v4093_v28 = vpop.xlane.xlu1 %4092 }
0x2042   :  { %v4102_v34 = vmax.f32 %v4100_v26, 0.0  ;;  %v4097_v37 = vmul.f32 0.03125, %v4093_v28  ;;  %v6696_v26 = vld [vmem:[%s11141_s6 + $0x80] sm:$0xff]  ;;  %v10475_v28 = vld [vmem:[%s11167_s21 + $0x8] sm:$0xff] }
0x2044   :  { %v4106_v39 = vadd.f32 1e-05, %v4102_v34  ;;  %v4101_v35 = vsub.f32 %v4097_v37, %v4099_v31 }
0x2046   :  { %8636 = vrsqrt.f32 %v4106_v39  ;;  %v4103_v45 = vmax.f32 %v4101_v35, 0.0 }
0x2048   :  { %v4107_v36 = vadd.f32 1e-05, %v4103_v45 }
0x204a   :  { %8638 = vrsqrt.f32 %v4107_v36 }
0x2053   :  { %v8637_v46 = vpop.eup %8636 }
0x2054   :  { %v4110_v61 = vmul.f32 %v8637_v46, %v4104_v63 }
0x2056   :  { %v4118_v41 = vmul.f32 %v6664_v60, %v4110_v61 }
0x2057   :  { %v8639_v50 = vpop.eup %8638 }
0x2058   :  { %v4111_v62 = vmul.f32 %v8639_v50, %v4105_v53  ;;  %v4126_v54 = vadd.f32 %v6665_v56, %v4118_v41 }
0x205a   :  { %v4119_v57 = vmul.f32 %v6664_v60, %v4111_v62  ;;  %8158 = vmatprep.mubr.msk.f32.mxu0 %vm104_vm0, %v4126_v54 }
0x205c   :  { %v4127_v58 = vadd.f32 %v6665_v56, %v4119_v57 }
0x205e   :  { %8159 = vmatmul.mubr.msk.f32.vlgmr.msra.gmra.mxu0 %vm104_vm0, %v4127_v58  ;;  %v6694_v58 = vld [vmem:[%s11149_s14 + $0x4] ss:$0 sm:$0xff] }
0x205f   :  { %8197 = vmatpush3.msra.mxu0 %v6699_v21 }
0x2060   :  { %8198 = vmatprep.subr.mxu0 %v6698_v23 }
0x2061   :  { %8199 = vmatpush3.msra.mxu0 %v6698_v23 }
0x2062   :  { %8200 = vmatprep.subr.mxu0 %v6697_v22 }
0x2063   :  { %8201 = vmatpush3.msra.mxu0 %v6697_v22  ;;  %v10511_v22 = vld [vmem:[%s11139_s4 + $0x18] sm:$0xff] }
0x2064   :  { %8202 = vmatprep.subr.mxu0 %v6696_v26 }
0x2065   :  { %8203 = vmatpush3.msra.mxu0 %v6696_v26 }
0x2066   :  { %8207 = vmatprep.subr.mxu0 %v10475_v28 }
0x211e   :  { %v8160_v19 = vpop.f32.mrf.mxu0 }
0x211f   :  { %v4219_v59 = vadd.f32 %v8160_v19, %v6671_v18 }
0x2120   :  { %v4213_v33 = vpop.f32.mrf.mxu0 }
0x2121   :  { %v4214_v48 = vadd.f32 %v6671_v18, %v4213_v33  ;;  %v4223_v7 = vmax.f32 %v4219_v59, 0.0 }
0x2123   :  { %v4222_v4 = vmax.f32 %v4214_v48, 0.0 }
0x2125   :  { %8193 = vmatprep.mubr.f32.mxu1 %v4222_v4  ;;  %v10492_v4 = vld [vmem:[%s11167_s21] sm:$0xff] }
0x2126   :  { %8194 = vmatmul.mubr.f32.vlgmr.msra.gmra.mxu1 %v4223_v7  ;;  %v6701_v7 = vld [vmem:[%s11142_s7 + $0x4] ss:$0 sm:$0xff] }
0x2127   :  { %8292 = vmatpush3.msra.mxu1 %v10206_v20 }
0x2128   :  { %8293 = vmatprep.subr.mxu1 %v10218_v5 }
0x2129   :  { %8294 = vmatpush3.msra.mxu1 %v10218_v5 }
0x212a   :  { %8295 = vmatprep.subr.mxu1 %v10212_v42 }
0x212b   :  { %8296 = vmatpush3.msra.mxu1 %v10212_v42 }
0x212c   :  { %8297 = vmatprep.subr.mxu1 %v10224_v30 }
0x212d   :  { %8298 = vmatpush3.msra.mxu1 %v10224_v30 }
0x212e   :  { %8299 = vmatprep.subr.mxu1 %v10230_v0 }
0x212f   :  { %8300 = vmatpush3.msra.mxu1 %v10230_v0 }
0x2130   :  { %8301 = vmatprep.subr.mxu1 %v10236_v32 }
0x2131   :  { %8302 = vmatpush3.msra.mxu1 %v10236_v32 }
0x2132   :  { %8303 = vmatprep.subr.mxu1 %v10242_v1 }
0x2133   :  { %8304 = vmatpush3.msra.mxu1 %v10242_v1 }
0x2134   :  { %8305 = vmatprep.subr.mxu1 %v10248_v52 }
0x2135   :  { %8306 = vmatpush3.msra.mxu1 %v10248_v52 }
0x2136   :  { %8307 = vmatprep.subr.mxu1 %v10254_v49 }
0x2137   :  { %8308 = vmatpush3.msra.mxu1 %v10254_v49 }
0x2138   :  { %8309 = vmatprep.subr.mxu1 %v10260_v6 }
0x2139   :  { %8310 = vmatpush3.msra.mxu1 %v10260_v6 }
0x213a   :  { %8311 = vmatprep.subr.mxu1 %v10266_v8 }
0x213b   :  { %8312 = vmatpush3.msra.mxu1 %v10266_v8 }
0x213c   :  { %8313 = vmatprep.subr.mxu1 %v10272_v10 }
0x213d   :  { %8314 = vmatpush3.msra.mxu1 %v10272_v10 }
0x213e   :  { %8315 = vmatprep.subr.mxu1 %v10278_v24 }
0x213f   :  { %8316 = vmatpush3.msra.mxu1 %v10278_v24 }
0x2140   :  { %8317 = vmatprep.subr.mxu1 %v10284_v55 }
0x2141   :  { %8318 = vmatpush3.msra.mxu1 %v10284_v55 }
0x2142   :  { %8319 = vmatprep.subr.mxu1 %v10290_v14 }
0x2143   :  { %8320 = vmatpush3.msra.mxu1 %v10290_v14 }
0x2144   :  { %8321 = vmatprep.subr.mxu1 %v10297_v16 }
0x2145   :  { %8322 = vmatpush3.msra.mxu1 %v10297_v16 }
0x21e6   :  { %v8195_v9 = vpop.f32.mrf.mxu1 }
0x21e7   :  { %v4317_v12 = vadd.f32 %v8195_v9, %v10321_v51 }
0x21e8   :  { %v4307_v13 = vpop.f32.mrf.mxu1 }
0x21e9   :  { %v10445_v15 = vadd.f32 %v6691_v11, %v4317_v12  ;;  %v4316_v17 = vadd.f32 %v4307_v13, %v10324_v47 }
0x21eb   :  { %v10448_v40 = vadd.f32 %v6691_v11, %v4316_v17  ;;  %v4335_v44 = vsel %vm104_vm0, %v10445_v15, 0.0  ;;  %v4339_v27 = vmul.f32 %v10445_v15, %v10445_v15 }
0x21ec   :  { %4336 = vadd.xlane.f32.xlu1 %v4335_v44 }
0x21ed   :  { %v4332_v29 = vsel %vm104_vm0, %v10448_v40, 0.0  ;;  %v4338_v25 = vmul.f32 %v10448_v40, %v10448_v40  ;;  %v4343_v47 = vsel %vm104_vm0, %v4339_v27, 0.0 }
0x21ef   :  { %v4340_v51 = vsel %vm104_vm0, %v4338_v25, 0.0 }
0x21f0   :  { %4333 = vadd.xlane.f32.xlu1 %v4332_v29 }
0x21f4   :  { %4341 = vadd.xlane.f32.xlu1 %v4340_v51 }
0x21f8   :  { %4344 = vadd.xlane.f32.xlu1 %v4343_v47 }
0x2275   :  { %v4337_v31 = vpop.xlane.xlu1 %4336 }
0x2276   :  { %v4347_v35 = vmul.f32 0.03125, %v4337_v31 }
0x2278   :  { %v4351_v60 = vmul.f32 %v4347_v35, %v4347_v35  ;;  %v4357_v3 = vsub.f32 %v10445_v15, %v4347_v35 }
0x2279   :  { %v4334_v34 = vpop.xlane.xlu1 %4333 }
0x227a   :  { %v4346_v37 = vmul.f32 0.03125, %v4334_v34  ;;  %v10517_v34 = vld [vmem:[%s11139_s4 + $0x10] sm:$0xff] }
0x227c   :  { %v4350_v45 = vmul.f32 %v4346_v37, %v4346_v37  ;;  %v4356_v54 = vsub.f32 %v10448_v40, %v4346_v37 }
0x227d   :  { %v4342_v39 = vpop.xlane.xlu1 %4341 }
0x227e   :  { %v4348_v36 = vmul.f32 0.03125, %v4342_v39  ;;  %v10523_v39 = vld [vmem:[%s11139_s4 + $0x8] sm:$0xff] }
0x2280   :  { %v4352_v63 = vsub.f32 %v4348_v36, %v4350_v45  ;;  %v10529_v36 = vld [vmem:[%s11139_s4] sm:$0xff] }
0x2281   :  { %v4345_v46 = vpop.xlane.xlu1 %4344 }
0x2282   :  { %v4354_v61 = vmax.f32 %v4352_v63, 0.0  ;;  %v4349_v56 = vmul.f32 0.03125, %v4345_v46 }
0x2284   :  { %v4358_v53 = vadd.f32 1e-05, %v4354_v61  ;;  %v4353_v41 = vsub.f32 %v4349_v56, %v4351_v60  ;;  %v10536_v60 = vld [vmem:[%s11138_s3] sm:$0xff]  ;;  %v10543_v61 = vld [vmem:[%s11138_s3 + $0x8] sm:$0xff]  ;;  %v10550_v56 = vld [vmem:[%s11138_s3 + $0x10] sm:$0xff] }
0x2286   :  { %8640 = vrsqrt.f32 %v4358_v53  ;;  %v4355_v50 = vmax.f32 %v4353_v41, 0.0  ;;  %v10557_v53 = vld [vmem:[%s11138_s3 + $0x18] sm:$0xff]  ;;  %v10564_v41 = vld [vmem:[%s11138_s3 + $0x20] sm:$0xff] }
0x2288   :  { %v4359_v62 = vadd.f32 1e-05, %v4355_v50  ;;  %v10571_v50 = vld [vmem:[%s11138_s3 + $0x28] sm:$0xff] }
0x228a   :  { %8642 = vrsqrt.f32 %v4359_v62  ;;  %v10578_v62 = vld [vmem:[%s11138_s3 + $0x30] sm:$0xff] }
0x2293   :  { %v8641_v57 = vpop.eup %8640 }
0x2294   :  { %v4362_v43 = vmul.f32 %v8641_v57, %v4356_v54  ;;  %v10585_v54 = vld [vmem:[%s11138_s3 + $0x38] sm:$0xff]  ;;  %v10592_v57 = vld [vmem:[%s11138_s3 + $0x40] sm:$0xff] }
0x2296   :  { %v4370_v2 = vmul.f32 %v6694_v58, %v4362_v43  ;;  %v10606_v43 = vld [vmem:[%s11138_s3 + $0x50] sm:$0xff] }
0x2297   :  { %v8643_v18 = vpop.eup %8642 }
0x2298   :  { %v4363_v19 = vmul.f32 %v8643_v18, %v4357_v3  ;;  %v4378_v59 = vadd.f32 %v6695_v38, %v4370_v2  ;;  %v10620_v3 = vld [vmem:[%s11138_s3 + $0x60] sm:$0xff]  ;;  %v10627_v2 = vld [vmem:[%s11138_s3 + $0x68] sm:$0xff]  ;;  %v10634_v18 = vld [vmem:[%s11138_s3 + $0x70] sm:$0xff] }
0x229a   :  { %v4371_v33 = vmul.f32 %v6694_v58, %v4363_v19  ;;  %8204 = vmatprep.mubr.msk.f32.mxu0 %vm104_vm0, %v4378_v59  ;;  %v10599_v58 = vld [vmem:[%s11138_s3 + $0x48] sm:$0xff]  ;;  %v10641_v19 = vld [vmem:[%s11138_s3 + $0x78] sm:$0xff] }
0x229c   :  { %v4379_v48 = vadd.f32 %v6695_v38, %v4371_v33  ;;  %v10613_v38 = vld [vmem:[%s11138_s3 + $0x58] sm:$0xff] }
0x229e   :  { %8205 = vmatmul.mubr.msk.f32.vlgmr.msra.gmra.mxu0 %vm104_vm0, %v4379_v48  ;;  %v10648_v48 = vld [vmem:[%s11168_s25] sm:$0xff] }
0x229f   :  { %8208 = vmatpush3.msra.mxu0 %v10475_v28  ;;  %11177 = vst [vmem:[#allocation5_spill] sm:$0xff] %v10648_v48 }
0x22a0   :  { %8209 = vmatprep.subr.mxu0 %v10492_v4 }
0x22a1   :  { %8210 = vmatpush3.msra.mxu0 %v10492_v4 }
0x235e   :  { %v8206_v9 = vpop.f32.mrf.mxu0 }
0x235f   :  { %v4471_v11 = vadd.f32 %v8206_v9, %v6701_v7 }
0x2360   :  { %v4465_v12 = vpop.f32.mrf.mxu0 }
0x2361   :  { %v4466_v13 = vadd.f32 %v6701_v7, %v4465_v12  ;;  %4478 = vrot.lane.b32.xlu1 %v4471_v11, %s8790_s0  ;;  %v10657_v12 = vld [vmem:[%s11168_s25 + $0x8] sm:$0xff] }
0x2362   :  { %11178 = vst [vmem:[#allocation6_spill] sm:$0xff] %v10657_v12 }
0x2363   :  { %4476 = vrot.lane.b32.xlu0 %v4466_v13, %s8790_s0 }
0x2367   :  { %4706 = vrot.lane.b32.xlu0 %v4471_v11, %s8791_s19 }
0x236b   :  { %4704 = vrot.lane.b32.xlu0 %v4466_v13, %s8791_s19 }
0x23d3   :  { %v4479_v44 = vpop.permute.xlu1 %4478 }
0x23d5   :  { %v4477_v17 = vpop.permute.xlu0 %4476 }
0x23d6   :  { %4482 = vxpose.xlu1.b32.start [1/2] (short) (narrow) %v4477_v17, 32 }
0x23d9   :  { %v4707_v45 = vpop.permute.xlu0 %4706 }
0x23da   :  { %4483 = vxpose.xlu1.b32.end [2/2] (short) (narrow) %v4479_v44, 32 }
0x23dd   :  { %v4705_v46 = vpop.permute.xlu0 %4704 }
0x2452   :  { %v4498_v29 = vpop.trf.xlu1 }
0x2453   :  { %8211 = vmatprep.mubr.msk.f32.mxu0 %vm285_vm1, %v4498_v29 }
0x2456   :  { %v4499_v25 = vpop.trf.xlu1 }
0x2457   :  { %8212 = vmatmul.mubr.msk.f32.vlgmr.msra.gmra.mxu0 %vm285_vm1, %v4499_v25 }
0x245a   :  { %v4500_v51 = vpop.trf.xlu1 }
0x245b   :  { %8214 = vmatprep.mubr.msk.f32.mxu0 %vm285_vm1, %v4500_v51 }
0x245e   :  { %v4501_v27 = vpop.trf.xlu1 }
0x245f   :  { %8215 = vmatmul.mubr.msk.f32.gmra.mxu0 %vm285_vm1, %v4501_v27 }
0x2460   :  { %8225 = vmatprep.mubr.msk.f32.mxu0 %vm104_vm0, %v4466_v13 }
0x2517   :  { %v8213_v47 = vpop.f32.mrf.mxu0 }
0x2518   :  { %v4612_v35 = vmul.f32 %v10523_v39, %v8213_v47 }
0x2519   :  { %v4592_v21 = vpop.f32.mrf.mxu0 }
0x251a   :  { %v4611_v63 = vmul.f32 %v10529_v36, %v4592_v21 }
0x251f   :  { %v8216_v23 = vpop.f32.mrf.mxu0 }
0x2520   :  { %v4614_v26 = vmul.f32 %v10511_v22, %v8216_v23 }
0x2521   :  { %v4602_v31 = vpop.f32.mrf.mxu0 }
0x2522   :  { %v4613_v37 = vmul.f32 %v10517_v34, %v4602_v31  ;;  %8217 = vmatprep.subr.mxu0 %v4614_v26 }
0x2523   :  { %8218 = vmatpush3.msra.mxu0 %v4614_v26 }
0x2524   :  { %8219 = vmatprep.subr.mxu0 %v4613_v37 }
0x2525   :  { %8220 = vmatpush3.msra.mxu0 %v4613_v37 }
0x2526   :  { %8221 = vmatprep.subr.mxu0 %v4612_v35 }
0x2527   :  { %8222 = vmatpush3.msra.mxu0 %v4612_v35 }
0x2528   :  { %8223 = vmatprep.subr.mxu0 %v4611_v63 }
0x2529   :  { %8224 = vmatpush3.msra.mxu0 %v4611_v63 }
0x252a   :  { %8226 = vmatmul.mubr.msk.f32.vlgmr.msra.gmra.mxu0 %vm104_vm0, %v4471_v11  ;;  %8228 = vmatprep.subr.mxu0 %v4707_v45 }
0x252b   :  { %8229 = vmatpush3.msra.mxu0 %v4707_v45  ;;  %8232 = vmatprep.mubr.msk.f32.mxu0 %vm285_vm1, %v10536_v60 }
0x252c   :  { %8230 = vmatprep.subr.mxu0 %v4705_v46 }
0x252d   :  { %8231 = vmatpush3.msra.mxu0 %v4705_v46 }
0x252e   :  { %8233 = vmatmul.mubr.msk.f32.vlgmr.msra.gmra.mxu0 %vm285_vm1, %v10543_v61 }
0x252f   :  { %8235 = vmatprep.mubr.msk.f32.mxu0 %vm285_vm1, %v10550_v56 }
0x2532   :  { %8236 = vmatmul.mubr.msk.f32.gmra.mxu0 %vm285_vm1, %v10557_v53 }
0x2533   :  { %8238 = vmatprep.mubr.msk.f32.mxu0 %vm285_vm1, %v10564_v41 }
0x2536   :  { %8239 = vmatmul.mubr.msk.f32.gmra.mxu0 %vm285_vm1, %v10571_v50 }
0x2537   :  { %8241 = vmatprep.mubr.msk.f32.mxu0 %vm285_vm1, %v10578_v62 }
0x253a   :  { %8242 = vmatmul.mubr.msk.f32.gmra.mxu0 %vm285_vm1, %v10585_v54 }
0x253b   :  { %8244 = vmatprep.mubr.msk.f32.mxu0 %vm285_vm1, %v10592_v57 }
0x253e   :  { %8245 = vmatmul.mubr.msk.f32.gmra.mxu0 %vm285_vm1, %v10599_v58 }
0x253f   :  { %8247 = vmatprep.mubr.msk.f32.mxu0 %vm285_vm1, %v10606_v43 }
0x2542   :  { %8248 = vmatmul.mubr.msk.f32.gmra.mxu0 %vm285_vm1, %v10613_v38 }
0x2543   :  { %8250 = vmatprep.mubr.msk.f32.mxu0 %vm285_vm1, %v10620_v3 }
0x2546   :  { %8251 = vmatmul.mubr.msk.f32.gmra.mxu0 %vm285_vm1, %v10627_v2 }
0x2547   :  { %8253 = vmatprep.mubr.msk.f32.mxu0 %vm285_vm1, %v10634_v18 }
0x254a   :  { %8254 = vmatmul.mubr.msk.f32.gmra.mxu0 %vm285_vm1, %v10641_v19 }
0x25ea   :  { %v8227_v59 = vpop.f32.mrf.mxu0 }
0x25eb   :  { %v10660_v13 = vadd.f32 %v10657_v12, %v8227_v59 }
0x25ec   :  { %v4685_v33 = vpop.f32.mrf.mxu0 }
0x25ed   :  { %v10651_v7 = vadd.f32 %v10648_v48, %v4685_v33 }
0x25ee   :  { %v8234_v9 = vpop.f32.mrf.mxu0 }
0x25ef   :  { %4694 = vmax.xlane.f32.xlu0 %v10651_v7 }
0x25f0   :  { %v4776_v11 = vpop.f32.mrf.mxu0 }
0x25f2   :  { %v8237_v17 = vpop.f32.mrf.mxu0 }
0x25f3   :  { %4696 = vmax.xlane.f32.xlu0 %v10660_v13 }
0x25f4   :  { %v4786_v44 = vpop.f32.mrf.mxu0 }
0x25f6   :  { %v8240_v29 = vpop.f32.mrf.mxu0 }
0x25f8   :  { %v4796_v25 = vpop.f32.mrf.mxu0 }
0x25fa   :  { %v8243_v51 = vpop.f32.mrf.mxu0 }
0x25fc   :  { %v4806_v27 = vpop.f32.mrf.mxu0 }
0x25fe   :  { %v8246_v47 = vpop.f32.mrf.mxu0 }
0x2600   :  { %v4816_v21 = vpop.f32.mrf.mxu0 }
0x2602   :  { %v8249_v23 = vpop.f32.mrf.mxu0 }
0x2603   :  { %v4866_v48 = vmul.f32 %v10230_v0, %v8249_v23  ;;  %v4860_v0 = vmul.f32 %v10266_v8, %v8240_v29 }
0x2604   :  { %v4826_v26 = vpop.f32.mrf.mxu0 }
0x2605   :  { %v4865_v12 = vmul.f32 %v10236_v32, %v4826_v26  ;;  %v4859_v32 = vmul.f32 %v10272_v10, %v4796_v25  ;;  %v6733_v26 = vld [vmem:[%s11144_s9 + $0x4] ss:$0 sm:$0xff] }
0x2606   :  { %v8252_v31 = vpop.f32.mrf.mxu0 }
0x2607   :  { %v4868_v46 = vmul.f32 %v10212_v42, %v8252_v31  ;;  %v4863_v42 = vmul.f32 %v10248_v52, %v4816_v21  ;;  %v4857_v52 = vmul.f32 %v10284_v55, %v4786_v44 }
0x2608   :  { %v4836_v37 = vpop.f32.mrf.mxu0 }
0x2609   :  { %v4867_v33 = vmul.f32 %v10224_v30, %v4836_v37  ;;  %v4861_v30 = vmul.f32 %v10260_v6, %v4806_v27  ;;  %v4855_v6 = vmul.f32 %v10297_v16, %v4776_v11  ;;  %v6727_v11 = vld [vmem:[%s11143_s8 + $0x88] sm:$0xff] }
0x260a   :  { %v8255_v35 = vpop.f32.mrf.mxu0 }
0x260b   :  { %v4870_v45 = vmul.f32 %v10206_v20, %v8255_v35  ;;  %v4864_v20 = vmul.f32 %v10242_v1, %v8246_v47  ;;  %v4858_v1 = vmul.f32 %v10278_v24, %v8237_v17 }
0x260c   :  { %v4846_v63 = vpop.f32.mrf.mxu0 }
0x260d   :  { %v4869_v59 = vmul.f32 %v10218_v5, %v4846_v63  ;;  %8256 = vmatprep.subr.mxu0 %v4870_v45  ;;  %v4862_v5 = vmul.f32 %v10254_v49, %v8243_v51  ;;  %v4856_v49 = vmul.f32 %v10290_v14, %v8234_v9  ;;  %v6729_v9 = vld [vmem:[%s11143_s8 + $0x98] sm:$0xff] }
0x260e   :  { %8257 = vmatpush3.msra.mxu0 %v4870_v45 }
0x260f   :  { %8258 = vmatprep.subr.mxu0 %v4869_v59 }
0x2610   :  { %8259 = vmatpush3.msra.mxu0 %v4869_v59 }
0x2611   :  { %8260 = vmatprep.subr.mxu0 %v4868_v46 }
0x2612   :  { %8261 = vmatpush3.msra.mxu0 %v4868_v46 }
0x2613   :  { %8262 = vmatprep.subr.mxu0 %v4867_v33 }
0x2614   :  { %8263 = vmatpush3.msra.mxu0 %v4867_v33 }
0x2615   :  { %8264 = vmatprep.subr.mxu0 %v4866_v48 }
0x2616   :  { %8265 = vmatpush3.msra.mxu0 %v4866_v48 }
0x2617   :  { %8266 = vmatprep.subr.mxu0 %v4865_v12 }
0x2618   :  { %8267 = vmatpush3.msra.mxu0 %v4865_v12 }
0x2619   :  { %8268 = vmatprep.subr.mxu0 %v4864_v20 }
0x261a   :  { %8269 = vmatpush3.msra.mxu0 %v4864_v20 }
0x261b   :  { %8270 = vmatprep.subr.mxu0 %v4863_v42 }
0x261c   :  { %8271 = vmatpush3.msra.mxu0 %v4863_v42  ;;  %v6741_v42 = vld [vmem:[%s11145_s10 + $0x98] sm:$0xff] }
0x261d   :  { %8272 = vmatprep.subr.mxu0 %v4862_v5  ;;  %8337 = vmatprep.subr.mxu1 %v6741_v42 }
0x261e   :  { %8273 = vmatpush3.msra.mxu0 %v4862_v5  ;;  %v6740_v5 = vld [vmem:[%s11145_s10 + $0x90] sm:$0xff] }
0x261f   :  { %8274 = vmatprep.subr.mxu0 %v4861_v30 }
0x2620   :  { %8275 = vmatpush3.msra.mxu0 %v4861_v30  ;;  %v6739_v30 = vld [vmem:[%s11145_s10 + $0x88] sm:$0xff] }
0x2621   :  { %8276 = vmatprep.subr.mxu0 %v4860_v0 }
0x2622   :  { %8277 = vmatpush3.msra.mxu0 %v4860_v0  ;;  %v6738_v0 = vld [vmem:[%s11145_s10 + $0x80] sm:$0xff] }
0x2623   :  { %8278 = vmatprep.subr.mxu0 %v4859_v32 }
0x2624   :  { %8279 = vmatpush3.msra.mxu0 %v4859_v32  ;;  %v6761_v32 = vld [vmem:[%s11147_s12 + $0x278] sm:$0xff] }
0x2625   :  { %8280 = vmatprep.subr.mxu0 %v4858_v1 }
0x2626   :  { %8281 = vmatpush3.msra.mxu0 %v4858_v1  ;;  %v6760_v1 = vld [vmem:[%s11147_s12 + $0x270] sm:$0xff] }
0x2627   :  { %8282 = vmatprep.subr.mxu0 %v4857_v52 }
0x2628   :  { %8283 = vmatpush3.msra.mxu0 %v4857_v52  ;;  %v6759_v52 = vld [vmem:[%s11147_s12 + $0x268] sm:$0xff] }
0x2629   :  { %8284 = vmatprep.subr.mxu0 %v4856_v49 }
0x262a   :  { %8285 = vmatpush3.msra.mxu0 %v4856_v49  ;;  %v6758_v49 = vld [vmem:[%s11147_s12 + $0x260] sm:$0xff] }
0x262b   :  { %8286 = vmatprep.subr.mxu0 %v4855_v6 }
0x262c   :  { %8287 = vmatpush3.msra.mxu0 %v4855_v6  ;;  %v6757_v6 = vld [vmem:[%s11147_s12 + $0x258] sm:$0xff] }
0x262d   :  { %8326 = vmatprep.subr.mxu0 %v6729_v9 }
0x2678   :  { %v4695_v8 = vpop.xlane.xlu0 %4694 }
0x2679   :  { %v4698_v10 = vsub.f32 %v10651_v7, %v4695_v8  ;;  %v6728_v7 = vld [vmem:[%s11143_s8 + $0x90] sm:$0xff] }
0x267a   :  { %v6756_v8 = vld [vmem:[%s11147_s12 + $0x250] sm:$0xff] }
0x267b   :  { %v4700_v24 = vmul.f32 1.442695, %v4698_v10  ;;  %v6755_v10 = vld [vmem:[%s11147_s12 + $0x248] sm:$0xff] }
0x267c   :  { %v4697_v48 = vpop.xlane.xlu0 %4696 }
0x267d   :  { %8644 = vpow2.f32 %v4700_v24  ;;  %v4699_v55 = vsub.f32 %v10660_v13, %v4697_v48  ;;  %v6726_v13 = vld [vmem:[%s11143_s8 + $0x80] sm:$0xff]  ;;  %v6753_v48 = vld [vmem:[%s11147_s12 + $0x238] sm:$0xff] }
0x267e   :  { %v6754_v24 = vld [vmem:[%s11147_s12 + $0x240] sm:$0xff] }
0x267f   :  { %v4702_v12 = vmul.f32 1.442695, %v4699_v55  ;;  %v6752_v55 = vld [vmem:[%s11147_s12 + $0x230] sm:$0xff] }
0x2681   :  { %8646 = vpow2.f32 %v4702_v12  ;;  %v6751_v12 = vld [vmem:[%s11147_s12 + $0x228] sm:$0xff] }
0x268a   :  { %v8645_v14 = vpop.eup %8644 }
0x268b   :  { %8288 = vmatprep.mubr.f32.mxu0 %v8645_v14  ;;  %8323 = vmatprep.mubr.f32.mxu1 %v8645_v14  ;;  %v6750_v14 = vld [vmem:[%s11147_s12 + $0x220] sm:$0xff] }
0x268e   :  { %v8647_v16 = vpop.eup %8646 }
0x268f   :  { %8289 = vmatmul.mubr.f32.vlgmr.msra.gmra.mxu0 %v8647_v16  ;;  %8324 = vmatmul.mubr.f32.vlgmr.msra.gmra.mxu1 %v8647_v16 }
0x2690   :  { %8327 = vmatpush3.msra.mxu0 %v6729_v9  ;;  %8338 = vmatpush3.msra.mxu1 %v6741_v42 }
0x2691   :  { %8328 = vmatprep.subr.mxu0 %v6728_v7  ;;  %8339 = vmatprep.subr.mxu1 %v6740_v5 }
0x2692   :  { %8329 = vmatpush3.msra.mxu0 %v6728_v7  ;;  %8340 = vmatpush3.msra.mxu1 %v6740_v5 }
0x2693   :  { %8330 = vmatprep.subr.mxu0 %v6727_v11  ;;  %8341 = vmatprep.subr.mxu1 %v6739_v30 }
0x2694   :  { %8331 = vmatpush3.msra.mxu0 %v6727_v11  ;;  %8342 = vmatpush3.msra.mxu1 %v6739_v30 }
0x2695   :  { %8332 = vmatprep.subr.mxu0 %v6726_v13  ;;  %8343 = vmatprep.subr.mxu1 %v6738_v0 }
0x2696   :  { %8333 = vmatpush3.msra.mxu0 %v6726_v13  ;;  %8344 = vmatpush3.msra.mxu1 %v6738_v0 }
0x2697   :  { %8348 = vmatprep.subr.mxu0 %v6761_v32 }
0x274f   :  { %v8325_v17 = vpop.f32.mrf.mxu1  ;;  %v8290_v29 = vpop.f32.mrf.mxu0 }
0x2750   :  { %8648 = vrcp.f32 %v8325_v17 }
0x2751   :  { %v5012_v44 = vpop.f32.mrf.mxu1  ;;  %v4937_v27 = vpop.f32.mrf.mxu0 }
0x2752   :  { %8650 = vrcp.f32 %v5012_v44 }
0x275d   :  { %v8649_v25 = vpop.eup %8648 }
0x275e   :  { %v5024_v21 = vmul.f32 %v8649_v25, %v8290_v29 }
0x275f   :  { %v8651_v51 = vpop.eup %8650 }
0x2760   :  { %v5023_v47 = vmul.f32 %v8651_v51, %v4937_v27 }
0x2762   :  { %8334 = vmatprep.mubr.msk.f32.mxu0 %vm104_vm0, %v5023_v47 }
0x2763   :  { %8335 = vmatmul.mubr.msk.f32.vlgmr.msra.gmra.mxu0 %vm104_vm0, %v5024_v21 }
0x2764   :  { %8349 = vmatpush3.msra.mxu0 %v6761_v32  ;;  %v6749_v32 = vld [vmem:[%s11147_s12 + $0x218] sm:$0xff] }
0x2765   :  { %8350 = vmatprep.subr.mxu0 %v6760_v1 }
0x2766   :  { %8351 = vmatpush3.msra.mxu0 %v6760_v1  ;;  %v6748_v1 = vld [vmem:[%s11147_s12 + $0x210] sm:$0xff] }
0x2767   :  { %8352 = vmatprep.subr.mxu0 %v6759_v52 }
0x2768   :  { %8353 = vmatpush3.msra.mxu0 %v6759_v52  ;;  %v6747_v52 = vld [vmem:[%s11147_s12 + $0x208] sm:$0xff] }
0x2769   :  { %8354 = vmatprep.subr.mxu0 %v6758_v49 }
0x276a   :  { %8355 = vmatpush3.msra.mxu0 %v6758_v49  ;;  %v6746_v49 = vld [vmem:[%s11147_s12 + $0x200] sm:$0xff] }
0x276b   :  { %8356 = vmatprep.subr.mxu0 %v6757_v6 }
0x276c   :  { %8357 = vmatpush3.msra.mxu0 %v6757_v6  ;;  %v10787_v6 = vld [vmem:[%s11140_s5 + $0x78] sm:$0xff] }
0x276d   :  { %8358 = vmatprep.subr.mxu0 %v6756_v8 }
0x276e   :  { %8359 = vmatpush3.msra.mxu0 %v6756_v8  ;;  %v6743_v8 = vld [vmem:[%s11146_s11 + $0x4] ss:$0 sm:$0xff] }
0x276f   :  { %8360 = vmatprep.subr.mxu0 %v6755_v10 }
0x2770   :  { %8361 = vmatpush3.msra.mxu0 %v6755_v10 }
0x2771   :  { %8362 = vmatprep.subr.mxu0 %v6754_v24 }
0x2772   :  { %8363 = vmatpush3.msra.mxu0 %v6754_v24 }
0x2773   :  { %8364 = vmatprep.subr.mxu0 %v6753_v48 }
0x2774   :  { %8365 = vmatpush3.msra.mxu0 %v6753_v48 }
0x2775   :  { %8366 = vmatprep.subr.mxu0 %v6752_v55 }
0x2776   :  { %8367 = vmatpush3.msra.mxu0 %v6752_v55 }
0x2777   :  { %8368 = vmatprep.subr.mxu0 %v6751_v12 }
0x2778   :  { %8369 = vmatpush3.msra.mxu0 %v6751_v12 }
0x2779   :  { %8370 = vmatprep.subr.mxu0 %v6750_v14 }
0x277a   :  { %8371 = vmatpush3.msra.mxu0 %v6750_v14 }
0x277b   :  { %8372 = vmatprep.subr.mxu0 %v6749_v32 }
0x277c   :  { %8373 = vmatpush3.msra.mxu0 %v6749_v32  ;;  %v6769_v32 = vld [vmem:[%s11141_s6 + $0xa8] sm:$0xff] }
0x277d   :  { %8374 = vmatprep.subr.mxu0 %v6748_v1 }
0x277e   :  { %8375 = vmatpush3.msra.mxu0 %v6748_v1  ;;  %v6768_v1 = vld [vmem:[%s11141_s6 + $0xa0] sm:$0xff] }
0x277f   :  { %8376 = vmatprep.subr.mxu0 %v6747_v52 }
0x2780   :  { %8377 = vmatpush3.msra.mxu0 %v6747_v52 }
0x2781   :  { %8378 = vmatprep.subr.mxu0 %v6746_v49 }
0x2782   :  { %8379 = vmatpush3.msra.mxu0 %v6746_v49 }
0x2783   :  { %8478 = vmatprep.subr.mxu0 %v10787_v6 }
0x2823   :  { %v8336_v23 = vpop.f32.mrf.mxu0 }
0x2824   :  { %v5112_v31 = vadd.f32 %v8336_v23, %v10445_v15 }
0x2825   :  { %v5102_v37 = vpop.f32.mrf.mxu0 }
0x2826   :  { %v10699_v35 = vadd.f32 %v6733_v26, %v5112_v31  ;;  %v5111_v45 = vadd.f32 %v5102_v37, %v10448_v40 }
0x2828   :  { %v10702_v63 = vadd.f32 %v6733_v26, %v5111_v45  ;;  %v5130_v46 = vsel %vm104_vm0, %v10699_v35, 0.0  ;;  %v5134_v20 = vmul.f32 %v10699_v35, %v10699_v35 }
0x2829   :  { %5131 = vadd.xlane.f32.xlu0 %v5130_v46  ;;  %v6736_v46 = vld [vmem:[%s11151_s16 + $0x4] ss:$0 sm:$0xff] }
0x282a   :  { %v5127_v59 = vsel %vm104_vm0, %v10702_v63, 0.0  ;;  %v5133_v33 = vmul.f32 %v10702_v63, %v10702_v63  ;;  %v5138_v40 = vsel %vm104_vm0, %v5134_v20, 0.0 }
0x282b   :  { %5128 = vadd.xlane.f32.xlu1 %v5127_v59 }
0x282c   :  { %v5135_v15 = vsel %vm104_vm0, %v5133_v33, 0.0  ;;  %v6737_v33 = vld [vmem:[%s11152_s17 + $0x4] ss:$0 sm:$0xff] }
0x282d   :  { %5136 = vadd.xlane.f32.xlu0 %v5135_v15 }
0x2831   :  { %5139 = vadd.xlane.f32.xlu0 %v5138_v40 }
0x28b2   :  { %v5132_v16 = vpop.xlane.xlu0 %5131 }
0x28b3   :  { %v5142_v13 = vmul.f32 0.03125, %v5132_v16  ;;  %v10797_v16 = vld [vmem:[%s11140_s5 + $0x70] sm:$0xff] }
0x28b4   :  { %v5129_v9 = vpop.xlane.xlu1 %5128 }
0x28b5   :  { %v5141_v7 = vmul.f32 0.03125, %v5129_v9  ;;  %v5146_v51 = vmul.f32 %v5142_v13, %v5142_v13  ;;  %v5152_v15 = vsub.f32 %v10699_v35, %v5142_v13  ;;  %v10804_v9 = vld [vmem:[%s11140_s5 + $0x68] sm:$0xff]  ;;  %v10825_v13 = vld [vmem:[%s11140_s5 + $0x50] sm:$0xff] }
0x28b6   :  { %v5137_v11 = vpop.xlane.xlu0 %5136 }
0x28b7   :  { %v5145_v17 = vmul.f32 %v5141_v7, %v5141_v7  ;;  %v5143_v44 = vmul.f32 0.03125, %v5137_v11  ;;  %v5151_v37 = vsub.f32 %v10702_v63, %v5141_v7  ;;  %v10811_v7 = vld [vmem:[%s11140_s5 + $0x60] sm:$0xff]  ;;  %v10818_v11 = vld [vmem:[%s11140_s5 + $0x58] sm:$0xff] }
0x28b9   :  { %v5147_v29 = vsub.f32 %v5143_v44, %v5145_v17  ;;  %v10832_v17 = vld [vmem:[%s11140_s5 + $0x48] sm:$0xff]  ;;  %v10839_v44 = vld [vmem:[%s11140_s5 + $0x40] sm:$0xff] }
0x28ba   :  { %v5140_v25 = vpop.xlane.xlu0 %5139 }
0x28bb   :  { %v5149_v27 = vmax.f32 %v5147_v29, 0.0  ;;  %v5144_v47 = vmul.f32 0.03125, %v5140_v25  ;;  %v10846_v29 = vld [vmem:[%s11140_s5 + $0x38] sm:$0xff]  ;;  %v10853_v25 = vld [vmem:[%s11140_s5 + $0x30] sm:$0xff] }
0x28bd   :  { %v5153_v21 = vadd.f32 1e-05, %v5149_v27  ;;  %v5148_v23 = vsub.f32 %v5144_v47, %v5146_v51  ;;  %v10860_v51 = vld [vmem:[%s11140_s5 + $0x28] sm:$0xff]  ;;  %v10867_v27 = vld [vmem:[%s11140_s5 + $0x20] sm:$0xff]  ;;  %v10874_v47 = vld [vmem:[%s11140_s5 + $0x18] sm:$0xff] }
0x28bf   :  { %8652 = vrsqrt.f32 %v5153_v21  ;;  %v5150_v26 = vmax.f32 %v5148_v23, 0.0  ;;  %v10881_v21 = vld [vmem:[%s11140_s5 + $0x10] sm:$0xff]  ;;  %v10888_v23 = vld [vmem:[%s11140_s5 + $0x8] sm:$0xff] }
0x28c1   :  { %v5154_v31 = vadd.f32 1e-05, %v5150_v26  ;;  %v10895_v26 = vld [vmem:[%s11140_s5] sm:$0xff] }
0x28c3   :  { %8654 = vrsqrt.f32 %v5154_v31 }
0x28cc   :  { %v8653_v45 = vpop.eup %8652 }
0x28cd   :  { %v5157_v59 = vmul.f32 %v8653_v45, %v5151_v37  ;;  %v6763_v37 = vld [vmem:[%s11148_s13 + $0x4] ss:$0 sm:$0xff] }
0x28cf   :  { %v5165_v20 = vmul.f32 %v6736_v46, %v5157_v59 }
0x28d0   :  { %v8655_v40 = vpop.eup %8654 }
0x28d1   :  { %v5158_v42 = vmul.f32 %v8655_v40, %v5152_v15  ;;  %v5173_v5 = vadd.f32 %v6737_v33, %v5165_v20 }
0x28d3   :  { %v5166_v30 = vmul.f32 %v6736_v46, %v5158_v42  ;;  %8345 = vmatprep.mubr.msk.f32.mxu1 %vm104_vm0, %v5173_v5 }
0x28d5   :  { %v5174_v0 = vadd.f32 %v6737_v33, %v5166_v30  ;;  %v6771_v30 = vld [vmem:[%s11141_s6 + $0xb8] sm:$0xff] }
0x28d6   :  { %8383 = vmatprep.subr.mxu1 %v6771_v30 }
0x28d7   :  { %8346 = vmatmul.mubr.msk.f32.vlgmr.msra.gmra.mxu1 %vm104_vm0, %v5174_v0  ;;  %v6770_v0 = vld [vmem:[%s11141_s6 + $0xb0] sm:$0xff] }
0x28d8   :  { %8384 = vmatpush3.msra.mxu1 %v6771_v30  ;;  %v6767_v30 = vld [vmem:[%s11150_s15 + $0x5] ss:$0 sm:$0xff] }
0x28d9   :  { %8385 = vmatprep.subr.mxu1 %v6770_v0 }
0x28da   :  { %8386 = vmatpush3.msra.mxu1 %v6770_v0 }
0x28db   :  { %8387 = vmatprep.subr.mxu1 %v6769_v32 }
0x28dc   :  { %8388 = vmatpush3.msra.mxu1 %v6769_v32 }
0x28dd   :  { %8389 = vmatprep.subr.mxu1 %v6768_v1 }
0x28de   :  { %8390 = vmatpush3.msra.mxu1 %v6768_v1 }
0x28df   :  { %8394 = vmatprep.subr.mxu1 %v10475_v28 }
0x2997   :  { %v8347_v10 = vpop.f32.mrf.mxu1 }
0x2998   :  { %v5266_v24 = vadd.f32 %v8347_v10, %v6743_v8 }
0x2999   :  { %v5260_v48 = vpop.f32.mrf.mxu1 }
0x299a   :  { %v5261_v55 = vadd.f32 %v6743_v8, %v5260_v48  ;;  %v5270_v14 = vmax.f32 %v5266_v24, 0.0 }
0x299c   :  { %v5269_v12 = vmax.f32 %v5261_v55, 0.0 }
0x299e   :  { %8380 = vmatprep.mubr.f32.mxu0 %v5269_v12 }
0x299f   :  { %8381 = vmatmul.mubr.f32.vlgmr.msra.gmra.mxu0 %v5270_v14 }
0x29a0   :  { %8479 = vmatpush3.msra.mxu0 %v10787_v6 }
0x29a1   :  { %8480 = vmatprep.subr.mxu0 %v10797_v16 }
0x29a2   :  { %8481 = vmatpush3.msra.mxu0 %v10797_v16 }
0x29a3   :  { %8482 = vmatprep.subr.mxu0 %v10804_v9 }
0x29a4   :  { %8483 = vmatpush3.msra.mxu0 %v10804_v9 }
0x29a5   :  { %8484 = vmatprep.subr.mxu0 %v10811_v7 }
0x29a6   :  { %8485 = vmatpush3.msra.mxu0 %v10811_v7 }
0x29a7   :  { %8486 = vmatprep.subr.mxu0 %v10818_v11 }
0x29a8   :  { %8487 = vmatpush3.msra.mxu0 %v10818_v11 }
0x29a9   :  { %8488 = vmatprep.subr.mxu0 %v10825_v13 }
0x29aa   :  { %8489 = vmatpush3.msra.mxu0 %v10825_v13 }
0x29ab   :  { %8490 = vmatprep.subr.mxu0 %v10832_v17 }
0x29ac   :  { %8491 = vmatpush3.msra.mxu0 %v10832_v17 }
0x29ad   :  { %8492 = vmatprep.subr.mxu0 %v10839_v44 }
0x29ae   :  { %8493 = vmatpush3.msra.mxu0 %v10839_v44 }
0x29af   :  { %8494 = vmatprep.subr.mxu0 %v10846_v29 }
0x29b0   :  { %8495 = vmatpush3.msra.mxu0 %v10846_v29 }
0x29b1   :  { %8496 = vmatprep.subr.mxu0 %v10853_v25 }
0x29b2   :  { %8497 = vmatpush3.msra.mxu0 %v10853_v25 }
0x29b3   :  { %8498 = vmatprep.subr.mxu0 %v10860_v51 }
0x29b4   :  { %8499 = vmatpush3.msra.mxu0 %v10860_v51 }
0x29b5   :  { %8500 = vmatprep.subr.mxu0 %v10867_v27 }
0x29b6   :  { %8501 = vmatpush3.msra.mxu0 %v10867_v27 }
0x29b7   :  { %8502 = vmatprep.subr.mxu0 %v10874_v47 }
0x29b8   :  { %8503 = vmatpush3.msra.mxu0 %v10874_v47 }
0x29b9   :  { %8504 = vmatprep.subr.mxu0 %v10881_v21 }
0x29ba   :  { %8505 = vmatpush3.msra.mxu0 %v10881_v21 }
0x29bb   :  { %8506 = vmatprep.subr.mxu0 %v10888_v23 }
0x29bc   :  { %8507 = vmatpush3.msra.mxu0 %v10888_v23 }
0x29bd   :  { %8508 = vmatprep.subr.mxu0 %v10895_v26 }
0x29be   :  { %8509 = vmatpush3.msra.mxu0 %v10895_v26 }
0x2a5f   :  { %v8382_v31 = vpop.f32.mrf.mxu0 }
0x2a60   :  { %v5364_v45 = vadd.f32 %v8382_v31, %v10699_v35 }
0x2a61   :  { %v5354_v46 = vpop.f32.mrf.mxu0 }
0x2a62   :  { %v10903_v59 = vadd.f32 %v6763_v37, %v5364_v45  ;;  %v5363_v33 = vadd.f32 %v5354_v46, %v10702_v63 }
0x2a64   :  { %v10906_v15 = vadd.f32 %v6763_v37, %v5363_v33  ;;  %v5382_v20 = vsel %vm104_vm0, %v10903_v59, 0.0  ;;  %v5386_v5 = vmul.f32 %v10903_v59, %v10903_v59 }
0x2a65   :  { %5383 = vadd.xlane.f32.xlu0 %v5382_v20 }
0x2a66   :  { %v5379_v40 = vsel %vm104_vm0, %v10906_v15, 0.0  ;;  %v5385_v42 = vmul.f32 %v10906_v15, %v10906_v15  ;;  %v5390_v63 = vsel %vm104_vm0, %v5386_v5, 0.0  ;;  %v6766_v5 = vld [vmem:[%s11149_s14 + $0x5] ss:$0 sm:$0xff] }
0x2a68   :  { %v5387_v35 = vsel %vm104_vm0, %v5385_v42, 0.0 }
0x2a69   :  { %5380 = vadd.xlane.f32.xlu0 %v5379_v40 }
0x2a6d   :  { %5388 = vadd.xlane.f32.xlu0 %v5387_v35 }
0x2a71   :  { %5391 = vadd.xlane.f32.xlu0 %v5390_v63 }
0x2aee   :  { %v5384_v52 = vpop.xlane.xlu0 %5383 }
0x2aef   :  { %v5394_v24 = vmul.f32 0.03125, %v5384_v52 }
0x2af1   :  { %v5398_v31 = vmul.f32 %v5394_v24, %v5394_v24  ;;  %v5404_v0 = vsub.f32 %v10903_v59, %v5394_v24  ;;  %v6773_v24 = vld [vmem:[%s11142_s7 + $0x5] ss:$0 sm:$0xff] }
0x2af2   :  { %v5381_v49 = vpop.xlane.xlu0 %5380 }
0x2af3   :  { %v5393_v8 = vmul.f32 0.03125, %v5381_v49 }
0x2af5   :  { %v5397_v48 = vmul.f32 %v5393_v8, %v5393_v8  ;;  %v5403_v42 = vsub.f32 %v10906_v15, %v5393_v8 }
0x2af6   :  { %v5389_v10 = vpop.xlane.xlu0 %5388 }
0x2af7   :  { %v5395_v55 = vmul.f32 0.03125, %v5389_v10 }
0x2af9   :  { %v5399_v12 = vsub.f32 %v5395_v55, %v5397_v48 }
0x2afa   :  { %v5392_v14 = vpop.xlane.xlu0 %5391 }
0x2afb   :  { %v5401_v37 = vmax.f32 %v5399_v12, 0.0  ;;  %v5396_v45 = vmul.f32 0.03125, %v5392_v14 }
0x2afd   :  { %v5405_v46 = vadd.f32 1e-05, %v5401_v37  ;;  %v5400_v33 = vsub.f32 %v5396_v45, %v5398_v31 }
0x2aff   :  { %8656 = vrsqrt.f32 %v5405_v46  ;;  %v5402_v20 = vmax.f32 %v5400_v33, 0.0 }
0x2b01   :  { %v5406_v40 = vadd.f32 1e-05, %v5402_v20 }
0x2b03   :  { %8658 = vrsqrt.f32 %v5406_v40 }
0x2b0c   :  { %v8657_v35 = vpop.eup %8656 }
0x2b0d   :  { %v5409_v63 = vmul.f32 %v8657_v35, %v5403_v42 }
0x2b0f   :  { %v5417_v32 = vmul.f32 %v6766_v5, %v5409_v63 }
0x2b10   :  { %v8659_v1 = vpop.eup %8658 }
0x2b11   :  { %v5410_v52 = vmul.f32 %v8659_v1, %v5404_v0  ;;  %v5425_v49 = vadd.f32 %v6767_v30, %v5417_v32 }
0x2b13   :  { %v5418_v10 = vmul.f32 %v6766_v5, %v5410_v52  ;;  %8391 = vmatprep.mubr.msk.f32.mxu1 %vm104_vm0, %v5425_v49 }
0x2b15   :  { %v5426_v8 = vadd.f32 %v6767_v30, %v5418_v10 }
0x2b17   :  { %8392 = vmatmul.mubr.msk.f32.vlgmr.msra.gmra.mxu1 %vm104_vm0, %v5426_v8 }
0x2b18   :  { %8395 = vmatpush3.msra.mxu1 %v10475_v28 }
0x2b19   :  { %8396 = vmatprep.subr.mxu1 %v10492_v4 }
0x2b1a   :  { %8397 = vmatpush3.msra.mxu1 %v10492_v4 }
0x2bd7   :  { %v8393_v48 = vpop.f32.mrf.mxu1 }
0x2bd8   :  { %v5518_v55 = vadd.f32 %v8393_v48, %v6773_v24 }
0x2bd9   :  { %v5512_v12 = vpop.f32.mrf.mxu1 }
0x2bda   :  { %v5513_v14 = vadd.f32 %v6773_v24, %v5512_v12  ;;  %5525 = vrot.lane.b32.xlu1 %v5518_v55, %s8790_s0 }
0x2bdc   :  { %5523 = vrot.lane.b32.xlu0 %v5513_v14, %s8790_s0 }
0x2bde   :  { %5753 = vrot.lane.b32.xlu1 %v5518_v55, %s8791_s19 }
0x2be2   :  { %5751 = vrot.lane.b32.xlu1 %v5513_v14, %s8791_s19 }
0x2c4c   :  { %v5526_v31 = vpop.permute.xlu1 %5525 }
0x2c4e   :  { %v5524_v28 = vpop.permute.xlu0 %5523 }
0x2c4f   :  { %5529 = vxpose.xlu0.b32.start [1/2] (short) (narrow) %v5524_v28, 32 }
0x2c50   :  { %v5754_v30 = vpop.permute.xlu1 %5753 }
0x2c53   :  { %5530 = vxpose.xlu0.b32.end [2/2] (short) (narrow) %v5526_v31, 32  ;;  %v6800_v31 = vld [vmem:[%s11143_s8 + $0xb0] sm:$0xff] }
0x2ccb   :  { %v5545_v4 = vpop.trf.xlu0 }
0x2ccc   :  { %8398 = vmatprep.mubr.msk.f32.mxu1 %vm285_vm1, %v5545_v4  ;;  %v6799_v4 = vld [vmem:[%s11143_s8 + $0xa8] sm:$0xff] }
0x2ccf   :  { %v5546_v37 = vpop.trf.xlu0 }
0x2cd0   :  { %8399 = vmatmul.mubr.msk.f32.vlgmr.msra.gmra.mxu1 %vm285_vm1, %v5546_v37  ;;  %v6798_v37 = vld [vmem:[%s11143_s8 + $0xa0] sm:$0xff] }
0x2cd3   :  { %v5547_v45 = vpop.trf.xlu0 }
0x2cd4   :  { %8401 = vmatprep.mubr.msk.f32.mxu1 %vm285_vm1, %v5547_v45 }
0x2cd7   :  { %v5548_v46 = vpop.trf.xlu0 }
0x2cd8   :  { %8402 = vmatmul.mubr.msk.f32.gmra.mxu1 %vm285_vm1, %v5548_v46 }
0x2cd9   :  { %8412 = vmatprep.mubr.msk.f32.mxu1 %vm104_vm0, %v5513_v14 }
0x2d90   :  { %v8400_v33 = vpop.f32.mrf.mxu1 }
0x2d91   :  { %v5659_v63 = vmul.f32 %v10523_v39, %v8400_v33  ;;  %v11179_v39 = vld [vmem:[#allocation6_spill] sm:$0xff] }
0x2d92   :  { %v5639_v20 = vpop.f32.mrf.mxu1 }
0x2d93   :  { %v5658_v0 = vmul.f32 %v10529_v36, %v5639_v20 }
0x2d98   :  { %v8403_v40 = vpop.f32.mrf.mxu1 }
0x2d99   :  { %v5661_v42 = vmul.f32 %v10511_v22, %v8403_v40  ;;  %v5752_v22 = vpop.permute.xlu1 %5751 }
0x2d9a   :  { %v5649_v35 = vpop.f32.mrf.mxu1 }
0x2d9b   :  { %v5660_v5 = vmul.f32 %v10517_v34, %v5649_v35  ;;  %8404 = vmatprep.subr.mxu1 %v5661_v42 }
0x2d9c   :  { %8405 = vmatpush3.msra.mxu1 %v5661_v42 }
0x2d9d   :  { %8406 = vmatprep.subr.mxu1 %v5660_v5 }
0x2d9e   :  { %8407 = vmatpush3.msra.mxu1 %v5660_v5 }
0x2d9f   :  { %8408 = vmatprep.subr.mxu1 %v5659_v63 }
0x2da0   :  { %8409 = vmatpush3.msra.mxu1 %v5659_v63 }
0x2da1   :  { %8410 = vmatprep.subr.mxu1 %v5658_v0 }
0x2da2   :  { %8411 = vmatpush3.msra.mxu1 %v5658_v0 }
0x2da3   :  { %8413 = vmatmul.mubr.msk.f32.vlgmr.msra.gmra.mxu1 %vm104_vm0, %v5518_v55  ;;  %8415 = vmatprep.subr.mxu1 %v5754_v30 }
0x2da4   :  { %8416 = vmatpush3.msra.mxu1 %v5754_v30  ;;  %8419 = vmatprep.mubr.msk.f32.mxu1 %vm285_vm1, %v10536_v60  ;;  %v6805_v30 = vld [vmem:[%s11144_s9 + $0x5] ss:$0 sm:$0xff] }
0x2da5   :  { %8417 = vmatprep.subr.mxu1 %v5752_v22 }
0x2da6   :  { %8418 = vmatpush3.msra.mxu1 %v5752_v22 }
0x2da7   :  { %8420 = vmatmul.mubr.msk.f32.vlgmr.msra.gmra.mxu1 %vm285_vm1, %v10543_v61  ;;  %v11180_v61 = vld [vmem:[#allocation5_spill] sm:$0xff] }
0x2da8   :  { %8422 = vmatprep.mubr.msk.f32.mxu1 %vm285_vm1, %v10550_v56 }
0x2dab   :  { %8423 = vmatmul.mubr.msk.f32.gmra.mxu1 %vm285_vm1, %v10557_v53 }
0x2dac   :  { %8425 = vmatprep.mubr.msk.f32.mxu1 %vm285_vm1, %v10564_v41 }
0x2daf   :  { %8426 = vmatmul.mubr.msk.f32.gmra.mxu1 %vm285_vm1, %v10571_v50 }
0x2db0   :  { %8428 = vmatprep.mubr.msk.f32.mxu1 %vm285_vm1, %v10578_v62 }
0x2db3   :  { %8429 = vmatmul.mubr.msk.f32.gmra.mxu1 %vm285_vm1, %v10585_v54 }
0x2db4   :  { %8431 = vmatprep.mubr.msk.f32.mxu1 %vm285_vm1, %v10592_v57 }
0x2db7   :  { %8432 = vmatmul.mubr.msk.f32.gmra.mxu1 %vm285_vm1, %v10599_v58 }
0x2db8   :  { %8434 = vmatprep.mubr.msk.f32.mxu1 %vm285_vm1, %v10606_v43 }
0x2dbb   :  { %8435 = vmatmul.mubr.msk.f32.gmra.mxu1 %vm285_vm1, %v10613_v38 }
0x2dbc   :  { %8437 = vmatprep.mubr.msk.f32.mxu1 %vm285_vm1, %v10620_v3 }
0x2dbf   :  { %8438 = vmatmul.mubr.msk.f32.gmra.mxu1 %vm285_vm1, %v10627_v2 }
0x2dc0   :  { %8440 = vmatprep.mubr.msk.f32.mxu1 %vm285_vm1, %v10634_v18 }
0x2dc3   :  { %8441 = vmatmul.mubr.msk.f32.gmra.mxu1 %vm285_vm1, %v10641_v19 }
0x2e63   :  { %v8414_v34 = vpop.f32.mrf.mxu1 }
0x2e64   :  { %v10994_v36 = vadd.f32 %v11179_v39, %v8414_v34 }
0x2e65   :  { %v5732_v60 = vpop.f32.mrf.mxu1 }
0x2e66   :  { %v10997_v56 = vadd.f32 %v11180_v61, %v5732_v60  ;;  %5743 = vmax.xlane.f32.xlu0 %v10994_v36 }
0x2e67   :  { %v8421_v53 = vpop.f32.mrf.mxu1 }
0x2e68   :  { %5741 = vmax.xlane.f32.xlu1 %v10997_v56 }
0x2e69   :  { %v5823_v41 = vpop.f32.mrf.mxu1 }
0x2e6b   :  { %v8424_v50 = vpop.f32.mrf.mxu1 }
0x2e6d   :  { %v5833_v62 = vpop.f32.mrf.mxu1 }
0x2e6f   :  { %v8427_v54 = vpop.f32.mrf.mxu1 }
0x2e71   :  { %v5843_v57 = vpop.f32.mrf.mxu1 }
0x2e73   :  { %v8430_v58 = vpop.f32.mrf.mxu1 }
0x2e75   :  { %v5853_v43 = vpop.f32.mrf.mxu1 }
0x2e77   :  { %v8433_v38 = vpop.f32.mrf.mxu1 }
0x2e79   :  { %v5863_v3 = vpop.f32.mrf.mxu1 }
0x2e7b   :  { %v8436_v2 = vpop.f32.mrf.mxu1 }
0x2e7c   :  { %v5913_v48 = vmul.f32 %v10818_v11, %v8436_v2  ;;  %v5907_v11 = vmul.f32 %v10860_v51, %v8427_v54  ;;  %v6810_v54 = vld [vmem:[%s11145_s10 + $0xa0] sm:$0xff]  ;;  %v6828_v2 = vld [vmem:[%s11147_s12 + $0x2d0] sm:$0xff] }
0x2e7d   :  { %v5873_v18 = vpop.f32.mrf.mxu1 }
0x2e7e   :  { %v5912_v55 = vmul.f32 %v10825_v13, %v5873_v18  ;;  %v5906_v13 = vmul.f32 %v10867_v27, %v5843_v57  ;;  %v6833_v57 = vld [vmem:[%s11147_s12 + $0x2f8] sm:$0xff]  ;;  %v6827_v18 = vld [vmem:[%s11147_s12 + $0x2c8] sm:$0xff] }
0x2e7f   :  { %v8439_v19 = vpop.f32.mrf.mxu1 }
0x2e80   :  { %v5915_v10 = vmul.f32 %v10804_v9, %v8439_v19  ;;  %v5909_v9 = vmul.f32 %v10846_v29, %v8430_v58  ;;  %v5903_v29 = vmul.f32 %v10888_v23, %v8421_v53  ;;  %v6832_v58 = vld [vmem:[%s11147_s12 + $0x2f0] sm:$0xff]  ;;  %v6826_v19 = vld [vmem:[%s11147_s12 + $0x2c0] sm:$0xff] }
0x2e81   :  { %v5883_v32 = vpop.f32.mrf.mxu1 }
0x2e82   :  { %v5914_v24 = vmul.f32 %v10811_v7, %v5883_v32  ;;  %v5908_v7 = vmul.f32 %v10853_v25, %v5853_v43  ;;  %v5902_v25 = vmul.f32 %v10895_v26, %v5823_v41  ;;  %v6801_v26 = vld [vmem:[%s11143_s8 + $0xb8] sm:$0xff]  ;;  %v6831_v43 = vld [vmem:[%s11147_s12 + $0x2e8] sm:$0xff] }
0x2e83   :  { %v8442_v1 = vpop.f32.mrf.mxu1  ;;  %v6813_v41 = vld [vmem:[%s11145_s10 + $0xb8] sm:$0xff] }
0x2e84   :  { %v5917_v52 = vmul.f32 %v10787_v6, %v8442_v1  ;;  %v5911_v6 = vmul.f32 %v10832_v17, %v8433_v38  ;;  %v5905_v17 = vmul.f32 %v10874_v47, %v8424_v50  ;;  %v6812_v50 = vld [vmem:[%s11145_s10 + $0xb0] sm:$0xff]  ;;  %8524 = vmatprep.subr.mxu0 %v6813_v41  ;;  %v6830_v38 = vld [vmem:[%s11147_s12 + $0x2e0] sm:$0xff]  ;;  %v6825_v32 = vld [vmem:[%s11147_s12 + $0x2b8] sm:$0xff] }
0x2e85   :  { %v5893_v49 = vpop.f32.mrf.mxu1  ;;  %v6824_v1 = vld [vmem:[%s11147_s12 + $0x2b0] sm:$0xff] }
0x2e86   :  { %v5916_v8 = vmul.f32 %v10797_v16, %v5893_v49  ;;  %8443 = vmatprep.subr.mxu1 %v5917_v52  ;;  %v5910_v16 = vmul.f32 %v10839_v44, %v5863_v3  ;;  %v5904_v44 = vmul.f32 %v10881_v21, %v5833_v62  ;;  %v6811_v62 = vld [vmem:[%s11145_s10 + $0xa8] sm:$0xff]  ;;  %v6829_v3 = vld [vmem:[%s11147_s12 + $0x2d8] sm:$0xff]  ;;  %v6822_v49 = vld [vmem:[%s11147_s12 + $0x2a0] sm:$0xff] }
0x2e87   :  { %8444 = vmatpush3.msra.mxu1 %v5917_v52  ;;  %v6823_v52 = vld [vmem:[%s11147_s12 + $0x2a8] sm:$0xff] }
0x2e88   :  { %8445 = vmatprep.subr.mxu1 %v5916_v8 }
0x2e89   :  { %8446 = vmatpush3.msra.mxu1 %v5916_v8 }
0x2e8a   :  { %8447 = vmatprep.subr.mxu1 %v5915_v10 }
0x2e8b   :  { %8448 = vmatpush3.msra.mxu1 %v5915_v10 }
0x2e8c   :  { %8449 = vmatprep.subr.mxu1 %v5914_v24 }
0x2e8d   :  { %8450 = vmatpush3.msra.mxu1 %v5914_v24 }
0x2e8e   :  { %8451 = vmatprep.subr.mxu1 %v5913_v48 }
0x2e8f   :  { %8452 = vmatpush3.msra.mxu1 %v5913_v48 }
0x2e90   :  { %8453 = vmatprep.subr.mxu1 %v5912_v55 }
0x2e91   :  { %8454 = vmatpush3.msra.mxu1 %v5912_v55 }
0x2e92   :  { %8455 = vmatprep.subr.mxu1 %v5911_v6 }
0x2e93   :  { %8456 = vmatpush3.msra.mxu1 %v5911_v6 }
0x2e94   :  { %8457 = vmatprep.subr.mxu1 %v5910_v16 }
0x2e95   :  { %8458 = vmatpush3.msra.mxu1 %v5910_v16 }
0x2e96   :  { %8459 = vmatprep.subr.mxu1 %v5909_v9 }
0x2e97   :  { %8460 = vmatpush3.msra.mxu1 %v5909_v9 }
0x2e98   :  { %8461 = vmatprep.subr.mxu1 %v5908_v7 }
0x2e99   :  { %8462 = vmatpush3.msra.mxu1 %v5908_v7 }
0x2e9a   :  { %8463 = vmatprep.subr.mxu1 %v5907_v11 }
0x2e9b   :  { %8464 = vmatpush3.msra.mxu1 %v5907_v11 }
0x2e9c   :  { %8465 = vmatprep.subr.mxu1 %v5906_v13 }
0x2e9d   :  { %8466 = vmatpush3.msra.mxu1 %v5906_v13 }
0x2e9e   :  { %8467 = vmatprep.subr.mxu1 %v5905_v17 }
0x2e9f   :  { %8468 = vmatpush3.msra.mxu1 %v5905_v17 }
0x2ea0   :  { %8469 = vmatprep.subr.mxu1 %v5904_v44 }
0x2ea1   :  { %8470 = vmatpush3.msra.mxu1 %v5904_v44 }
0x2ea2   :  { %8471 = vmatprep.subr.mxu1 %v5903_v29 }
0x2ea3   :  { %8472 = vmatpush3.msra.mxu1 %v5903_v29 }
0x2ea4   :  { %8473 = vmatprep.subr.mxu1 %v5902_v25 }
0x2ea5   :  { %8474 = vmatpush3.msra.mxu1 %v5902_v25 }
0x2ea6   :  { %8513 = vmatprep.subr.mxu1 %v6801_v26 }
0x2eef   :  { %v5744_v51 = vpop.xlane.xlu0 %5743 }
0x2ef0   :  { %v5746_v27 = vsub.f32 %v10994_v36, %v5744_v51 }
0x2ef1   :  { %v5742_v47 = vpop.xlane.xlu1 %5741 }
0x2ef2   :  { %v5745_v21 = vsub.f32 %v10997_v56, %v5742_v47  ;;  %v5749_v12 = vmul.f32 1.442695, %v5746_v27 }
0x2ef4   :  { %v5747_v14 = vmul.f32 1.442695, %v5745_v21  ;;  %v6808_v21 = vld [vmem:[%s11151_s16 + $0x5] ss:$0 sm:$0xff] }
0x2ef6   :  { %8660 = vpow2.f32 %v5747_v14  ;;  %v6809_v14 = vld [vmem:[%s11152_s17 + $0x5] ss:$0 sm:$0xff] }
0x2ef7   :  { %8662 = vpow2.f32 %v5749_v12 }
0x2f03   :  { %v8661_v23 = vpop.eup %8660 }
0x2f04   :  { %v8663_v28 = vpop.eup %8662  ;;  %8475 = vmatprep.mubr.f32.mxu1 %v8661_v23  ;;  %8510 = vmatprep.mubr.f32.mxu0 %v8661_v23 }
0x2f05   :  { %8476 = vmatmul.mubr.f32.vlgmr.msra.gmra.mxu1 %v8663_v28  ;;  %8511 = vmatmul.mubr.f32.vlgmr.msra.gmra.mxu0 %v8663_v28 }
0x2f06   :  { %8514 = vmatpush3.msra.mxu1 %v6801_v26  ;;  %8525 = vmatpush3.msra.mxu0 %v6813_v41 }
0x2f07   :  { %8515 = vmatprep.subr.mxu1 %v6800_v31  ;;  %8526 = vmatprep.subr.mxu0 %v6812_v50 }
0x2f08   :  { %8516 = vmatpush3.msra.mxu1 %v6800_v31  ;;  %8527 = vmatpush3.msra.mxu0 %v6812_v50 }
0x2f09   :  { %8517 = vmatprep.subr.mxu1 %v6799_v4  ;;  %8528 = vmatprep.subr.mxu0 %v6811_v62 }
0x2f0a   :  { %8518 = vmatpush3.msra.mxu1 %v6799_v4  ;;  %8529 = vmatpush3.msra.mxu0 %v6811_v62 }
0x2f0b   :  { %8519 = vmatprep.subr.mxu1 %v6798_v37  ;;  %8530 = vmatprep.subr.mxu0 %v6810_v54 }
0x2f0c   :  { %8520 = vmatpush3.msra.mxu1 %v6798_v37  ;;  %8531 = vmatpush3.msra.mxu0 %v6810_v54 }
0x2f0d   :  { %8535 = vmatprep.subr.mxu1 %v6833_v57 }
0x2fc5   :  { %v8512_v45 = vpop.f32.mrf.mxu0  ;;  %v8477_v33 = vpop.f32.mrf.mxu1 }
0x2fc6   :  { %8664 = vrcp.f32 %v8512_v45 }
0x2fc7   :  { %v6059_v46 = vpop.f32.mrf.mxu0  ;;  %v5984_v42 = vpop.f32.mrf.mxu1 }
0x2fc8   :  { %8666 = vrcp.f32 %v6059_v46  ;;  %v6821_v46 = vld [vmem:[%s11147_s12 + $0x298] sm:$0xff] }
0x2fd3   :  { %v8665_v20 = vpop.eup %8664 }
0x2fd4   :  { %v6071_v5 = vmul.f32 %v8665_v20, %v8477_v33  ;;  %v6820_v33 = vld [vmem:[%s11147_s12 + $0x290] sm:$0xff]  ;;  %v6819_v20 = vld [vmem:[%s11147_s12 + $0x288] sm:$0xff] }
0x2fd5   :  { %v8667_v40 = vpop.eup %8666 }
0x2fd6   :  { %v6070_v35 = vmul.f32 %v8667_v40, %v5984_v42  ;;  %v6818_v40 = vld [vmem:[%s11147_s12 + $0x280] sm:$0xff]  ;;  %s8792_s12 = smov [#allocation2]  }
0x2fd7   :  { %v6815_v42 = vld [vmem:[%s11146_s11 + $0x5] ss:$0 sm:$0xff]  ;;  %s6429_s27 = sshll.u32 %s8792_s12, 4  ;;  %s6430_s27 = int_to_ptr.vmem [resolvable:$true] %s6429_s27 }
0x2fd8   :  { %8521 = vmatprep.mubr.msk.f32.mxu1 %vm104_vm0, %v6070_v35  ;;  %s8768_s11 = scalar_lea.vmem %s6430_s27, 256  ;;  %p8773_p1 = scmp.lt.s32.totalorder %s6430_s27, %s6430_s27 }
0x2fd9   :  { %8522 = vmatmul.mubr.msk.f32.vlgmr.msra.gmra.mxu1 %vm104_vm0, %v6071_v5  ;;  %p8769_p0 = scmp.ne.s32.totalorder %s6430_s27, %s8768_s11  ;;  %p8774_p2 = scmp.lt.s32.totalorder %s8768_s11, %s8768_s11 }
0x2fda   :  { %8536 = vmatpush3.msra.mxu1 %v6833_v57 }
0x2fdb   :  { %8537 = vmatprep.subr.mxu1 %v6832_v58  ;;  %p8775_p3 = por %p8774_p2, %p8773_p1 }
0x2fdc   :  { %8538 = vmatpush3.msra.mxu1 %v6832_v58 }
0x2fdd   :  { %8539 = vmatprep.subr.mxu1 %v6831_v43  ;;  %p8776_p4 = pnand %p8775_p3, %p8769_p0 }
0x2fde   :  { %8540 = vmatpush3.msra.mxu1 %v6831_v43 }
0x2fdf   :  { %8541 = vmatprep.subr.mxu1 %v6830_v38 }
0x2fe0   :  { %8542 = vmatpush3.msra.mxu1 %v6830_v38 }
0x2fe1   :  { %8543 = vmatprep.subr.mxu1 %v6829_v3 }
0x2fe2   :  { %8544 = vmatpush3.msra.mxu1 %v6829_v3 }
0x2fe3   :  { %8545 = vmatprep.subr.mxu1 %v6828_v2 }
0x2fe4   :  { %8546 = vmatpush3.msra.mxu1 %v6828_v2 }
0x2fe5   :  { %8547 = vmatprep.subr.mxu1 %v6827_v18 }
0x2fe6   :  { %8548 = vmatpush3.msra.mxu1 %v6827_v18 }
0x2fe7   :  { %8549 = vmatprep.subr.mxu1 %v6826_v19 }
0x2fe8   :  { %8550 = vmatpush3.msra.mxu1 %v6826_v19 }
0x2fe9   :  { %8551 = vmatprep.subr.mxu1 %v6825_v32 }
0x2fea   :  { %8552 = vmatpush3.msra.mxu1 %v6825_v32 }
0x2feb   :  { %8553 = vmatprep.subr.mxu1 %v6824_v1 }
0x2fec   :  { %8554 = vmatpush3.msra.mxu1 %v6824_v1 }
0x2fed   :  { %8555 = vmatprep.subr.mxu1 %v6823_v52 }
0x2fee   :  { %8556 = vmatpush3.msra.mxu1 %v6823_v52 }
0x2fef   :  { %8557 = vmatprep.subr.mxu1 %v6822_v49 }
0x2ff0   :  { %8558 = vmatpush3.msra.mxu1 %v6822_v49 }
0x2ff1   :  { %8559 = vmatprep.subr.mxu1 %v6821_v46 }
0x2ff2   :  { %8560 = vmatpush3.msra.mxu1 %v6821_v46 }
0x2ff3   :  { %8561 = vmatprep.subr.mxu1 %v6820_v33 }
0x2ff4   :  { %8562 = vmatpush3.msra.mxu1 %v6820_v33 }
0x2ff5   :  { %8563 = vmatprep.subr.mxu1 %v6819_v20 }
0x2ff6   :  { %8564 = vmatpush3.msra.mxu1 %v6819_v20 }
0x2ff7   :  { %8565 = vmatprep.subr.mxu1 %v6818_v40 }
0x2ff8   :  { %8566 = vmatpush3.msra.mxu1 %v6818_v40 }
0x3099   :  { %v8523_v63 = vpop.f32.mrf.mxu1 }
0x309a   :  { %v6159_v0 = vadd.f32 %v8523_v63, %v10903_v59 }
0x309b   :  { %v6149_v22 = vpop.f32.mrf.mxu1 }
0x309c   :  { %v11037_v34 = vadd.f32 %v6805_v30, %v6159_v0  ;;  %v6158_v39 = vadd.f32 %v6149_v22, %v10906_v15 }
0x309e   :  { %v11040_v36 = vadd.f32 %v6805_v30, %v6158_v39  ;;  %v6177_v60 = vsel %vm104_vm0, %v11037_v34, 0.0  ;;  %v6181_v53 = vmul.f32 %v11037_v34, %v11037_v34 }
0x309f   :  { %6178 = vadd.xlane.f32.xlu1 %v6177_v60  ;;  %v6835_v60 = vld [vmem:[%s11148_s13 + $0x5] ss:$0 sm:$0xff] }
0x30a0   :  { %v6174_v61 = vsel %vm104_vm0, %v11040_v36, 0.0  ;;  %v6180_v56 = vmul.f32 %v11040_v36, %v11040_v36  ;;  %v6185_v15 = vsel %vm104_vm0, %v6181_v53, 0.0 }
0x30a2   :  { %v6182_v59 = vsel %vm104_vm0, %v6180_v56, 0.0 }
0x30a3   :  { %6175 = vadd.xlane.f32.xlu1 %v6174_v61 }
0x30a7   :  { %6183 = vadd.xlane.f32.xlu1 %v6182_v59 }
0x30ab   :  { %6186 = vadd.xlane.f32.xlu1 %v6185_v15 }
0x3128   :  { %v6179_v10 = vpop.xlane.xlu1 %6178 }
0x3129   :  { %v6189_v55 = vmul.f32 0.03125, %v6179_v10 }
0x312b   :  { %v6193_v11 = vmul.f32 %v6189_v55, %v6189_v55  ;;  %v6199_v23 = vsub.f32 %v11037_v34, %v6189_v55 }
0x312c   :  { %v6176_v8 = vpop.xlane.xlu1 %6175 }
0x312d   :  { %v6188_v24 = vmul.f32 0.03125, %v6176_v8 }
0x312f   :  { %v6192_v6 = vmul.f32 %v6188_v24, %v6188_v24  ;;  %v6198_v27 = vsub.f32 %v11040_v36, %v6188_v24 }
0x3130   :  { %v6184_v48 = vpop.xlane.xlu1 %6183 }
0x3131   :  { %v6190_v16 = vmul.f32 0.03125, %v6184_v48 }
0x3133   :  { %v6194_v9 = vsub.f32 %v6190_v16, %v6192_v6 }
0x3134   :  { %v6187_v7 = vpop.xlane.xlu1 %6186 }
0x3135   :  { %v6196_v13 = vmax.f32 %v6194_v9, 0.0  ;;  %v6191_v17 = vmul.f32 0.03125, %v6187_v7 }
0x3137   :  { %v6200_v44 = vadd.f32 1e-05, %v6196_v13  ;;  %v6195_v29 = vsub.f32 %v6191_v17, %v6193_v11 }
0x3139   :  { %8668 = vrsqrt.f32 %v6200_v44  ;;  %v6197_v25 = vmax.f32 %v6195_v29, 0.0 }
0x313b   :  { %v6201_v51 = vadd.f32 1e-05, %v6197_v25 }
0x313d   :  { %8670 = vrsqrt.f32 %v6201_v51 }
0x3146   :  { %v8669_v47 = vpop.eup %8668 }
0x3147   :  { %v6204_v12 = vmul.f32 %v8669_v47, %v6198_v27 }
0x3149   :  { %v6212_v28 = vmul.f32 %v6808_v21, %v6204_v12 }
0x314a   :  { %v8671_v26 = vpop.eup %8670 }
0x314b   :  { %v6205_v31 = vmul.f32 %v8671_v26, %v6199_v23  ;;  %v6220_v4 = vadd.f32 %v6809_v14, %v6212_v28 }
0x314d   :  { %v6213_v37 = vmul.f32 %v6808_v21, %v6205_v31  ;;  %8532 = vmatprep.mubr.msk.f32.mxu0 %vm104_vm0, %v6220_v4 }
0x314f   :  { %v6221_v45 = vadd.f32 %v6809_v14, %v6213_v37 }
0x3151   :  { %8533 = vmatmul.mubr.msk.f32.vlgmr.msra.gmra.mxu0 %vm104_vm0, %v6221_v45 }
0x3211   :  { %v8534_v35 = vpop.f32.mrf.mxu0 }
0x3212   :  { %v6313_v5 = vadd.f32 %v8534_v35, %v6815_v42 }
0x3213   :  { %v6307_v63 = vpop.f32.mrf.mxu0 }
0x3214   :  { %v6308_v30 = vadd.f32 %v6815_v42, %v6307_v63  ;;  %v6317_v22 = vmax.f32 %v6313_v5, 0.0 }
0x3216   :  { %v6316_v0 = vmax.f32 %v6308_v30, 0.0 }
0x3218   :  { %8567 = vmatprep.mubr.f32.mxu1 %v6316_v0 }
0x3219   :  { %8568 = vmatmul.mubr.f32.vlgmr.msra.gmra.mxu1 %v6317_v22 }
0x32d9   :  { %v8569_v39 = vpop.f32.mrf.mxu1 }
0x32da   :  { %v6411_v61 = vadd.f32 %v8569_v39, %v11037_v34 }
0x32db   :  { %v6401_v56 = vpop.f32.mrf.mxu1 }
0x32dc   :  { %v6421_v59 = vadd.f32 %v6835_v60, %v6411_v61  ;;  %v6410_v53 = vadd.f32 %v6401_v56, %v11040_v36 }
0x32de   :  { %6423 = vst.msk [vmem:[#allocation2 + $0x8] sm:$0xff] %vm104_vm0, %v6421_v59  ;;  %v6420_v15 = vadd.f32 %v6835_v60, %v6410_v53 }
0x32e0   :  { %6422 = vst.msk [vmem:[#allocation2] sm:$0xff] %vm104_vm0, %v6420_v15 }
0x32e1   :  { %8779 = shalt.err (!%p8776_p4)
}
0x32e2   :  { %s8793_s13 = smov 128   ;;  %s8794_s3 = smov 8  }
0x32e3   :  { %6435 = dma.vmem_to_hbm [thread:$0]  %s6430_s27, 256, %s11153_s18, [#allocation3], %s8793_s13, %s8793_s13, %s8794_s3  }
0x32e4   :  { %8788 = dma.done.wait [#allocation3], 256  }
0x32e5   :  { %8789 = vsyncadd [#allocation3], 4294967040 }
0x32e6   :  { %6439 = vsyncpa [#allocation3], 1 }

</bundles_post_ra>
